<compile_context>
chip_gen: v7x
topology: tpu7x:2x2x1
jax: 0.10.0
libtpu: 0.0.40
codegen_flags: <defaults>
</compile_context>

<pallas_src>
import functools

import jax
import jax.numpy as jnp
from jax import lax
from jax.experimental import pallas as pl
from jax.experimental.pallas import tpu as pltpu


# ----------------------------- Pallas kernel --------------------------------
def decoder_kernel(
    embedded_ref,      # (M, Ep)           f32, M = batch_per_step * trg_len
    enc_convT_ref,     # (CB, Ep, Sp)      mm_dtype (encoder_conved, pre-transposed)
    enc_comb_ref,      # (CB, Sp, Ep)      mm_dtype
    emb2hid_w_ref,     # (Ep, Hp)          mm_dtype
    emb2hid_b_ref,     # (1, Hp)           f32
    conv_w_ref,        # (L, K*Hp, 2*Hp)   mm_dtype, K taps fused on contraction dim
    conv_b_ref,        # (L, 1, 2*Hp)      f32
    attn_h2e_w_ref,    # (Hp, Ep)          mm_dtype
    attn_h2e_b_ref,    # (1, Ep)           f32
    attn_e2h_w_ref,    # (Ep, Hp)          mm_dtype
    attn_e2h_b_ref,    # (1, Hp)           f32
    hid2emb_w_ref,     # (Hp, Ep)          mm_dtype
    hid2emb_b_ref,     # (1, Ep)           f32
    fc_out_w_ref,      # (Ep, Vp)          mm_dtype
    fc_out_b_ref,      # (1, Vp)           f32
    out_ref,           # (M, Vp)           f32
    attn_ref,          # (M, Sp)           f32
    *,
    n_layers, kernel_size, trg_len, src_len, pad_val, mm_dtype,
):
    f32 = jnp.float32
    scale = f32(2.0 ** -0.5)
    pad_val = f32(pad_val)
    cast = lambda x: x.astype(mm_dtype)

    embedded = embedded_ref[...]                       # (M, Ep) f32
    M, Ep = embedded.shape
    CB, _, Sp = enc_convT_ref.shape
    Hp = emb2hid_w_ref.shape[1]

    # Loop-invariant loads hoisted out of the (statically unrolled) layer loop.
    enc_convT = enc_convT_ref[...]                     # (CB, Ep, Sp)
    enc_comb = enc_comb_ref[...]                       # (CB, Sp, Ep)

    # emb2hid
    conv_input = (jnp.dot(cast(embedded), emb2hid_w_ref[...],
                          preferred_element_type=f32)
                  + emb2hid_b_ref[0])                  # (M, Hp) f32

    # Hoisted masks / biases (JAX does not CSE broadcasts; build them once).
    #   causal-pad rows: within each folded sequence, row t < shift.
    row_in_seq = lax.broadcasted_iota(jnp.int32, (M, Hp), 0) % trg_len
    pad_masks = [row_in_seq < s for s in range(1, kernel_size)]
    #   additive -inf bias for the zero-padded source key positions.
    if Sp != src_len:
        key_bias = jnp.where(
            lax.broadcasted_iota(jnp.int32, (1, 1, Sp), 2) < src_len,
            f32(0.0), f32(-1e30))
    else:
        key_bias = None

    attention = None

    # static unrolled decoder layers (dropout == identity at inference)
    for i in range(n_layers):
        # --- causal Conv1d: K taps fused into ONE MXU matmul per layer.
        #     Rows are shifted with pltpu.roll (XLU); the first `shift` rows of
        #     each folded sequence are splatted with the pad value.  The roll
        #     wraps rows across batch boundaries, but exactly those rows are
        #     overwritten by the mask, so the batch fold stays correct. ---
        taps = []
        for j in range(kernel_size):
            shift = kernel_size - 1 - j
            if shift == 0:
                taps.append(cast(conv_input))
            else:
                x = pltpu.roll(conv_input, shift, axis=0)
                x = jnp.where(pad_masks[shift - 1], pad_val, x)
                taps.append(cast(x))
        x_stack = jnp.concatenate(taps, axis=1)        # (M, K*Hp) lane-aligned
        acc = (jnp.dot(x_stack, conv_w_ref[i],
                       preferred_element_type=f32)
               + conv_b_ref[i, 0])                     # (M, 2*Hp)

        # GLU (Hp is a multiple of 128, so the lane split is aligned; padded
        # value/gate columns are exactly zero by construction).
        conved = acc[:, :Hp] * jax.nn.sigmoid(acc[:, Hp:])      # (M, Hp)

        # --- attention ---
        conved_emb = (jnp.dot(cast(conved), attn_h2e_w_ref[...],
                              preferred_element_type=f32)
                      + attn_h2e_b_ref[0])             # (M, Ep)
        combined = (conved_emb + embedded) * scale     # (M, Ep) f32
        # per-batch energy on the pre-transposed encoder: (CB,Lt,Ep)@(CB,Ep,Sp)
        combined3 = combined.reshape(CB, trg_len, Ep)
        energy = jnp.einsum("ble,bes->bls", cast(combined3), enc_convT,
                            preferred_element_type=f32)          # (CB,Lt,Sp)
        if key_bias is not None:
            energy = energy + key_bias
        energy = energy - jnp.max(energy, axis=-1, keepdims=True)
        e = jnp.exp(energy)
        attention = e * pl.reciprocal(jnp.sum(e, axis=-1, keepdims=True),
                                      approx=True)               # (CB,Lt,Sp)
        attended = jnp.einsum("bls,bse->ble", cast(attention), enc_comb,
                              preferred_element_type=f32)        # (CB,Lt,Ep)
        attended = (jnp.dot(cast(attended.reshape(M, Ep)), attn_e2h_w_ref[...],
                            preferred_element_type=f32)
                    + attn_e2h_b_ref[0])               # (M, Hp)
        conved = (conved + attended) * scale

        # residual
        conv_input = (conved + conv_input) * scale

    if attention is None:                 # n_layers == 0 (reference: None)
        attention = jnp.zeros((CB, trg_len, Sp), f32)

    # hid2emb + fc_out
    conved_e = (jnp.dot(cast(conv_input), hid2emb_w_ref[...],
                        preferred_element_type=f32)
                + hid2emb_b_ref[0])                    # (M, Ep)
    logits = (jnp.dot(cast(conved_e), fc_out_w_ref[...],
                      preferred_element_type=f32)
              + fc_out_b_ref[0])                       # (M, Vp)

    out_ref[...] = logits
    attn_ref[...] = attention.reshape(M, Sp)


# ------------------------------ wrapper --------------------------------------
def text_conv_decoder(trg, encoder_conved, encoder_combined, params, *,
                      n_layers, kernel_size, hid_dim, trg_pad_idx,
                      batch_chunks=1, mm_dtype=jnp.bfloat16):
    bs, trg_len = trg.shape
    _, src_len, emb_dim = encoder_conved.shape
    output_dim = params["fc_out_w"].shape[1]
    K, f32 = kernel_size, jnp.float32

    assert bs % batch_chunks == 0, "batch_chunks must divide the batch size"
    bpc = bs // batch_chunks          # batch elements per grid step
    m_step = bpc * trg_len            # matmul M rows per grid step

    rup = lambda n, m=128: ((n + m - 1) // m) * m
    Ep, Hp, Vp, Sp = rup(emb_dim), rup(hid_dim), rup(output_dim), rup(src_len)

    def pad_to(x, shape):
        return jnp.pad(x, [(0, t - s) for s, t in zip(x.shape, shape)])

    # ---- glue / layout plumbing done once in XLA (outside the hot kernel) ----
    # TODO(synk): embedding gathers stay in XLA — no clean Pallas TPU gather.
    pos = jnp.arange(trg_len)
    embedded = (params["tok_emb"][trg] + params["pos_emb"][pos][None]).astype(f32)
    embedded = pad_to(embedded, (bs, trg_len, Ep)).reshape(bs * trg_len, Ep)

    # encoder tensors: zero-pad (src_len, emb) to lane-dense (Sp, Ep); conved is
    # additionally pre-transposed to (Ep, Sp) so the per-layer energy matmul is
    # a plain contraction with no in-kernel transpose.
    enc_convT = pad_to(encoder_conved.astype(f32),
                       (bs, Sp, Ep)).transpose(0, 2, 1).astype(mm_dtype)
    enc_comb = pad_to(encoder_combined.astype(f32), (bs, Sp, Ep)).astype(mm_dtype)

    # weights: zero-pad channels to 128 lanes; matmul operands in mm_dtype
    # (bf16 on the MXU, f32 accumulation), biases stay f32 (added on the VPU).
    emb2hid_w = pad_to(params["emb2hid_w"], (Ep, Hp)).astype(mm_dtype)
    emb2hid_b = pad_to(params["emb2hid_b"], (1, Hp)).astype(f32)
    attn_h2e_w = pad_to(params["attn_hid2emb_w"], (Hp, Ep)).astype(mm_dtype)
    attn_h2e_b = pad_to(params["attn_hid2emb_b"], (1, Ep)).astype(f32)
    attn_e2h_w = pad_to(params["attn_emb2hid_w"], (Ep, Hp)).astype(mm_dtype)
    attn_e2h_b = pad_to(params["attn_emb2hid_b"], (1, Hp)).astype(f32)
    hid2emb_w = pad_to(params["hid2emb_w"], (Hp, Ep)).astype(mm_dtype)
    hid2emb_b = pad_to(params["hid2emb_b"], (1, Ep)).astype(f32)
    fc_out_w = pad_to(params["fc_out_w"], (Ep, Vp)).astype(mm_dtype)
    fc_out_b = pad_to(params["fc_out_b"], (1, Vp)).astype(f32)

    # conv weights: pad the value / gate halves separately (so the GLU split at
    # lane Hp stays exact), then fuse the K taps along the contraction dim so
    # the kernel does ONE matmul per layer.
    cw = params["conv_w"]                               # (L, K, H, 2H)
    cbias = params["conv_b"]                            # (L, 1, 2H)
    conv_w = jnp.zeros((n_layers, K, Hp, 2 * Hp), f32)
    conv_w = conv_w.at[:, :, :hid_dim, :hid_dim].set(cw[..., :hid_dim])
    conv_w = conv_w.at[:, :, :hid_dim, Hp:Hp + hid_dim].set(cw[..., hid_dim:])
    conv_w = conv_w.reshape(n_layers, K * Hp, 2 * Hp).astype(mm_dtype)
    conv_b = jnp.zeros((n_layers, 1, 2 * Hp), f32)
    conv_b = conv_b.at[:, :, :hid_dim].set(cbias[..., :hid_dim])
    conv_b = conv_b.at[:, :, Hp:Hp + hid_dim].set(cbias[..., hid_dim:])

    kernel = functools.partial(
        decoder_kernel,
        n_layers=n_layers, kernel_size=K, trg_len=trg_len, src_len=src_len,
        pad_val=float(trg_pad_idx), mm_dtype=mm_dtype)

    args = (embedded, enc_convT, enc_comb,
            emb2hid_w, emb2hid_b, conv_w, conv_b,
            attn_h2e_w, attn_h2e_b, attn_e2h_w, attn_e2h_b,
            hid2emb_w, hid2emb_b, fc_out_w, fc_out_b)

    def _run(single_buffer_weights):
        # Loop-invariant weights: constant index_map, so the second pipeline
        # buffer is never used — request a single buffer to halve weight VMEM.
        wkw = dict(pipeline_mode=pl.Buffered(1)) if single_buffer_weights else {}

        def w_spec(shape):
            return pl.BlockSpec(shape, lambda c: (0,) * len(shape), **wkw)

        in_specs = [
            pl.BlockSpec((m_step, Ep), lambda c: (c, 0)),      # embedded
            pl.BlockSpec((bpc, Ep, Sp), lambda c: (c, 0, 0)),  # enc_conved^T
            pl.BlockSpec((bpc, Sp, Ep), lambda c: (c, 0, 0)),  # enc_combined
            w_spec((Ep, Hp)), w_spec((1, Hp)),                 # emb2hid
            w_spec((n_layers, K * Hp, 2 * Hp)),                # conv_w (fused)
            w_spec((n_layers, 1, 2 * Hp)),                     # conv_b
            w_spec((Hp, Ep)), w_spec((1, Ep)),                 # attn_hid2emb
            w_spec((Ep, Hp)), w_spec((1, Hp)),                 # attn_emb2hid
            w_spec((Hp, Ep)), w_spec((1, Ep)),                 # hid2emb
            w_spec((Ep, Vp)), w_spec((1, Vp)),                 # fc_out
        ]
        out_specs = (
            pl.BlockSpec((m_step, Vp), lambda c: (c, 0)),
            pl.BlockSpec((m_step, Sp), lambda c: (c, 0)),
        )
        return pl.pallas_call(
            kernel,
            out_shape=(jax.ShapeDtypeStruct((bs * trg_len, Vp), f32),
                       jax.ShapeDtypeStruct((bs * trg_len, Sp), f32)),
            grid=(batch_chunks,),
            in_specs=in_specs,
            out_specs=out_specs,
            compiler_params=pltpu.CompilerParams(
                dimension_semantics=("parallel",)),            # chunks independent
        )(*args)

    try:
        out, attn = _run(single_buffer_weights=True)
    except Exception:
        # pl.Buffered(1) not supported by this jax build — fall back to the
        # default double-buffered weight specs (costs 2x weight VMEM only).
        out, attn = _run(single_buffer_weights=False)

    # un-fold the batch and slice the lane padding back off (pure XLA view ops)
    out = out.reshape(bs, trg_len, Vp)[:, :, :output_dim]
    attn = attn.reshape(bs, trg_len, Sp)[:, :, :src_len]
    return out, attn


# ------------------------- pure-JAX reference --------------------------------
def reference(trg, encoder_conved, encoder_combined, params, *,
              n_layers, kernel_size, hid_dim, trg_pad_idx):
    scale = 1.0 / 2.0 ** 0.5
    bs, trg_len = trg.shape
    pos = jnp.arange(trg_len)
    embedded = params["tok_emb"][trg] + params["pos_emb"][pos][None]

    conv_input = embedded @ params["emb2hid_w"] + params["emb2hid_b"][0]
    attention = None
    for i in range(n_layers):
        pad = jnp.full((bs, kernel_size - 1, hid_dim), float(trg_pad_idx))
        padded = jnp.concatenate([pad, conv_input], axis=1)   # (bs, Lt+K-1, H)
        acc = jnp.broadcast_to(params["conv_b"][i, 0],
                               (bs, trg_len, 2 * hid_dim))
        for j in range(kernel_size):
            acc = acc + padded[:, j:j + trg_len, :] @ params["conv_w"][i, j]
        conved = acc[..., :hid_dim] * jax.nn.sigmoid(acc[..., hid_dim:])

        conved_emb = conved @ params["attn_hid2emb_w"] + params["attn_hid2emb_b"][0]
        combined = (conved_emb + embedded) * scale
        energy = jnp.einsum("ble,bse->bls", combined, encoder_conved)
        attention = jax.nn.softmax(energy, axis=2)
        attended = jnp.einsum("bls,bse->ble", attention, encoder_combined)
        attended = attended @ params["attn_emb2hid_w"] + params["attn_emb2hid_b"][0]
        conved = (conved + attended) * scale
        conv_input = (conved + conv_input) * scale

    conved_e = conv_input @ params["hid2emb_w"] + params["hid2emb_b"][0]
    output = conved_e @ params["fc_out_w"] + params["fc_out_b"][0]
    return output, attention


# --------------------------------- main ---------------------------------------
if __name__ == "__main__":
    # module hyperparameters (small, consistent with the PyTorch __init__)
    output_dim = 16      # vocab size
    emb_dim = 32
    hid_dim = 32
    n_layers = 2
    kernel_size = 3
    trg_pad_idx = 1
    max_length = 100

    bs, trg_len, src_len = 2, 8, 8

    key = jax.random.PRNGKey(0)
    ks = jax.random.split(key, 20)
    p = 0
    def nxt():
        global p
        k = ks[p]; p += 1
        return k

    init = lambda shape, s=0.1: (s * jax.random.normal(nxt(), shape)).astype(jnp.float32)

    params = {
        "tok_emb": init((output_dim, emb_dim)),
        "pos_emb": init((max_length, emb_dim)),
        "emb2hid_w": init((emb_dim, hid_dim)),        # (in, out)  == torch W.T
        "emb2hid_b": init((1, hid_dim)),
        "hid2emb_w": init((hid_dim, emb_dim)),
        "hid2emb_b": init((1, emb_dim)),
        "attn_hid2emb_w": init((hid_dim, emb_dim)),
        "attn_hid2emb_b": init((1, emb_dim)),
        "attn_emb2hid_w": init((emb_dim, hid_dim)),
        "attn_emb2hid_b": init((1, hid_dim)),
        "fc_out_w": init((emb_dim, output_dim)),
        "fc_out_b": init((1, output_dim)),
        # torch Conv1d weight (2H, H, K) stored here as (n_layers, K, H, 2H)
        "conv_w": init((n_layers, kernel_size, hid_dim, 2 * hid_dim)),
        "conv_b": init((n_layers, 1, 2 * hid_dim)),
    }

    trg = jax.random.randint(nxt(), (bs, trg_len), 0, output_dim, dtype=jnp.int32)
    encoder_conved = init((bs, src_len, emb_dim), s=1.0)
    encoder_combined = init((bs, src_len, emb_dim), s=1.0)

    # batch_chunks=1: full batch fold (single TensorCore v5e/v6e); use 2 on v7x.
    out, attn = text_conv_decoder(
        trg, encoder_conved, encoder_combined, params,
        n_layers=n_layers, kernel_size=kernel_size,
        hid_dim=hid_dim, trg_pad_idx=trg_pad_idx,
        batch_chunks=1, mm_dtype=jnp.bfloat16)
    jax.block_until_ready((out, attn))

    ref_out, ref_attn = reference(
        trg, encoder_conved, encoder_combined, params,
        n_layers=n_layers, kernel_size=kernel_size,
        hid_dim=hid_dim, trg_pad_idx=trg_pad_idx)

    assert out.shape == (bs, trg_len, output_dim)
    assert attn.shape == (bs, trg_len, src_len)
    assert jnp.allclose(out, ref_out, atol=2e-2, rtol=2e-2)
    assert jnp.allclose(attn, ref_attn, atol=2e-2, rtol=2e-2)

    print("KERNEL_OK")
</pallas_src>

<mosaic_0001>
module attributes {stable_mosaic.version = 11 : i64} {
  func.func @decoder_kernel(%arg0: i32, %arg1: memref<16x128xf32, #tpu.memory_space<vmem>>, %arg2: memref<2x128x128xbf16, #tpu.memory_space<vmem>>, %arg3: memref<2x128x128xbf16, #tpu.memory_space<vmem>>, %arg4: memref<128x128xbf16, #tpu.memory_space<vmem>>, %arg5: memref<1x128xf32, #tpu.memory_space<vmem>>, %arg6: memref<2x384x256xbf16, #tpu.memory_space<vmem>>, %arg7: memref<2x1x256xf32, #tpu.memory_space<vmem>>, %arg8: memref<128x128xbf16, #tpu.memory_space<vmem>>, %arg9: memref<1x128xf32, #tpu.memory_space<vmem>>, %arg10: memref<128x128xbf16, #tpu.memory_space<vmem>>, %arg11: memref<1x128xf32, #tpu.memory_space<vmem>>, %arg12: memref<128x128xbf16, #tpu.memory_space<vmem>>, %arg13: memref<1x128xf32, #tpu.memory_space<vmem>>, %arg14: memref<128x128xbf16, #tpu.memory_space<vmem>>, %arg15: memref<1x128xf32, #tpu.memory_space<vmem>>, %arg16: memref<16x128xf32, #tpu.memory_space<vmem>>, %arg17: memref<16x128xf32, #tpu.memory_space<vmem>>) attributes {dimension_semantics = [#tpu.dimension_semantics<parallel>], iteration_bounds = array<i64: 1>, scalar_prefetch = 0 : i64, scratch_operands = 0 : i64, tpu.core_type = #tpu.core_type<tc>, window_params = [{transform_indices = @transform_0, window_bounds = array<i64: 16, 128>}, {transform_indices = @transform_1, window_bounds = array<i64: 2, 128, 128>}, {transform_indices = @transform_2, window_bounds = array<i64: 2, 128, 128>}, {pipeline_mode = #tpu.pipeline_mode<synchronous>, transform_indices = @transform_3, window_bounds = array<i64: 128, 128>}, {pipeline_mode = #tpu.pipeline_mode<synchronous>, transform_indices = @transform_4, window_bounds = array<i64: 1, 128>}, {pipeline_mode = #tpu.pipeline_mode<synchronous>, transform_indices = @transform_5, window_bounds = array<i64: 2, 384, 256>}, {pipeline_mode = #tpu.pipeline_mode<synchronous>, transform_indices = @transform_6, window_bounds = array<i64: 2, 1, 256>}, {pipeline_mode = #tpu.pipeline_mode<synchronous>, transform_indices = @transform_7, window_bounds = array<i64: 128, 128>}, {pipeline_mode = #tpu.pipeline_mode<synchronous>, transform_indices = @transform_8, window_bounds = array<i64: 1, 128>}, {pipeline_mode = #tpu.pipeline_mode<synchronous>, transform_indices = @transform_9, window_bounds = array<i64: 128, 128>}, {pipeline_mode = #tpu.pipeline_mode<synchronous>, transform_indices = @transform_10, window_bounds = array<i64: 1, 128>}, {pipeline_mode = #tpu.pipeline_mode<synchronous>, transform_indices = @transform_11, window_bounds = array<i64: 128, 128>}, {pipeline_mode = #tpu.pipeline_mode<synchronous>, transform_indices = @transform_12, window_bounds = array<i64: 1, 128>}, {pipeline_mode = #tpu.pipeline_mode<synchronous>, transform_indices = @transform_13, window_bounds = array<i64: 128, 128>}, {pipeline_mode = #tpu.pipeline_mode<synchronous>, transform_indices = @transform_14, window_bounds = array<i64: 1, 128>}, {transform_indices = @transform_15, window_bounds = array<i64: 16, 128>}, {transform_indices = @transform_16, window_bounds = array<i64: 16, 128>}]} {
    %c0 = arith.constant 0 : index
    %c0_0 = arith.constant 0 : index
    %0 = vector.load %arg1[%c0, %c0_0] : memref<16x128xf32, #tpu.memory_space<vmem>>, vector<16x128xf32>
    %c0_1 = arith.constant 0 : index
    %c0_2 = arith.constant 0 : index
    %c0_3 = arith.constant 0 : index
    %1 = vector.load %arg2[%c0_1, %c0_2, %c0_3] : memref<2x128x128xbf16, #tpu.memory_space<vmem>>, vector<2x128x128xbf16>
    %c0_4 = arith.constant 0 : index
    %c0_5 = arith.constant 0 : index
    %c0_6 = arith.constant 0 : index
    %2 = vector.load %arg3[%c0_4, %c0_5, %c0_6] : memref<2x128x128xbf16, #tpu.memory_space<vmem>>, vector<2x128x128xbf16>
    %3 = arith.truncf %0 : vector<16x128xf32> to vector<16x128xbf16>
    %c0_7 = arith.constant 0 : index
    %c0_8 = arith.constant 0 : index
    %4 = vector.load %arg4[%c0_7, %c0_8] : memref<128x128xbf16, #tpu.memory_space<vmem>>, vector<128x128xbf16>
    %cst = arith.constant dense<0.000000e+00> : vector<16x128xf32>
    %5 = tpu.matmul %3, %4, %cst {dimension_numbers = #tpu.dot_dimension_numbers<[1], [0], [0], [1], [0, 0, 1, 1], [], []>} : vector<16x128xbf16>, vector<128x128xbf16>, vector<16x128xf32> -> vector<16x128xf32>
    %c0_9 = arith.constant 0 : index
    %c0_10 = arith.constant 0 : index
    %6 = vector.load %arg5[%c0_9, %c0_10] : memref<1x128xf32, #tpu.memory_space<vmem>>, vector<1x128xf32>
    %7 = vector.shape_cast %6 : vector<1x128xf32> to vector<128xf32>
    %8 = vector.shape_cast %7 : vector<128xf32> to vector<1x128xf32>
    %9 = vector.broadcast %8 : vector<1x128xf32> to vector<16x128xf32>
    %10 = arith.addf %5, %9 : vector<16x128xf32>
    %11 = tpu.iota {dimensions = array<i32: 0>} : vector<16x128xi32>
    %c8_i32 = arith.constant 8 : i32
    %c0_i32 = arith.constant 0 : i32
    %12 = arith.cmpi eq, %c8_i32, %c0_i32 : i32
    %c1_i32 = arith.constant 1 : i32
    %13 = arith.select %12, %c1_i32, %c8_i32 : i32
    %14 = vector.broadcast %13 : i32 to vector<16x128xi32>
    %15 = arith.remsi %11, %14 : vector<16x128xi32>
    %c0_i32_11 = arith.constant 0 : i32
    %16 = vector.broadcast %c0_i32_11 : i32 to vector<16x128xi32>
    %17 = arith.cmpi ne, %15, %16 : vector<16x128xi32>
    %c0_i32_12 = arith.constant 0 : i32
    %18 = vector.broadcast %c0_i32_12 : i32 to vector<16x128xi32>
    %19 = arith.cmpi slt, %15, %18 : vector<16x128xi32>
    %c0_i32_13 = arith.constant 0 : i32
    %20 = arith.cmpi slt, %13, %c0_i32_13 : i32
    %21 = vector.broadcast %20 : i1 to vector<16x128xi1>
    %22 = vector.broadcast %21 : vector<16x128xi1> to vector<16x128xi1>
    %23 = arith.xori %19, %22 : vector<16x128xi1>
    %24 = arith.andi %23, %17 : vector<16x128xi1>
    %25 = vector.broadcast %13 : i32 to vector<16x128xi32>
    %26 = arith.addi %15, %25 : vector<16x128xi32>
    %27 = arith.select %24, %26, %15 : vector<16x128xi1>, vector<16x128xi32>
    %c1_i32_14 = arith.constant 1 : i32
    %28 = vector.broadcast %c1_i32_14 : i32 to vector<16x128xi32>
    %29 = arith.cmpi slt, %27, %28 : vector<16x128xi32>
    %c2_i32 = arith.constant 2 : i32
    %30 = vector.broadcast %c2_i32 : i32 to vector<16x128xi32>
    %31 = arith.cmpi slt, %27, %30 : vector<16x128xi32>
    %32 = tpu.iota {dimensions = array<i32: 2>} : vector<1x1x128xi32>
    %c8_i32_15 = arith.constant 8 : i32
    %33 = vector.broadcast %c8_i32_15 : i32 to vector<1x1x128xi32>
    %34 = arith.cmpi slt, %32, %33 : vector<1x1x128xi32>
    %cst_16 = arith.constant 0.000000e+00 : f32
    %cst_17 = arith.constant -1.000000e+30 : f32
    %35 = vector.broadcast %cst_16 : f32 to vector<1x1x128xf32>
    %36 = vector.broadcast %cst_17 : f32 to vector<1x1x128xf32>
    %37 = arith.select %34, %35, %36 : vector<1x1x128xi1>, vector<1x1x128xf32>
    %c2_i32_18 = arith.constant 2 : i32
    %38 = tpu.dynamic_rotate %10 by %c2_i32_18 dim 0 : vector<16x128xf32>, i32 -> vector<16x128xf32>
    %cst_19 = arith.constant 1.000000e+00 : f32
    %39 = vector.broadcast %cst_19 : f32 to vector<16x128xf32>
    %40 = arith.select %31, %39, %38 : vector<16x128xi1>, vector<16x128xf32>
    %41 = arith.truncf %40 : vector<16x128xf32> to vector<16x128xbf16>
    %c1_i32_20 = arith.constant 1 : i32
    %42 = tpu.dynamic_rotate %10 by %c1_i32_20 dim 0 : vector<16x128xf32>, i32 -> vector<16x128xf32>
    %cst_21 = arith.constant 1.000000e+00 : f32
    %43 = vector.broadcast %cst_21 : f32 to vector<16x128xf32>
    %44 = arith.select %29, %43, %42 : vector<16x128xi1>, vector<16x128xf32>
    %45 = arith.truncf %44 : vector<16x128xf32> to vector<16x128xbf16>
    %46 = arith.truncf %10 : vector<16x128xf32> to vector<16x128xbf16>
    %47 = tpu.concatenate %41, %45, %46 in 1 : vector<16x128xbf16>, vector<16x128xbf16>, vector<16x128xbf16> -> vector<16x384xbf16>
    %c0_22 = arith.constant 0 : index
    %c0_23 = arith.constant 0 : index
    %c0_24 = arith.constant 0 : index
    %48 = vector.load %arg6[%c0_22, %c0_23, %c0_24] : memref<2x384x256xbf16, #tpu.memory_space<vmem>>, vector<1x384x256xbf16>
    %49 = vector.shape_cast %48 : vector<1x384x256xbf16> to vector<384x256xbf16>
    %cst_25 = arith.constant dense<0.000000e+00> : vector<16x256xf32>
    %50 = tpu.matmul %47, %49, %cst_25 {dimension_numbers = #tpu.dot_dimension_numbers<[1], [0], [0], [1], [0, 0, 1, 1], [], []>} : vector<16x384xbf16>, vector<384x256xbf16>, vector<16x256xf32> -> vector<16x256xf32>
    %c0_26 = arith.constant 0 : index
    %c0_27 = arith.constant 0 : index
    %c0_28 = arith.constant 0 : index
    %51 = vector.load %arg7[%c0_26, %c0_27, %c0_28] : memref<2x1x256xf32, #tpu.memory_space<vmem>>, vector<1x1x256xf32>
    %52 = vector.shape_cast %51 : vector<1x1x256xf32> to vector<256xf32>
    %53 = vector.shape_cast %52 : vector<256xf32> to vector<1x256xf32>
    %54 = vector.broadcast %53 : vector<1x256xf32> to vector<16x256xf32>
    %55 = arith.addf %50, %54 : vector<16x256xf32>
    %56 = vector.extract_strided_slice %55 {offsets = [0, 0], sizes = [16, 128], strides = [1, 1]} : vector<16x256xf32> to vector<16x128xf32>
    %57 = vector.extract_strided_slice %55 {offsets = [0, 128], sizes = [16, 128], strides = [1, 1]} : vector<16x256xf32> to vector<16x128xf32>
    %58 = arith.negf %57 : vector<16x128xf32>
    %59 = math.exp %58 : vector<16x128xf32>
    %cst_29 = arith.constant 1.000000e+00 : f32
    %60 = vector.broadcast %cst_29 : f32 to vector<16x128xf32>
    %61 = arith.addf %60, %59 : vector<16x128xf32>
    %62 = arith.divf %60, %61 : vector<16x128xf32>
    %63 = arith.mulf %56, %62 : vector<16x128xf32>
    %64 = arith.truncf %63 : vector<16x128xf32> to vector<16x128xbf16>
    %c0_30 = arith.constant 0 : index
    %c0_31 = arith.constant 0 : index
    %65 = vector.load %arg8[%c0_30, %c0_31] : memref<128x128xbf16, #tpu.memory_space<vmem>>, vector<128x128xbf16>
    %cst_32 = arith.constant dense<0.000000e+00> : vector<16x128xf32>
    %66 = tpu.matmul %64, %65, %cst_32 {dimension_numbers = #tpu.dot_dimension_numbers<[1], [0], [0], [1], [0, 0, 1, 1], [], []>} : vector<16x128xbf16>, vector<128x128xbf16>, vector<16x128xf32> -> vector<16x128xf32>
    %c0_33 = arith.constant 0 : index
    %c0_34 = arith.constant 0 : index
    %67 = vector.load %arg9[%c0_33, %c0_34] : memref<1x128xf32, #tpu.memory_space<vmem>>, vector<1x128xf32>
    %68 = vector.shape_cast %67 : vector<1x128xf32> to vector<128xf32>
    %69 = vector.shape_cast %68 : vector<128xf32> to vector<1x128xf32>
    %70 = vector.broadcast %69 : vector<1x128xf32> to vector<16x128xf32>
    %71 = arith.addf %66, %70 : vector<16x128xf32>
    %72 = arith.addf %71, %0 : vector<16x128xf32>
    %cst_35 = arith.constant 0.707106769 : f32
    %73 = vector.broadcast %cst_35 : f32 to vector<16x128xf32>
    %74 = arith.mulf %72, %73 : vector<16x128xf32>
    %75 = vector.shape_cast %74 : vector<16x128xf32> to vector<2x8x128xf32>
    %76 = arith.truncf %75 : vector<2x8x128xf32> to vector<2x8x128xbf16>
    "tpu.trace_start"() <{level = 10 : i32, message = "ble,bes->bls"}> : () -> ()
    %cst_36 = arith.constant dense<0.000000e+00> : vector<2x8x128xf32>
    %77 = tpu.matmul %76, %1, %cst_36 {dimension_numbers = #tpu.dot_dimension_numbers<[2], [1], [1], [2], [0, 0, 0, 1, 1, 2], [0], [0]>} : vector<2x8x128xbf16>, vector<2x128x128xbf16>, vector<2x8x128xf32> -> vector<2x8x128xf32>
    "tpu.trace_stop"() : () -> ()
    %78 = vector.broadcast %37 : vector<1x1x128xf32> to vector<2x8x128xf32>
    %79 = arith.addf %77, %78 : vector<2x8x128xf32>
    %cst_37 = arith.constant dense<0xFF800000> : vector<2x8xf32>
    %80 = vector.multi_reduction <maximumf>, %79, %cst_37 [2] : vector<2x8x128xf32> to vector<2x8xf32>
    %81 = vector.shape_cast %80 : vector<2x8xf32> to vector<2x8x1xf32>
    %82 = vector.broadcast %81 : vector<2x8x1xf32> to vector<2x8x128xf32>
    %83 = arith.subf %79, %82 : vector<2x8x128xf32>
    %84 = math.exp %83 : vector<2x8x128xf32>
    %cst_38 = arith.constant dense<0.000000e+00> : vector<2x8xf32>
    %85 = vector.multi_reduction <add>, %84, %cst_38 [2] : vector<2x8x128xf32> to vector<2x8xf32>
    %86 = vector.shape_cast %85 : vector<2x8xf32> to vector<2x8x1xf32>
    %87 = tpu.reciprocal %86 {approx = true} : vector<2x8x1xf32> -> vector<2x8x1xf32>
    %88 = vector.broadcast %87 : vector<2x8x1xf32> to vector<2x8x128xf32>
    %89 = arith.mulf %84, %88 : vector<2x8x128xf32>
    %90 = arith.truncf %89 : vector<2x8x128xf32> to vector<2x8x128xbf16>
    "tpu.trace_start"() <{level = 10 : i32, message = "bls,bse->ble"}> : () -> ()
    %cst_39 = arith.constant dense<0.000000e+00> : vector<2x8x128xf32>
    %91 = tpu.matmul %90, %2, %cst_39 {dimension_numbers = #tpu.dot_dimension_numbers<[2], [1], [1], [2], [0, 0, 0, 1, 1, 2], [0], [0]>} : vector<2x8x128xbf16>, vector<2x128x128xbf16>, vector<2x8x128xf32> -> vector<2x8x128xf32>
    "tpu.trace_stop"() : () -> ()
    %92 = vector.shape_cast %91 : vector<2x8x128xf32> to vector<16x128xf32>
    %93 = arith.truncf %92 : vector<16x128xf32> to vector<16x128xbf16>
    %c0_40 = arith.constant 0 : index
    %c0_41 = arith.constant 0 : index
    %94 = vector.load %arg10[%c0_40, %c0_41] : memref<128x128xbf16, #tpu.memory_space<vmem>>, vector<128x128xbf16>
    %cst_42 = arith.constant dense<0.000000e+00> : vector<16x128xf32>
    %95 = tpu.matmul %93, %94, %cst_42 {dimension_numbers = #tpu.dot_dimension_numbers<[1], [0], [0], [1], [0, 0, 1, 1], [], []>} : vector<16x128xbf16>, vector<128x128xbf16>, vector<16x128xf32> -> vector<16x128xf32>
    %c0_43 = arith.constant 0 : index
    %c0_44 = arith.constant 0 : index
    %96 = vector.load %arg11[%c0_43, %c0_44] : memref<1x128xf32, #tpu.memory_space<vmem>>, vector<1x128xf32>
    %97 = vector.shape_cast %96 : vector<1x128xf32> to vector<128xf32>
    %98 = vector.shape_cast %97 : vector<128xf32> to vector<1x128xf32>
    %99 = vector.broadcast %98 : vector<1x128xf32> to vector<16x128xf32>
    %100 = arith.addf %95, %99 : vector<16x128xf32>
    %101 = arith.addf %63, %100 : vector<16x128xf32>
    %cst_45 = arith.constant 0.707106769 : f32
    %102 = vector.broadcast %cst_45 : f32 to vector<16x128xf32>
    %103 = arith.mulf %101, %102 : vector<16x128xf32>
    %104 = arith.addf %103, %10 : vector<16x128xf32>
    %cst_46 = arith.constant 0.707106769 : f32
    %105 = vector.broadcast %cst_46 : f32 to vector<16x128xf32>
    %106 = arith.mulf %104, %105 : vector<16x128xf32>
    %c2_i32_47 = arith.constant 2 : i32
    %107 = tpu.dynamic_rotate %106 by %c2_i32_47 dim 0 : vector<16x128xf32>, i32 -> vector<16x128xf32>
    %cst_48 = arith.constant 1.000000e+00 : f32
    %108 = vector.broadcast %cst_48 : f32 to vector<16x128xf32>
    %109 = arith.select %31, %108, %107 : vector<16x128xi1>, vector<16x128xf32>
    %110 = arith.truncf %109 : vector<16x128xf32> to vector<16x128xbf16>
    %c1_i32_49 = arith.constant 1 : i32
    %111 = tpu.dynamic_rotate %106 by %c1_i32_49 dim 0 : vector<16x128xf32>, i32 -> vector<16x128xf32>
    %cst_50 = arith.constant 1.000000e+00 : f32
    %112 = vector.broadcast %cst_50 : f32 to vector<16x128xf32>
    %113 = arith.select %29, %112, %111 : vector<16x128xi1>, vector<16x128xf32>
    %114 = arith.truncf %113 : vector<16x128xf32> to vector<16x128xbf16>
    %115 = arith.truncf %106 : vector<16x128xf32> to vector<16x128xbf16>
    %116 = tpu.concatenate %110, %114, %115 in 1 : vector<16x128xbf16>, vector<16x128xbf16>, vector<16x128xbf16> -> vector<16x384xbf16>
    %c1 = arith.constant 1 : index
    %c0_51 = arith.constant 0 : index
    %c0_52 = arith.constant 0 : index
    %117 = vector.load %arg6[%c1, %c0_51, %c0_52] : memref<2x384x256xbf16, #tpu.memory_space<vmem>>, vector<1x384x256xbf16>
    %118 = vector.shape_cast %117 : vector<1x384x256xbf16> to vector<384x256xbf16>
    %cst_53 = arith.constant dense<0.000000e+00> : vector<16x256xf32>
    %119 = tpu.matmul %116, %118, %cst_53 {dimension_numbers = #tpu.dot_dimension_numbers<[1], [0], [0], [1], [0, 0, 1, 1], [], []>} : vector<16x384xbf16>, vector<384x256xbf16>, vector<16x256xf32> -> vector<16x256xf32>
    %c1_54 = arith.constant 1 : index
    %c0_55 = arith.constant 0 : index
    %c0_56 = arith.constant 0 : index
    %120 = vector.load %arg7[%c1_54, %c0_55, %c0_56] : memref<2x1x256xf32, #tpu.memory_space<vmem>>, vector<1x1x256xf32>
    %121 = vector.shape_cast %120 : vector<1x1x256xf32> to vector<256xf32>
    %122 = vector.shape_cast %121 : vector<256xf32> to vector<1x256xf32>
    %123 = vector.broadcast %122 : vector<1x256xf32> to vector<16x256xf32>
    %124 = arith.addf %119, %123 : vector<16x256xf32>
    %125 = vector.extract_strided_slice %124 {offsets = [0, 0], sizes = [16, 128], strides = [1, 1]} : vector<16x256xf32> to vector<16x128xf32>
    %126 = vector.extract_strided_slice %124 {offsets = [0, 128], sizes = [16, 128], strides = [1, 1]} : vector<16x256xf32> to vector<16x128xf32>
    %127 = arith.negf %126 : vector<16x128xf32>
    %128 = math.exp %127 : vector<16x128xf32>
    %cst_57 = arith.constant 1.000000e+00 : f32
    %129 = vector.broadcast %cst_57 : f32 to vector<16x128xf32>
    %130 = arith.addf %129, %128 : vector<16x128xf32>
    %131 = arith.divf %129, %130 : vector<16x128xf32>
    %132 = arith.mulf %125, %131 : vector<16x128xf32>
    %133 = arith.truncf %132 : vector<16x128xf32> to vector<16x128xbf16>
    %c0_58 = arith.constant 0 : index
    %c0_59 = arith.constant 0 : index
    %134 = vector.load %arg8[%c0_58, %c0_59] : memref<128x128xbf16, #tpu.memory_space<vmem>>, vector<128x128xbf16>
    %cst_60 = arith.constant dense<0.000000e+00> : vector<16x128xf32>
    %135 = tpu.matmul %133, %134, %cst_60 {dimension_numbers = #tpu.dot_dimension_numbers<[1], [0], [0], [1], [0, 0, 1, 1], [], []>} : vector<16x128xbf16>, vector<128x128xbf16>, vector<16x128xf32> -> vector<16x128xf32>
    %c0_61 = arith.constant 0 : index
    %c0_62 = arith.constant 0 : index
    %136 = vector.load %arg9[%c0_61, %c0_62] : memref<1x128xf32, #tpu.memory_space<vmem>>, vector<1x128xf32>
    %137 = vector.shape_cast %136 : vector<1x128xf32> to vector<128xf32>
    %138 = vector.shape_cast %137 : vector<128xf32> to vector<1x128xf32>
    %139 = vector.broadcast %138 : vector<1x128xf32> to vector<16x128xf32>
    %140 = arith.addf %135, %139 : vector<16x128xf32>
    %141 = arith.addf %140, %0 : vector<16x128xf32>
    %cst_63 = arith.constant 0.707106769 : f32
    %142 = vector.broadcast %cst_63 : f32 to vector<16x128xf32>
    %143 = arith.mulf %141, %142 : vector<16x128xf32>
    %144 = vector.shape_cast %143 : vector<16x128xf32> to vector<2x8x128xf32>
    %145 = arith.truncf %144 : vector<2x8x128xf32> to vector<2x8x128xbf16>
    "tpu.trace_start"() <{level = 10 : i32, message = "ble,bes->bls"}> : () -> ()
    %cst_64 = arith.constant dense<0.000000e+00> : vector<2x8x128xf32>
    %146 = tpu.matmul %145, %1, %cst_64 {dimension_numbers = #tpu.dot_dimension_numbers<[2], [1], [1], [2], [0, 0, 0, 1, 1, 2], [0], [0]>} : vector<2x8x128xbf16>, vector<2x128x128xbf16>, vector<2x8x128xf32> -> vector<2x8x128xf32>
    "tpu.trace_stop"() : () -> ()
    %147 = vector.broadcast %37 : vector<1x1x128xf32> to vector<2x8x128xf32>
    %148 = arith.addf %146, %147 : vector<2x8x128xf32>
    %cst_65 = arith.constant dense<0xFF800000> : vector<2x8xf32>
    %149 = vector.multi_reduction <maximumf>, %148, %cst_65 [2] : vector<2x8x128xf32> to vector<2x8xf32>
    %150 = vector.shape_cast %149 : vector<2x8xf32> to vector<2x8x1xf32>
    %151 = vector.broadcast %150 : vector<2x8x1xf32> to vector<2x8x128xf32>
    %152 = arith.subf %148, %151 : vector<2x8x128xf32>
    %153 = math.exp %152 : vector<2x8x128xf32>
    %cst_66 = arith.constant dense<0.000000e+00> : vector<2x8xf32>
    %154 = vector.multi_reduction <add>, %153, %cst_66 [2] : vector<2x8x128xf32> to vector<2x8xf32>
    %155 = vector.shape_cast %154 : vector<2x8xf32> to vector<2x8x1xf32>
    %156 = tpu.reciprocal %155 {approx = true} : vector<2x8x1xf32> -> vector<2x8x1xf32>
    %157 = vector.broadcast %156 : vector<2x8x1xf32> to vector<2x8x128xf32>
    %158 = arith.mulf %153, %157 : vector<2x8x128xf32>
    %159 = arith.truncf %158 : vector<2x8x128xf32> to vector<2x8x128xbf16>
    "tpu.trace_start"() <{level = 10 : i32, message = "bls,bse->ble"}> : () -> ()
    %cst_67 = arith.constant dense<0.000000e+00> : vector<2x8x128xf32>
    %160 = tpu.matmul %159, %2, %cst_67 {dimension_numbers = #tpu.dot_dimension_numbers<[2], [1], [1], [2], [0, 0, 0, 1, 1, 2], [0], [0]>} : vector<2x8x128xbf16>, vector<2x128x128xbf16>, vector<2x8x128xf32> -> vector<2x8x128xf32>
    "tpu.trace_stop"() : () -> ()
    %161 = vector.shape_cast %160 : vector<2x8x128xf32> to vector<16x128xf32>
    %162 = arith.truncf %161 : vector<16x128xf32> to vector<16x128xbf16>
    %c0_68 = arith.constant 0 : index
    %c0_69 = arith.constant 0 : index
    %163 = vector.load %arg10[%c0_68, %c0_69] : memref<128x128xbf16, #tpu.memory_space<vmem>>, vector<128x128xbf16>
    %cst_70 = arith.constant dense<0.000000e+00> : vector<16x128xf32>
    %164 = tpu.matmul %162, %163, %cst_70 {dimension_numbers = #tpu.dot_dimension_numbers<[1], [0], [0], [1], [0, 0, 1, 1], [], []>} : vector<16x128xbf16>, vector<128x128xbf16>, vector<16x128xf32> -> vector<16x128xf32>
    %c0_71 = arith.constant 0 : index
    %c0_72 = arith.constant 0 : index
    %165 = vector.load %arg11[%c0_71, %c0_72] : memref<1x128xf32, #tpu.memory_space<vmem>>, vector<1x128xf32>
    %166 = vector.shape_cast %165 : vector<1x128xf32> to vector<128xf32>
    %167 = vector.shape_cast %166 : vector<128xf32> to vector<1x128xf32>
    %168 = vector.broadcast %167 : vector<1x128xf32> to vector<16x128xf32>
    %169 = arith.addf %164, %168 : vector<16x128xf32>
    %170 = arith.addf %132, %169 : vector<16x128xf32>
    %cst_73 = arith.constant 0.707106769 : f32
    %171 = vector.broadcast %cst_73 : f32 to vector<16x128xf32>
    %172 = arith.mulf %170, %171 : vector<16x128xf32>
    %173 = arith.addf %172, %106 : vector<16x128xf32>
    %cst_74 = arith.constant 0.707106769 : f32
    %174 = vector.broadcast %cst_74 : f32 to vector<16x128xf32>
    %175 = arith.mulf %173, %174 : vector<16x128xf32>
    %176 = arith.truncf %175 : vector<16x128xf32> to vector<16x128xbf16>
    %c0_75 = arith.constant 0 : index
    %c0_76 = arith.constant 0 : index
    %177 = vector.load %arg12[%c0_75, %c0_76] : memref<128x128xbf16, #tpu.memory_space<vmem>>, vector<128x128xbf16>
    %cst_77 = arith.constant dense<0.000000e+00> : vector<16x128xf32>
    %178 = tpu.matmul %176, %177, %cst_77 {dimension_numbers = #tpu.dot_dimension_numbers<[1], [0], [0], [1], [0, 0, 1, 1], [], []>} : vector<16x128xbf16>, vector<128x128xbf16>, vector<16x128xf32> -> vector<16x128xf32>
    %c0_78 = arith.constant 0 : index
    %c0_79 = arith.constant 0 : index
    %179 = vector.load %arg13[%c0_78, %c0_79] : memref<1x128xf32, #tpu.memory_space<vmem>>, vector<1x128xf32>
    %180 = vector.shape_cast %179 : vector<1x128xf32> to vector<128xf32>
    %181 = vector.shape_cast %180 : vector<128xf32> to vector<1x128xf32>
    %182 = vector.broadcast %181 : vector<1x128xf32> to vector<16x128xf32>
    %183 = arith.addf %178, %182 : vector<16x128xf32>
    %184 = arith.truncf %183 : vector<16x128xf32> to vector<16x128xbf16>
    %c0_80 = arith.constant 0 : index
    %c0_81 = arith.constant 0 : index
    %185 = vector.load %arg14[%c0_80, %c0_81] : memref<128x128xbf16, #tpu.memory_space<vmem>>, vector<128x128xbf16>
    %cst_82 = arith.constant dense<0.000000e+00> : vector<16x128xf32>
    %186 = tpu.matmul %184, %185, %cst_82 {dimension_numbers = #tpu.dot_dimension_numbers<[1], [0], [0], [1], [0, 0, 1, 1], [], []>} : vector<16x128xbf16>, vector<128x128xbf16>, vector<16x128xf32> -> vector<16x128xf32>
    %c0_83 = arith.constant 0 : index
    %c0_84 = arith.constant 0 : index
    %187 = vector.load %arg15[%c0_83, %c0_84] : memref<1x128xf32, #tpu.memory_space<vmem>>, vector<1x128xf32>
    %188 = vector.shape_cast %187 : vector<1x128xf32> to vector<128xf32>
    %189 = vector.shape_cast %188 : vector<128xf32> to vector<1x128xf32>
    %190 = vector.broadcast %189 : vector<1x128xf32> to vector<16x128xf32>
    %191 = arith.addf %186, %190 : vector<16x128xf32>
    %c0_85 = arith.constant 0 : index
    %c0_86 = arith.constant 0 : index
    %192 = vector.load %arg16[%c0_85, %c0_86] : memref<16x128xf32, #tpu.memory_space<vmem>>, vector<16x128xf32>
    tpu.vector_store %arg16[%c0_85, %c0_86], %191 {strides = array<i32>} : memref<16x128xf32, #tpu.memory_space<vmem>>, vector<16x128xf32>,
    %193 = vector.shape_cast %158 : vector<2x8x128xf32> to vector<16x128xf32>
    %c0_87 = arith.constant 0 : index
    %c0_88 = arith.constant 0 : index
    %194 = vector.load %arg17[%c0_87, %c0_88] : memref<16x128xf32, #tpu.memory_space<vmem>>, vector<16x128xf32>
    tpu.vector_store %arg17[%c0_87, %c0_88], %193 {strides = array<i32>} : memref<16x128xf32, #tpu.memory_space<vmem>>, vector<16x128xf32>,
    return
  }
  func.func @transform_0(%arg0: i32) -> (i32, i32) {
    %c0_i32 = arith.constant 0 : i32
    %c0_i32_0 = arith.constant 0 : i32
    return %arg0, %c0_i32 : i32, i32
  }
  func.func @transform_1(%arg0: i32) -> (i32, i32, i32) {
    %c0_i32 = arith.constant 0 : i32
    %c0_i32_0 = arith.constant 0 : i32
    %c0_i32_1 = arith.constant 0 : i32
    return %arg0, %c0_i32, %c0_i32_0 : i32, i32, i32
  }
  func.func @transform_2(%arg0: i32) -> (i32, i32, i32) {
    %c0_i32 = arith.constant 0 : i32
    %c0_i32_0 = arith.constant 0 : i32
    %c0_i32_1 = arith.constant 0 : i32
    return %arg0, %c0_i32, %c0_i32_0 : i32, i32, i32
  }
  func.func @transform_3(%arg0: i32) -> (i32, i32) {
    %c0_i32 = arith.constant 0 : i32
    %c0_i32_0 = arith.constant 0 : i32
    %c0_i32_1 = arith.constant 0 : i32
    return %c0_i32, %c0_i32_0 : i32, i32
  }
  func.func @transform_4(%arg0: i32) -> (i32, i32) {
    %c0_i32 = arith.constant 0 : i32
    %c0_i32_0 = arith.constant 0 : i32
    %c0_i32_1 = arith.constant 0 : i32
    return %c0_i32, %c0_i32_0 : i32, i32
  }
  func.func @transform_5(%arg0: i32) -> (i32, i32, i32) {
    %c0_i32 = arith.constant 0 : i32
    %c0_i32_0 = arith.constant 0 : i32
    %c0_i32_1 = arith.constant 0 : i32
    %c0_i32_2 = arith.constant 0 : i32
    return %c0_i32, %c0_i32_0, %c0_i32_1 : i32, i32, i32
  }
  func.func @transform_6(%arg0: i32) -> (i32, i32, i32) {
    %c0_i32 = arith.constant 0 : i32
    %c0_i32_0 = arith.constant 0 : i32
    %c0_i32_1 = arith.constant 0 : i32
    %c0_i32_2 = arith.constant 0 : i32
    return %c0_i32, %c0_i32_0, %c0_i32_1 : i32, i32, i32
  }
  func.func @transform_7(%arg0: i32) -> (i32, i32) {
    %c0_i32 = arith.constant 0 : i32
    %c0_i32_0 = arith.constant 0 : i32
    %c0_i32_1 = arith.constant 0 : i32
    return %c0_i32, %c0_i32_0 : i32, i32
  }
  func.func @transform_8(%arg0: i32) -> (i32, i32) {
    %c0_i32 = arith.constant 0 : i32
    %c0_i32_0 = arith.constant 0 : i32
    %c0_i32_1 = arith.constant 0 : i32
    return %c0_i32, %c0_i32_0 : i32, i32
  }
  func.func @transform_9(%arg0: i32) -> (i32, i32) {
    %c0_i32 = arith.constant 0 : i32
    %c0_i32_0 = arith.constant 0 : i32
    %c0_i32_1 = arith.constant 0 : i32
    return %c0_i32, %c0_i32_0 : i32, i32
  }
  func.func @transform_10(%arg0: i32) -> (i32, i32) {
    %c0_i32 = arith.constant 0 : i32
    %c0_i32_0 = arith.constant 0 : i32
    %c0_i32_1 = arith.constant 0 : i32
    return %c0_i32, %c0_i32_0 : i32, i32
  }
  func.func @transform_11(%arg0: i32) -> (i32, i32) {
    %c0_i32 = arith.constant 0 : i32
    %c0_i32_0 = arith.constant 0 : i32
    %c0_i32_1 = arith.constant 0 : i32
    return %c0_i32, %c0_i32_0 : i32, i32
  }
  func.func @transform_12(%arg0: i32) -> (i32, i32) {
    %c0_i32 = arith.constant 0 : i32
    %c0_i32_0 = arith.constant 0 : i32
    %c0_i32_1 = arith.constant 0 : i32
    return %c0_i32, %c0_i32_0 : i32, i32
  }
  func.func @transform_13(%arg0: i32) -> (i32, i32) {
    %c0_i32 = arith.constant 0 : i32
    %c0_i32_0 = arith.constant 0 : i32
    %c0_i32_1 = arith.constant 0 : i32
    return %c0_i32, %c0_i32_0 : i32, i32
  }
  func.func @transform_14(%arg0: i32) -> (i32, i32) {
    %c0_i32 = arith.constant 0 : i32
    %c0_i32_0 = arith.constant 0 : i32
    %c0_i32_1 = arith.constant 0 : i32
    return %c0_i32, %c0_i32_0 : i32, i32
  }
  func.func @transform_15(%arg0: i32) -> (i32, i32) {
    %c0_i32 = arith.constant 0 : i32
    %c0_i32_0 = arith.constant 0 : i32
    return %arg0, %c0_i32 : i32, i32
  }
  func.func @transform_16(%arg0: i32) -> (i32, i32) {
    %c0_i32 = arith.constant 0 : i32
    %c0_i32_0 = arith.constant 0 : i32
    return %arg0, %c0_i32 : i32, i32
  }
}

module attributes {stable_mosaic.version = 11 : i64} {
  func.func @decoder_kernel(%arg0: i32, %arg1: memref<16x128xf32, #tpu.memory_space<vmem>>, %arg2: memref<2x128x128xbf16, #tpu.memory_space<vmem>>, %arg3: memref<2x128x128xbf16, #tpu.memory_space<vmem>>, %arg4: memref<128x128xbf16, #tpu.memory_space<vmem>>, %arg5: memref<1x128xf32, #tpu.memory_space<vmem>>, %arg6: memref<2x384x256xbf16, #tpu.memory_space<vmem>>, %arg7: memref<2x1x256xf32, #tpu.memory_space<vmem>>, %arg8: memref<128x128xbf16, #tpu.memory_space<vmem>>, %arg9: memref<1x128xf32, #tpu.memory_space<vmem>>, %arg10: memref<128x128xbf16, #tpu.memory_space<vmem>>, %arg11: memref<1x128xf32, #tpu.memory_space<vmem>>, %arg12: memref<128x128xbf16, #tpu.memory_space<vmem>>, %arg13: memref<1x128xf32, #tpu.memory_space<vmem>>, %arg14: memref<128x128xbf16, #tpu.memory_space<vmem>>, %arg15: memref<1x128xf32, #tpu.memory_space<vmem>>, %arg16: memref<16x128xf32, #tpu.memory_space<vmem>>, %arg17: memref<16x128xf32, #tpu.memory_space<vmem>>) attributes {dimension_semantics = [#tpu.dimension_semantics<parallel>], iteration_bounds = array<i64: 1>, scalar_prefetch = 0 : i64, scratch_operands = 0 : i64, tpu.core_type = #tpu.core_type<tc>, window_params = [{transform_indices = @transform_0, window_bounds = array<i64: 16, 128>}, {transform_indices = @transform_1, window_bounds = array<i64: 2, 128, 128>}, {transform_indices = @transform_2, window_bounds = array<i64: 2, 128, 128>}, {pipeline_mode = #tpu.pipeline_mode<synchronous>, transform_indices = @transform_3, window_bounds = array<i64: 128, 128>}, {pipeline_mode = #tpu.pipeline_mode<synchronous>, transform_indices = @transform_4, window_bounds = array<i64: 1, 128>}, {pipeline_mode = #tpu.pipeline_mode<synchronous>, transform_indices = @transform_5, window_bounds = array<i64: 2, 384, 256>}, {pipeline_mode = #tpu.pipeline_mode<synchronous>, transform_indices = @transform_6, window_bounds = array<i64: 2, 1, 256>}, {pipeline_mode = #tpu.pipeline_mode<synchronous>, transform_indices = @transform_7, window_bounds = array<i64: 128, 128>}, {pipeline_mode = #tpu.pipeline_mode<synchronous>, transform_indices = @transform_8, window_bounds = array<i64: 1, 128>}, {pipeline_mode = #tpu.pipeline_mode<synchronous>, transform_indices = @transform_9, window_bounds = array<i64: 128, 128>}, {pipeline_mode = #tpu.pipeline_mode<synchronous>, transform_indices = @transform_10, window_bounds = array<i64: 1, 128>}, {pipeline_mode = #tpu.pipeline_mode<synchronous>, transform_indices = @transform_11, window_bounds = array<i64: 128, 128>}, {pipeline_mode = #tpu.pipeline_mode<synchronous>, transform_indices = @transform_12, window_bounds = array<i64: 1, 128>}, {pipeline_mode = #tpu.pipeline_mode<synchronous>, transform_indices = @transform_13, window_bounds = array<i64: 128, 128>}, {pipeline_mode = #tpu.pipeline_mode<synchronous>, transform_indices = @transform_14, window_bounds = array<i64: 1, 128>}, {transform_indices = @transform_15, window_bounds = array<i64: 16, 128>}, {transform_indices = @transform_16, window_bounds = array<i64: 16, 128>}]} {
    %c0 = arith.constant 0 : index
    %c0_0 = arith.constant 0 : index
    %0 = vector.load %arg1[%c0, %c0_0] : memref<16x128xf32, #tpu.memory_space<vmem>>, vector<16x128xf32>
    %c0_1 = arith.constant 0 : index
    %c0_2 = arith.constant 0 : index
    %c0_3 = arith.constant 0 : index
    %1 = vector.load %arg2[%c0_1, %c0_2, %c0_3] : memref<2x128x128xbf16, #tpu.memory_space<vmem>>, vector<2x128x128xbf16>
    %c0_4 = arith.constant 0 : index
    %c0_5 = arith.constant 0 : index
    %c0_6 = arith.constant 0 : index
    %2 = vector.load %arg3[%c0_4, %c0_5, %c0_6] : memref<2x128x128xbf16, #tpu.memory_space<vmem>>, vector<2x128x128xbf16>
    %3 = arith.truncf %0 : vector<16x128xf32> to vector<16x128xbf16>
    %c0_7 = arith.constant 0 : index
    %c0_8 = arith.constant 0 : index
    %4 = vector.load %arg4[%c0_7, %c0_8] : memref<128x128xbf16, #tpu.memory_space<vmem>>, vector<128x128xbf16>
    %cst = arith.constant dense<0.000000e+00> : vector<16x128xf32>
    %5 = tpu.matmul %3, %4, %cst {dimension_numbers = #tpu.dot_dimension_numbers<[1], [0], [0], [1], [0, 0, 1, 1], [], []>} : vector<16x128xbf16>, vector<128x128xbf16>, vector<16x128xf32> -> vector<16x128xf32>
    %c0_9 = arith.constant 0 : index
    %c0_10 = arith.constant 0 : index
    %6 = vector.load %arg5[%c0_9, %c0_10] : memref<1x128xf32, #tpu.memory_space<vmem>>, vector<1x128xf32>
    %7 = vector.shape_cast %6 : vector<1x128xf32> to vector<128xf32>
    %8 = vector.shape_cast %7 : vector<128xf32> to vector<1x128xf32>
    %9 = vector.broadcast %8 : vector<1x128xf32> to vector<16x128xf32>
    %10 = arith.addf %5, %9 : vector<16x128xf32>
    %11 = tpu.iota {dimensions = array<i32: 0>} : vector<16x128xi32>
    %c8_i32 = arith.constant 8 : i32
    %c0_i32 = arith.constant 0 : i32
    %12 = arith.cmpi eq, %c8_i32, %c0_i32 : i32
    %c1_i32 = arith.constant 1 : i32
    %13 = arith.select %12, %c1_i32, %c8_i32 : i32
    %14 = vector.broadcast %13 : i32 to vector<16x128xi32>
    %15 = arith.remsi %11, %14 : vector<16x128xi32>
    %c0_i32_11 = arith.constant 0 : i32
    %16 = vector.broadcast %c0_i32_11 : i32 to vector<16x128xi32>
    %17 = arith.cmpi ne, %15, %16 : vector<16x128xi32>
    %c0_i32_12 = arith.constant 0 : i32
    %18 = vector.broadcast %c0_i32_12 : i32 to vector<16x128xi32>
    %19 = arith.cmpi slt, %15, %18 : vector<16x128xi32>
    %c0_i32_13 = arith.constant 0 : i32
    %20 = arith.cmpi slt, %13, %c0_i32_13 : i32
    %21 = vector.broadcast %20 : i1 to vector<16x128xi1>
    %22 = vector.broadcast %21 : vector<16x128xi1> to vector<16x128xi1>
    %23 = arith.xori %19, %22 : vector<16x128xi1>
    %24 = arith.andi %23, %17 : vector<16x128xi1>
    %25 = vector.broadcast %13 : i32 to vector<16x128xi32>
    %26 = arith.addi %15, %25 : vector<16x128xi32>
    %27 = arith.select %24, %26, %15 : vector<16x128xi1>, vector<16x128xi32>
    %c1_i32_14 = arith.constant 1 : i32
    %28 = vector.broadcast %c1_i32_14 : i32 to vector<16x128xi32>
    %29 = arith.cmpi slt, %27, %28 : vector<16x128xi32>
    %c2_i32 = arith.constant 2 : i32
    %30 = vector.broadcast %c2_i32 : i32 to vector<16x128xi32>
    %31 = arith.cmpi slt, %27, %30 : vector<16x128xi32>
    %32 = tpu.iota {dimensions = array<i32: 2>} : vector<1x1x128xi32>
    %c8_i32_15 = arith.constant 8 : i32
    %33 = vector.broadcast %c8_i32_15 : i32 to vector<1x1x128xi32>
    %34 = arith.cmpi slt, %32, %33 : vector<1x1x128xi32>
    %cst_16 = arith.constant 0.000000e+00 : f32
    %cst_17 = arith.constant -1.000000e+30 : f32
    %35 = vector.broadcast %cst_16 : f32 to vector<1x1x128xf32>
    %36 = vector.broadcast %cst_17 : f32 to vector<1x1x128xf32>
    %37 = arith.select %34, %35, %36 : vector<1x1x128xi1>, vector<1x1x128xf32>
    %c2_i32_18 = arith.constant 2 : i32
    %38 = tpu.dynamic_rotate %10 by %c2_i32_18 dim 0 : vector<16x128xf32>, i32 -> vector<16x128xf32>
    %cst_19 = arith.constant 1.000000e+00 : f32
    %39 = vector.broadcast %cst_19 : f32 to vector<16x128xf32>
    %40 = arith.select %31, %39, %38 : vector<16x128xi1>, vector<16x128xf32>
    %41 = arith.truncf %40 : vector<16x128xf32> to vector<16x128xbf16>
    %c1_i32_20 = arith.constant 1 : i32
    %42 = tpu.dynamic_rotate %10 by %c1_i32_20 dim 0 : vector<16x128xf32>, i32 -> vector<16x128xf32>
    %cst_21 = arith.constant 1.000000e+00 : f32
    %43 = vector.broadcast %cst_21 : f32 to vector<16x128xf32>
    %44 = arith.select %29, %43, %42 : vector<16x128xi1>, vector<16x128xf32>
    %45 = arith.truncf %44 : vector<16x128xf32> to vector<16x128xbf16>
    %46 = arith.truncf %10 : vector<16x128xf32> to vector<16x128xbf16>
    %47 = tpu.concatenate %41, %45, %46 in 1 : vector<16x128xbf16>, vector<16x128xbf16>, vector<16x128xbf16> -> vector<16x384xbf16>
    %c0_22 = arith.constant 0 : index
    %c0_23 = arith.constant 0 : index
    %c0_24 = arith.constant 0 : index
    %48 = vector.load %arg6[%c0_22, %c0_23, %c0_24] : memref<2x384x256xbf16, #tpu.memory_space<vmem>>, vector<1x384x256xbf16>
    %49 = vector.shape_cast %48 : vector<1x384x256xbf16> to vector<384x256xbf16>
    %cst_25 = arith.constant dense<0.000000e+00> : vector<16x256xf32>
    %50 = tpu.matmul %47, %49, %cst_25 {dimension_numbers = #tpu.dot_dimension_numbers<[1], [0], [0], [1], [0, 0, 1, 1], [], []>} : vector<16x384xbf16>, vector<384x256xbf16>, vector<16x256xf32> -> vector<16x256xf32>
    %c0_26 = arith.constant 0 : index
    %c0_27 = arith.constant 0 : index
    %c0_28 = arith.constant 0 : index
    %51 = vector.load %arg7[%c0_26, %c0_27, %c0_28] : memref<2x1x256xf32, #tpu.memory_space<vmem>>, vector<1x1x256xf32>
    %52 = vector.shape_cast %51 : vector<1x1x256xf32> to vector<256xf32>
    %53 = vector.shape_cast %52 : vector<256xf32> to vector<1x256xf32>
    %54 = vector.broadcast %53 : vector<1x256xf32> to vector<16x256xf32>
    %55 = arith.addf %50, %54 : vector<16x256xf32>
    %56 = vector.extract_strided_slice %55 {offsets = [0, 0], sizes = [16, 128], strides = [1, 1]} : vector<16x256xf32> to vector<16x128xf32>
    %57 = vector.extract_strided_slice %55 {offsets = [0, 128], sizes = [16, 128], strides = [1, 1]} : vector<16x256xf32> to vector<16x128xf32>
    %58 = arith.negf %57 : vector<16x128xf32>
    %59 = math.exp %58 : vector<16x128xf32>
    %cst_29 = arith.constant 1.000000e+00 : f32
    %60 = vector.broadcast %cst_29 : f32 to vector<16x128xf32>
    %61 = arith.addf %60, %59 : vector<16x128xf32>
    %62 = arith.divf %60, %61 : vector<16x128xf32>
    %63 = arith.mulf %56, %62 : vector<16x128xf32>
    %64 = arith.truncf %63 : vector<16x128xf32> to vector<16x128xbf16>
    %c0_30 = arith.constant 0 : index
    %c0_31 = arith.constant 0 : index
    %65 = vector.load %arg8[%c0_30, %c0_31] : memref<128x128xbf16, #tpu.memory_space<vmem>>, vector<128x128xbf16>
    %cst_32 = arith.constant dense<0.000000e+00> : vector<16x128xf32>
    %66 = tpu.matmul %64, %65, %cst_32 {dimension_numbers = #tpu.dot_dimension_numbers<[1], [0], [0], [1], [0, 0, 1, 1], [], []>} : vector<16x128xbf16>, vector<128x128xbf16>, vector<16x128xf32> -> vector<16x128xf32>
    %c0_33 = arith.constant 0 : index
    %c0_34 = arith.constant 0 : index
    %67 = vector.load %arg9[%c0_33, %c0_34] : memref<1x128xf32, #tpu.memory_space<vmem>>, vector<1x128xf32>
    %68 = vector.shape_cast %67 : vector<1x128xf32> to vector<128xf32>
    %69 = vector.shape_cast %68 : vector<128xf32> to vector<1x128xf32>
    %70 = vector.broadcast %69 : vector<1x128xf32> to vector<16x128xf32>
    %71 = arith.addf %66, %70 : vector<16x128xf32>
    %72 = arith.addf %71, %0 : vector<16x128xf32>
    %cst_35 = arith.constant 0.707106769 : f32
    %73 = vector.broadcast %cst_35 : f32 to vector<16x128xf32>
    %74 = arith.mulf %72, %73 : vector<16x128xf32>
    %75 = vector.shape_cast %74 : vector<16x128xf32> to vector<2x8x128xf32>
    %76 = arith.truncf %75 : vector<2x8x128xf32> to vector<2x8x128xbf16>
    "tpu.trace_start"() <{level = 10 : i32, message = "ble,bes->bls"}> : () -> ()
    %cst_36 = arith.constant dense<0.000000e+00> : vector<2x8x128xf32>
    %77 = tpu.matmul %76, %1, %cst_36 {dimension_numbers = #tpu.dot_dimension_numbers<[2], [1], [1], [2], [0, 0, 0, 1, 1, 2], [0], [0]>} : vector<2x8x128xbf16>, vector<2x128x128xbf16>, vector<2x8x128xf32> -> vector<2x8x128xf32>
    "tpu.trace_stop"() : () -> ()
    %78 = vector.broadcast %37 : vector<1x1x128xf32> to vector<2x8x128xf32>
    %79 = arith.addf %77, %78 : vector<2x8x128xf32>
    %cst_37 = arith.constant dense<0xFF800000> : vector<2x8xf32>
    %80 = vector.multi_reduction <maximumf>, %79, %cst_37 [2] : vector<2x8x128xf32> to vector<2x8xf32>
    %81 = vector.shape_cast %80 : vector<2x8xf32> to vector<2x8x1xf32>
    %82 = vector.broadcast %81 : vector<2x8x1xf32> to vector<2x8x128xf32>
    %83 = arith.subf %79, %82 : vector<2x8x128xf32>
    %84 = math.exp %83 : vector<2x8x128xf32>
    %cst_38 = arith.constant dense<0.000000e+00> : vector<2x8xf32>
    %85 = vector.multi_reduction <add>, %84, %cst_38 [2] : vector<2x8x128xf32> to vector<2x8xf32>
    %86 = vector.shape_cast %85 : vector<2x8xf32> to vector<2x8x1xf32>
    %87 = tpu.reciprocal %86 {approx = true} : vector<2x8x1xf32> -> vector<2x8x1xf32>
    %88 = vector.broadcast %87 : vector<2x8x1xf32> to vector<2x8x128xf32>
    %89 = arith.mulf %84, %88 : vector<2x8x128xf32>
    %90 = arith.truncf %89 : vector<2x8x128xf32> to vector<2x8x128xbf16>
    "tpu.trace_start"() <{level = 10 : i32, message = "bls,bse->ble"}> : () -> ()
    %cst_39 = arith.constant dense<0.000000e+00> : vector<2x8x128xf32>
    %91 = tpu.matmul %90, %2, %cst_39 {dimension_numbers = #tpu.dot_dimension_numbers<[2], [1], [1], [2], [0, 0, 0, 1, 1, 2], [0], [0]>} : vector<2x8x128xbf16>, vector<2x128x128xbf16>, vector<2x8x128xf32> -> vector<2x8x128xf32>
    "tpu.trace_stop"() : () -> ()
    %92 = vector.shape_cast %91 : vector<2x8x128xf32> to vector<16x128xf32>
    %93 = arith.truncf %92 : vector<16x128xf32> to vector<16x128xbf16>
    %c0_40 = arith.constant 0 : index
    %c0_41 = arith.constant 0 : index
    %94 = vector.load %arg10[%c0_40, %c0_41] : memref<128x128xbf16, #tpu.memory_space<vmem>>, vector<128x128xbf16>
    %cst_42 = arith.constant dense<0.000000e+00> : vector<16x128xf32>
    %95 = tpu.matmul %93, %94, %cst_42 {dimension_numbers = #tpu.dot_dimension_numbers<[1], [0], [0], [1], [0, 0, 1, 1], [], []>} : vector<16x128xbf16>, vector<128x128xbf16>, vector<16x128xf32> -> vector<16x128xf32>
    %c0_43 = arith.constant 0 : index
    %c0_44 = arith.constant 0 : index
    %96 = vector.load %arg11[%c0_43, %c0_44] : memref<1x128xf32, #tpu.memory_space<vmem>>, vector<1x128xf32>
    %97 = vector.shape_cast %96 : vector<1x128xf32> to vector<128xf32>
    %98 = vector.shape_cast %97 : vector<128xf32> to vector<1x128xf32>
    %99 = vector.broadcast %98 : vector<1x128xf32> to vector<16x128xf32>
    %100 = arith.addf %95, %99 : vector<16x128xf32>
    %101 = arith.addf %63, %100 : vector<16x128xf32>
    %cst_45 = arith.constant 0.707106769 : f32
    %102 = vector.broadcast %cst_45 : f32 to vector<16x128xf32>
    %103 = arith.mulf %101, %102 : vector<16x128xf32>
    %104 = arith.addf %103, %10 : vector<16x128xf32>
    %cst_46 = arith.constant 0.707106769 : f32
    %105 = vector.broadcast %cst_46 : f32 to vector<16x128xf32>
    %106 = arith.mulf %104, %105 : vector<16x128xf32>
    %c2_i32_47 = arith.constant 2 : i32
    %107 = tpu.dynamic_rotate %106 by %c2_i32_47 dim 0 : vector<16x128xf32>, i32 -> vector<16x128xf32>
    %cst_48 = arith.constant 1.000000e+00 : f32
    %108 = vector.broadcast %cst_48 : f32 to vector<16x128xf32>
    %109 = arith.select %31, %108, %107 : vector<16x128xi1>, vector<16x128xf32>
    %110 = arith.truncf %109 : vector<16x128xf32> to vector<16x128xbf16>
    %c1_i32_49 = arith.constant 1 : i32
    %111 = tpu.dynamic_rotate %106 by %c1_i32_49 dim 0 : vector<16x128xf32>, i32 -> vector<16x128xf32>
    %cst_50 = arith.constant 1.000000e+00 : f32
    %112 = vector.broadcast %cst_50 : f32 to vector<16x128xf32>
    %113 = arith.select %29, %112, %111 : vector<16x128xi1>, vector<16x128xf32>
    %114 = arith.truncf %113 : vector<16x128xf32> to vector<16x128xbf16>
    %115 = arith.truncf %106 : vector<16x128xf32> to vector<16x128xbf16>
    %116 = tpu.concatenate %110, %114, %115 in 1 : vector<16x128xbf16>, vector<16x128xbf16>, vector<16x128xbf16> -> vector<16x384xbf16>
    %c1 = arith.constant 1 : index
    %c0_51 = arith.constant 0 : index
    %c0_52 = arith.constant 0 : index
    %117 = vector.load %arg6[%c1, %c0_51, %c0_52] : memref<2x384x256xbf16, #tpu.memory_space<vmem>>, vector<1x384x256xbf16>
    %118 = vector.shape_cast %117 : vector<1x384x256xbf16> to vector<384x256xbf16>
    %cst_53 = arith.constant dense<0.000000e+00> : vector<16x256xf32>
    %119 = tpu.matmul %116, %118, %cst_53 {dimension_numbers = #tpu.dot_dimension_numbers<[1], [0], [0], [1], [0, 0, 1, 1], [], []>} : vector<16x384xbf16>, vector<384x256xbf16>, vector<16x256xf32> -> vector<16x256xf32>
    %c1_54 = arith.constant 1 : index
    %c0_55 = arith.constant 0 : index
    %c0_56 = arith.constant 0 : index
    %120 = vector.load %arg7[%c1_54, %c0_55, %c0_56] : memref<2x1x256xf32, #tpu.memory_space<vmem>>, vector<1x1x256xf32>
    %121 = vector.shape_cast %120 : vector<1x1x256xf32> to vector<256xf32>
    %122 = vector.shape_cast %121 : vector<256xf32> to vector<1x256xf32>
    %123 = vector.broadcast %122 : vector<1x256xf32> to vector<16x256xf32>
    %124 = arith.addf %119, %123 : vector<16x256xf32>
    %125 = vector.extract_strided_slice %124 {offsets = [0, 0], sizes = [16, 128], strides = [1, 1]} : vector<16x256xf32> to vector<16x128xf32>
    %126 = vector.extract_strided_slice %124 {offsets = [0, 128], sizes = [16, 128], strides = [1, 1]} : vector<16x256xf32> to vector<16x128xf32>
    %127 = arith.negf %126 : vector<16x128xf32>
    %128 = math.exp %127 : vector<16x128xf32>
    %cst_57 = arith.constant 1.000000e+00 : f32
    %129 = vector.broadcast %cst_57 : f32 to vector<16x128xf32>
    %130 = arith.addf %129, %128 : vector<16x128xf32>
    %131 = arith.divf %129, %130 : vector<16x128xf32>
    %132 = arith.mulf %125, %131 : vector<16x128xf32>
    %133 = arith.truncf %132 : vector<16x128xf32> to vector<16x128xbf16>
    %c0_58 = arith.constant 0 : index
    %c0_59 = arith.constant 0 : index
    %134 = vector.load %arg8[%c0_58, %c0_59] : memref<128x128xbf16, #tpu.memory_space<vmem>>, vector<128x128xbf16>
    %cst_60 = arith.constant dense<0.000000e+00> : vector<16x128xf32>
    %135 = tpu.matmul %133, %134, %cst_60 {dimension_numbers = #tpu.dot_dimension_numbers<[1], [0], [0], [1], [0, 0, 1, 1], [], []>} : vector<16x128xbf16>, vector<128x128xbf16>, vector<16x128xf32> -> vector<16x128xf32>
    %c0_61 = arith.constant 0 : index
    %c0_62 = arith.constant 0 : index
    %136 = vector.load %arg9[%c0_61, %c0_62] : memref<1x128xf32, #tpu.memory_space<vmem>>, vector<1x128xf32>
    %137 = vector.shape_cast %136 : vector<1x128xf32> to vector<128xf32>
    %138 = vector.shape_cast %137 : vector<128xf32> to vector<1x128xf32>
    %139 = vector.broadcast %138 : vector<1x128xf32> to vector<16x128xf32>
    %140 = arith.addf %135, %139 : vector<16x128xf32>
    %141 = arith.addf %140, %0 : vector<16x128xf32>
    %cst_63 = arith.constant 0.707106769 : f32
    %142 = vector.broadcast %cst_63 : f32 to vector<16x128xf32>
    %143 = arith.mulf %141, %142 : vector<16x128xf32>
    %144 = vector.shape_cast %143 : vector<16x128xf32> to vector<2x8x128xf32>
    %145 = arith.truncf %144 : vector<2x8x128xf32> to vector<2x8x128xbf16>
    "tpu.trace_start"() <{level = 10 : i32, message = "ble,bes->bls"}> : () -> ()
    %cst_64 = arith.constant dense<0.000000e+00> : vector<2x8x128xf32>
    %146 = tpu.matmul %145, %1, %cst_64 {dimension_numbers = #tpu.dot_dimension_numbers<[2], [1], [1], [2], [0, 0, 0, 1, 1, 2], [0], [0]>} : vector<2x8x128xbf16>, vector<2x128x128xbf16>, vector<2x8x128xf32> -> vector<2x8x128xf32>
    "tpu.trace_stop"() : () -> ()
    %147 = vector.broadcast %37 : vector<1x1x128xf32> to vector<2x8x128xf32>
    %148 = arith.addf %146, %147 : vector<2x8x128xf32>
    %cst_65 = arith.constant dense<0xFF800000> : vector<2x8xf32>
    %149 = vector.multi_reduction <maximumf>, %148, %cst_65 [2] : vector<2x8x128xf32> to vector<2x8xf32>
    %150 = vector.shape_cast %149 : vector<2x8xf32> to vector<2x8x1xf32>
    %151 = vector.broadcast %150 : vector<2x8x1xf32> to vector<2x8x128xf32>
    %152 = arith.subf %148, %151 : vector<2x8x128xf32>
    %153 = math.exp %152 : vector<2x8x128xf32>
    %cst_66 = arith.constant dense<0.000000e+00> : vector<2x8xf32>
    %154 = vector.multi_reduction <add>, %153, %cst_66 [2] : vector<2x8x128xf32> to vector<2x8xf32>
    %155 = vector.shape_cast %154 : vector<2x8xf32> to vector<2x8x1xf32>
    %156 = tpu.reciprocal %155 {approx = true} : vector<2x8x1xf32> -> vector<2x8x1xf32>
    %157 = vector.broadcast %156 : vector<2x8x1xf32> to vector<2x8x128xf32>
    %158 = arith.mulf %153, %157 : vector<2x8x128xf32>
    %159 = arith.truncf %158 : vector<2x8x128xf32> to vector<2x8x128xbf16>
    "tpu.trace_start"() <{level = 10 : i32, message = "bls,bse->ble"}> : () -> ()
    %cst_67 = arith.constant dense<0.000000e+00> : vector<2x8x128xf32>
    %160 = tpu.matmul %159, %2, %cst_67 {dimension_numbers = #tpu.dot_dimension_numbers<[2], [1], [1], [2], [0, 0, 0, 1, 1, 2], [0], [0]>} : vector<2x8x128xbf16>, vector<2x128x128xbf16>, vector<2x8x128xf32> -> vector<2x8x128xf32>
    "tpu.trace_stop"() : () -> ()
    %161 = vector.shape_cast %160 : vector<2x8x128xf32> to vector<16x128xf32>
    %162 = arith.truncf %161 : vector<16x128xf32> to vector<16x128xbf16>
    %c0_68 = arith.constant 0 : index
    %c0_69 = arith.constant 0 : index
    %163 = vector.load %arg10[%c0_68, %c0_69] : memref<128x128xbf16, #tpu.memory_space<vmem>>, vector<128x128xbf16>
    %cst_70 = arith.constant dense<0.000000e+00> : vector<16x128xf32>
    %164 = tpu.matmul %162, %163, %cst_70 {dimension_numbers = #tpu.dot_dimension_numbers<[1], [0], [0], [1], [0, 0, 1, 1], [], []>} : vector<16x128xbf16>, vector<128x128xbf16>, vector<16x128xf32> -> vector<16x128xf32>
    %c0_71 = arith.constant 0 : index
    %c0_72 = arith.constant 0 : index
    %165 = vector.load %arg11[%c0_71, %c0_72] : memref<1x128xf32, #tpu.memory_space<vmem>>, vector<1x128xf32>
    %166 = vector.shape_cast %165 : vector<1x128xf32> to vector<128xf32>
    %167 = vector.shape_cast %166 : vector<128xf32> to vector<1x128xf32>
    %168 = vector.broadcast %167 : vector<1x128xf32> to vector<16x128xf32>
    %169 = arith.addf %164, %168 : vector<16x128xf32>
    %170 = arith.addf %132, %169 : vector<16x128xf32>
    %cst_73 = arith.constant 0.707106769 : f32
    %171 = vector.broadcast %cst_73 : f32 to vector<16x128xf32>
    %172 = arith.mulf %170, %171 : vector<16x128xf32>
    %173 = arith.addf %172, %106 : vector<16x128xf32>
    %cst_74 = arith.constant 0.707106769 : f32
    %174 = vector.broadcast %cst_74 : f32 to vector<16x128xf32>
    %175 = arith.mulf %173, %174 : vector<16x128xf32>
    %176 = arith.truncf %175 : vector<16x128xf32> to vector<16x128xbf16>
    %c0_75 = arith.constant 0 : index
    %c0_76 = arith.constant 0 : index
    %177 = vector.load %arg12[%c0_75, %c0_76] : memref<128x128xbf16, #tpu.memory_space<vmem>>, vector<128x128xbf16>
    %cst_77 = arith.constant dense<0.000000e+00> : vector<16x128xf32>
    %178 = tpu.matmul %176, %177, %cst_77 {dimension_numbers = #tpu.dot_dimension_numbers<[1], [0], [0], [1], [0, 0, 1, 1], [], []>} : vector<16x128xbf16>, vector<128x128xbf16>, vector<16x128xf32> -> vector<16x128xf32>
    %c0_78 = arith.constant 0 : index
    %c0_79 = arith.constant 0 : index
    %179 = vector.load %arg13[%c0_78, %c0_79] : memref<1x128xf32, #tpu.memory_space<vmem>>, vector<1x128xf32>
    %180 = vector.shape_cast %179 : vector<1x128xf32> to vector<128xf32>
    %181 = vector.shape_cast %180 : vector<128xf32> to vector<1x128xf32>
    %182 = vector.broadcast %181 : vector<1x128xf32> to vector<16x128xf32>
    %183 = arith.addf %178, %182 : vector<16x128xf32>
    %184 = arith.truncf %183 : vector<16x128xf32> to vector<16x128xbf16>
    %c0_80 = arith.constant 0 : index
    %c0_81 = arith.constant 0 : index
    %185 = vector.load %arg14[%c0_80, %c0_81] : memref<128x128xbf16, #tpu.memory_space<vmem>>, vector<128x128xbf16>
    %cst_82 = arith.constant dense<0.000000e+00> : vector<16x128xf32>
    %186 = tpu.matmul %184, %185, %cst_82 {dimension_numbers = #tpu.dot_dimension_numbers<[1], [0], [0], [1], [0, 0, 1, 1], [], []>} : vector<16x128xbf16>, vector<128x128xbf16>, vector<16x128xf32> -> vector<16x128xf32>
    %c0_83 = arith.constant 0 : index
    %c0_84 = arith.constant 0 : index
    %187 = vector.load %arg15[%c0_83, %c0_84] : memref<1x128xf32, #tpu.memory_space<vmem>>, vector<1x128xf32>
    %188 = vector.shape_cast %187 : vector<1x128xf32> to vector<128xf32>
    %189 = vector.shape_cast %188 : vector<128xf32> to vector<1x128xf32>
    %190 = vector.broadcast %189 : vector<1x128xf32> to vector<16x128xf32>
    %191 = arith.addf %186, %190 : vector<16x128xf32>
    %c0_85 = arith.constant 0 : index
    %c0_86 = arith.constant 0 : index
    %192 = vector.load %arg16[%c0_85, %c0_86] : memref<16x128xf32, #tpu.memory_space<vmem>>, vector<16x128xf32>
    tpu.vector_store %arg16[%c0_85, %c0_86], %191 {strides = array<i32>} : memref<16x128xf32, #tpu.memory_space<vmem>>, vector<16x128xf32>,
    %193 = vector.shape_cast %158 : vector<2x8x128xf32> to vector<16x128xf32>
    %c0_87 = arith.constant 0 : index
    %c0_88 = arith.constant 0 : index
    %194 = vector.load %arg17[%c0_87, %c0_88] : memref<16x128xf32, #tpu.memory_space<vmem>>, vector<16x128xf32>
    tpu.vector_store %arg17[%c0_87, %c0_88], %193 {strides = array<i32>} : memref<16x128xf32, #tpu.memory_space<vmem>>, vector<16x128xf32>,
    return
  }
  func.func @transform_0(%arg0: i32) -> (i32, i32) {
    %c0_i32 = arith.constant 0 : i32
    %c0_i32_0 = arith.constant 0 : i32
    return %arg0, %c0_i32 : i32, i32
  }
  func.func @transform_1(%arg0: i32) -> (i32, i32, i32) {
    %c0_i32 = arith.constant 0 : i32
    %c0_i32_0 = arith.constant 0 : i32
    %c0_i32_1 = arith.constant 0 : i32
    return %arg0, %c0_i32, %c0_i32_0 : i32, i32, i32
  }
  func.func @transform_2(%arg0: i32) -> (i32, i32, i32) {
    %c0_i32 = arith.constant 0 : i32
    %c0_i32_0 = arith.constant 0 : i32
    %c0_i32_1 = arith.constant 0 : i32
    return %arg0, %c0_i32, %c0_i32_0 : i32, i32, i32
  }
  func.func @transform_3(%arg0: i32) -> (i32, i32) {
    %c0_i32 = arith.constant 0 : i32
    %c0_i32_0 = arith.constant 0 : i32
    %c0_i32_1 = arith.constant 0 : i32
    return %c0_i32, %c0_i32_0 : i32, i32
  }
  func.func @transform_4(%arg0: i32) -> (i32, i32) {
    %c0_i32 = arith.constant 0 : i32
    %c0_i32_0 = arith.constant 0 : i32
    %c0_i32_1 = arith.constant 0 : i32
    return %c0_i32, %c0_i32_0 : i32, i32
  }
  func.func @transform_5(%arg0: i32) -> (i32, i32, i32) {
    %c0_i32 = arith.constant 0 : i32
    %c0_i32_0 = arith.constant 0 : i32
    %c0_i32_1 = arith.constant 0 : i32
    %c0_i32_2 = arith.constant 0 : i32
    return %c0_i32, %c0_i32_0, %c0_i32_1 : i32, i32, i32
  }
  func.func @transform_6(%arg0: i32) -> (i32, i32, i32) {
    %c0_i32 = arith.constant 0 : i32
    %c0_i32_0 = arith.constant 0 : i32
    %c0_i32_1 = arith.constant 0 : i32
    %c0_i32_2 = arith.constant 0 : i32
    return %c0_i32, %c0_i32_0, %c0_i32_1 : i32, i32, i32
  }
  func.func @transform_7(%arg0: i32) -> (i32, i32) {
    %c0_i32 = arith.constant 0 : i32
    %c0_i32_0 = arith.constant 0 : i32
    %c0_i32_1 = arith.constant 0 : i32
    return %c0_i32, %c0_i32_0 : i32, i32
  }
  func.func @transform_8(%arg0: i32) -> (i32, i32) {
    %c0_i32 = arith.constant 0 : i32
    %c0_i32_0 = arith.constant 0 : i32
    %c0_i32_1 = arith.constant 0 : i32
    return %c0_i32, %c0_i32_0 : i32, i32
  }
  func.func @transform_9(%arg0: i32) -> (i32, i32) {
    %c0_i32 = arith.constant 0 : i32
    %c0_i32_0 = arith.constant 0 : i32
    %c0_i32_1 = arith.constant 0 : i32
    return %c0_i32, %c0_i32_0 : i32, i32
  }
  func.func @transform_10(%arg0: i32) -> (i32, i32) {
    %c0_i32 = arith.constant 0 : i32
    %c0_i32_0 = arith.constant 0 : i32
    %c0_i32_1 = arith.constant 0 : i32
    return %c0_i32, %c0_i32_0 : i32, i32
  }
  func.func @transform_11(%arg0: i32) -> (i32, i32) {
    %c0_i32 = arith.constant 0 : i32
    %c0_i32_0 = arith.constant 0 : i32
    %c0_i32_1 = arith.constant 0 : i32
    return %c0_i32, %c0_i32_0 : i32, i32
  }
  func.func @transform_12(%arg0: i32) -> (i32, i32) {
    %c0_i32 = arith.constant 0 : i32
    %c0_i32_0 = arith.constant 0 : i32
    %c0_i32_1 = arith.constant 0 : i32
    return %c0_i32, %c0_i32_0 : i32, i32
  }
  func.func @transform_13(%arg0: i32) -> (i32, i32) {
    %c0_i32 = arith.constant 0 : i32
    %c0_i32_0 = arith.constant 0 : i32
    %c0_i32_1 = arith.constant 0 : i32
    return %c0_i32, %c0_i32_0 : i32, i32
  }
  func.func @transform_14(%arg0: i32) -> (i32, i32) {
    %c0_i32 = arith.constant 0 : i32
    %c0_i32_0 = arith.constant 0 : i32
    %c0_i32_1 = arith.constant 0 : i32
    return %c0_i32, %c0_i32_0 : i32, i32
  }
  func.func @transform_15(%arg0: i32) -> (i32, i32) {
    %c0_i32 = arith.constant 0 : i32
    %c0_i32_0 = arith.constant 0 : i32
    return %arg0, %c0_i32 : i32, i32
  }
  func.func @transform_16(%arg0: i32) -> (i32, i32) {
    %c0_i32 = arith.constant 0 : i32
    %c0_i32_0 = arith.constant 0 : i32
    return %arg0, %c0_i32 : i32, i32
  }
}

</mosaic_0001>

<bundles_post_ra>
// kernel: tpu_custom_call.1
= control target key start
LH: loop header
LB: loop body
LE: loop exit
PB: predicated region body
PF: predicated region fallthrough
CT: control target
= control target key end

     0   :  { %s4414_s0 = inlined_call_operand.hbm [shape: f32[16,128], index: 0, kind: input, shape index: {}]   ;;  %s4415_s1 = inlined_call_operand.hbm [shape: bf16[2,128,128], index: 1, kind: input, shape index: {}]   ;;  %s4416_s2 = inlined_call_operand.hbm [shape: bf16[2,128,128], index: 2, kind: input, shape index: {}]   ;;  %s4417_s3 = inlined_call_operand.hbm [shape: bf16[128,128], index: 3, kind: input, shape index: {}]   ;;  %s4418_s4 = inlined_call_operand.vmem [shape: f32[1,128], index: 4, kind: input, shape index: {}]   ;;  %s4419_s5 = inlined_call_operand.hbm [shape: bf16[2,384,256], index: 5, kind: input, shape index: {}]   ;;  %s4420_s6 = inlined_call_operand.vmem [shape: f32[2,1,256], index: 6, kind: input, shape index: {}]   ;;  %s4421_s7 = inlined_call_operand.hbm [shape: bf16[128,128], index: 7, kind: input, shape index: {}]   ;;  %s4422_s8 = inlined_call_operand.vmem [shape: f32[1,128], index: 8, kind: input, shape index: {}]   ;;  %s4423_s9 = inlined_call_operand.hbm [shape: bf16[128,128], index: 9, kind: input, shape index: {}]   ;;  %s4424_s10 = inlined_call_operand.vmem [shape: f32[1,128], index: 10, kind: input, shape index: {}]   ;;  %s4425_s11 = inlined_call_operand.hbm [shape: bf16[128,128], index: 11, kind: input, shape index: {}]   ;;  %s4426_s12 = inlined_call_operand.vmem [shape: f32[1,128], index: 12, kind: input, shape index: {}]   ;;  %s4427_s13 = inlined_call_operand.hbm [shape: bf16[128,128], index: 13, kind: input, shape index: {}]   ;;  %s4428_s14 = inlined_call_operand.vmem [shape: f32[1,128], index: 14, kind: input, shape index: {}]   ;;  %s4429_s15 = inlined_call_operand.hbm [shape: f32[16,128], index: 15, kind: output, shape index: {0}]   ;;  %s4430_s16 = inlined_call_operand.hbm [shape: f32[16,128], index: 16, kind: output, shape index: {1}]  }
   0x1   :  { %4433 = sst [smem:[#allocation27_spill]] %s4414_s0 }
   0x2   :  { %4434 = sst [smem:[#allocation28_spill]] %s4429_s15 }
   0x3   :  { %22 = vsyncpa [#allocation3], 0 }
   0x4   :  { %23 = vsyncpa [#allocation6], 0 }
   0x5   :  { %24 = vsyncpa [#allocation9], 0 }
   0x6   :  { %25 = vsyncpa [#allocation12], 0 }
   0x7   :  { %26 = vsyncpa [#allocation15], 0 }
   0x8   :  { %27 = vsyncpa [#allocation4], 0 }
   0x9   :  { %28 = vsyncpa [#allocation19], 0  ;;  %s3712_s21 = smov [#allocation5]   ;;  %s3456_s25 = scalar_lea.hbm %s4415_s1, 2048 }
   0xa   :  { %s46_s22 = sshll.u32 %s3712_s21, 4  ;;  %p3457_p0 = scmp.ne.s32.totalorder %s4415_s1, %s3456_s25  ;;  %s47_s22 = int_to_ptr.vmem [resolvable:$true] %s46_s22 }
   0xb   :  { %p3460_p1 = scmp.lt.u32.totalorder %s3456_s25, %s4415_s1 }
   0xd   :  { %p3462_p2 = pnand %p3460_p1, %p3457_p0 }
   0xf   :  { %3465 = shalt.err (!%p3462_p2)
}
  0x10   :  { %s3466_s30 = scalar_lea.vmem %s47_s22, 2048  ;;  %p3471_p4 = scmp.lt.s32.totalorder %s47_s22, %s47_s22 }
  0x11   :  { %p3467_p3 = scmp.ne.s32.totalorder %s47_s22, %s3466_s30  ;;  %p3472_p5 = scmp.lt.s32.totalorder %s3466_s30, %s3466_s30 }
  0x13   :  { %p3473_p6 = por %p3472_p5, %p3471_p4 }
  0x15   :  { %p3474_p7 = pnand %p3473_p6, %p3467_p3 }
  0x17   :  { %3477 = shalt.err (!%p3474_p7)
}
  0x18   :  { %s3713_s0 = smov 64   ;;  %s3714_s17 = smov 4  }
  0x19   :  { %52 = dma.hbm_to_vmem [thread:$0]  %s4415_s1, 2048, %s47_s22, [#allocation6], %s3713_s0, %s3713_s0, %s3714_s17  }
  0x1a   :  { %s3715_s20 = smov [#allocation8]   ;;  %s3716_s23 = smov [#allocation11]  }
  0x1b   :  { %s70_s21 = sshll.u32 %s3715_s20, 4  ;;  %s98_s24 = sshll.u32 %s3716_s23, 4  ;;  %s71_s21 = int_to_ptr.vmem [resolvable:$true] %s70_s21  ;;  %s99_s24 = int_to_ptr.vmem [resolvable:$true] %s98_s24 }
  0x1c   :  { %s3478_s27 = scalar_lea.hbm %s4417_s3, 1024 }
  0x1d   :  { %p3479_p8 = scmp.ne.s32.totalorder %s4417_s3, %s3478_s27  ;;  %p3482_p9 = scmp.lt.u32.totalorder %s3478_s27, %s4417_s3 }
  0x1f   :  { %p3484_p10 = pnand %p3482_p9, %p3479_p8 }
  0x21   :  { %3487 = shalt.err (!%p3484_p10)
}
  0x22   :  { %s3488_s1 = scalar_lea.vmem %s71_s21, 1024  ;;  %p3493_p12 = scmp.lt.s32.totalorder %s71_s21, %s71_s21 }
  0x23   :  { %p3489_p11 = scmp.ne.s32.totalorder %s71_s21, %s3488_s1  ;;  %p3494_p13 = scmp.lt.s32.totalorder %s3488_s1, %s3488_s1 }
  0x25   :  { %p3495_p0 = por %p3494_p13, %p3493_p12 }
  0x27   :  { %p3496_p1 = pnand %p3495_p0, %p3489_p11 }
  0x29   :  { %3499 = shalt.err (!%p3496_p1)
}
  0x2a   :  { %76 = dma.hbm_to_vmem [thread:$0]  %s4417_s3, 1024, %s71_s21, [#allocation9], %s3713_s0, %s3713_s0, %s3714_s17  }
  0x2b   :  { %s3500_s20 = scalar_lea.hbm %s4421_s7, 1024 }
  0x2c   :  { %p3501_p2 = scmp.ne.s32.totalorder %s4421_s7, %s3500_s20  ;;  %p3504_p3 = scmp.lt.u32.totalorder %s3500_s20, %s4421_s7 }
  0x2e   :  { %p3506_p4 = pnand %p3504_p3, %p3501_p2 }
  0x30   :  { %3509 = shalt.err (!%p3506_p4)
}
  0x31   :  { %s3510_s28 = scalar_lea.vmem %s99_s24, 1024  ;;  %p3515_p6 = scmp.lt.s32.totalorder %s99_s24, %s99_s24 }
  0x32   :  { %p3511_p5 = scmp.ne.s32.totalorder %s99_s24, %s3510_s28  ;;  %p3516_p7 = scmp.lt.s32.totalorder %s3510_s28, %s3510_s28 }
  0x34   :  { %p3517_p8 = por %p3516_p7, %p3515_p6 }
  0x36   :  { %p3518_p9 = pnand %p3517_p8, %p3511_p5 }
  0x38   :  { %3521 = shalt.err (!%p3518_p9)
}
  0x39   :  { %104 = dma.hbm_to_vmem [thread:$0]  %s4421_s7, 1024, %s99_s24, [#allocation12], %s3713_s0, %s3713_s0, %s3714_s17  }
  0x3a   :  { %s3717_s29 = smov [#allocation14]   ;;  %s3718_s1 = smov [#allocation2]  }
  0x3b   :  { %s126_s30 = sshll.u32 %s3717_s29, 4  ;;  %s34_s22 = sshll.u32 %s3718_s1, 4  ;;  %s127_s30 = int_to_ptr.vmem [resolvable:$true] %s126_s30  ;;  %s35_s22 = int_to_ptr.vmem [resolvable:$true] %s34_s22 }
  0x3c   :  { %s3522_s15 = scalar_lea.hbm %s4425_s11, 1024 }
  0x3d   :  { %p3523_p10 = scmp.ne.s32.totalorder %s4425_s11, %s3522_s15  ;;  %p3526_p11 = scmp.lt.u32.totalorder %s3522_s15, %s4425_s11 }
  0x3f   :  { %p3528_p12 = pnand %p3526_p11, %p3523_p10 }
  0x41   :  { %3531 = shalt.err (!%p3528_p12)
}
  0x42   :  { %s3532_s7 = scalar_lea.vmem %s127_s30, 1024  ;;  %p3537_p0 = scmp.lt.s32.totalorder %s127_s30, %s127_s30 }
  0x43   :  { %p3533_p13 = scmp.ne.s32.totalorder %s127_s30, %s3532_s7  ;;  %p3538_p1 = scmp.lt.s32.totalorder %s3532_s7, %s3532_s7 }
  0x45   :  { %p3539_p2 = por %p3538_p1, %p3537_p0 }
  0x47   :  { %p3540_p3 = pnand %p3539_p2, %p3533_p13 }
  0x49   :  { %3543 = shalt.err (!%p3540_p3)
}
  0x4a   :  { %132 = dma.hbm_to_vmem [thread:$0]  %s4425_s11, 1024, %s127_s30, [#allocation15], %s3713_s0, %s3713_s0, %s3714_s17  }
  0x4b   :  { %s4435_s21 = sld [smem:[#allocation27_spill]] }
  0x51   :  { %s3544_s29 = scalar_lea.hbm %s4435_s21, 256 }
  0x52   :  { %p3545_p4 = scmp.ne.s32.totalorder %s4435_s21, %s3544_s29  ;;  %p3548_p5 = scmp.lt.u32.totalorder %s3544_s29, %s4435_s21 }
  0x54   :  { %p3550_p6 = pnand %p3548_p5, %p3545_p4 }
  0x56   :  { %3553 = shalt.err (!%p3550_p6)
}
  0x57   :  { %s3554_s20 = scalar_lea.vmem %s35_s22, 256  ;;  %p3559_p8 = scmp.lt.s32.totalorder %s35_s22, %s35_s22 }
  0x58   :  { %p3555_p7 = scmp.ne.s32.totalorder %s35_s22, %s3554_s20  ;;  %p3560_p9 = scmp.lt.s32.totalorder %s3554_s20, %s3554_s20 }
  0x5a   :  { %p3561_p10 = por %p3560_p9, %p3559_p8 }
  0x5c   :  { %p3562_p11 = pnand %p3561_p10, %p3555_p7 }
  0x5e   :  { %3565 = shalt.err (!%p3562_p11)
}
  0x5f   :  { %s3719_s11 = smov 128   ;;  %s3720_s30 = smov 8  }
  0x60   :  { %40 = dma.hbm_to_vmem [thread:$0]  %s4435_s21, 256, %s35_s22, [#allocation3], %s3719_s11, %s3719_s11, %s3720_s30  }
  0x61   :  { %s3721_s26 = smov [#allocation7]   ;;  %s3722_s24 = smov [#allocation10]  }
  0x62   :  { %s58_s7 = sshll.u32 %s3721_s26, 4  ;;  %s84_s27 = sshll.u32 %s3722_s24, 4  ;;  %s59_s7 = int_to_ptr.vmem [resolvable:$true] %s58_s7  ;;  %s85_s27 = int_to_ptr.vmem [resolvable:$true] %s84_s27 }
  0x63   :  { %s3566_s29 = scalar_lea.hbm %s4416_s2, 2048 }
  0x64   :  { %p3567_p12 = scmp.ne.s32.totalorder %s4416_s2, %s3566_s29  ;;  %p3570_p13 = scmp.lt.u32.totalorder %s3566_s29, %s4416_s2 }
  0x66   :  { %p3572_p0 = pnand %p3570_p13, %p3567_p12 }
  0x68   :  { %3575 = shalt.err (!%p3572_p0)
}
  0x69   :  { %s3576_s22 = scalar_lea.vmem %s59_s7, 2048  ;;  %p3581_p2 = scmp.lt.s32.totalorder %s59_s7, %s59_s7 }
  0x6a   :  { %p3577_p1 = scmp.ne.s32.totalorder %s59_s7, %s3576_s22  ;;  %p3582_p3 = scmp.lt.s32.totalorder %s3576_s22, %s3576_s22 }
  0x6c   :  { %p3583_p4 = por %p3582_p3, %p3581_p2 }
  0x6e   :  { %p3584_p5 = pnand %p3583_p4, %p3577_p1 }
  0x70   :  { %3587 = shalt.err (!%p3584_p5)
}
  0x71   :  { %64 = dma.hbm_to_vmem [thread:$0]  %s4416_s2, 2048, %s59_s7, [#allocation6], %s3713_s0, %s3713_s0, %s3714_s17  }
  0x72   :  { %s3588_s26 = scalar_lea.hbm %s4419_s5, 12288 }
  0x73   :  { %p3589_p6 = scmp.ne.s32.totalorder %s4419_s5, %s3588_s26  ;;  %p3592_p7 = scmp.lt.u32.totalorder %s3588_s26, %s4419_s5 }
  0x75   :  { %p3594_p8 = pnand %p3592_p7, %p3589_p6 }
  0x77   :  { %3597 = shalt.err (!%p3594_p8)
}
  0x78   :  { %s3598_s1 = scalar_lea.vmem %s85_s27, 12288  ;;  %p3603_p10 = scmp.lt.s32.totalorder %s85_s27, %s85_s27 }
  0x79   :  { %p3599_p9 = scmp.ne.s32.totalorder %s85_s27, %s3598_s1  ;;  %p3604_p11 = scmp.lt.s32.totalorder %s3598_s1, %s3598_s1 }
  0x7b   :  { %p3605_p12 = por %p3604_p11, %p3603_p10 }
  0x7d   :  { %p3606_p13 = pnand %p3605_p12, %p3599_p9 }
  0x7f   :  { %3609 = shalt.err (!%p3606_p13)
}
  0x80   :  { %90 = dma.hbm_to_vmem [thread:$0]  %s4419_s5, 12288, %s85_s27, [#allocation9], %s3719_s11, %s3719_s11, %s3720_s30  }
  0x81   :  { %s3723_s18 = smov [#allocation13]   ;;  %s3724_s15 = smov [#allocation16]  }
  0x82   :  { %s112_s19 = sshll.u32 %s3723_s18, 4  ;;  %s140_s22 = sshll.u32 %s3724_s15, 4  ;;  %s113_s19 = int_to_ptr.vmem [resolvable:$true] %s112_s19  ;;  %s141_s22 = int_to_ptr.vmem [resolvable:$true] %s140_s22 }
  0x83   :  { %s3610_s23 = scalar_lea.hbm %s4423_s9, 1024 }
  0x84   :  { %p3611_p0 = scmp.ne.s32.totalorder %s4423_s9, %s3610_s23  ;;  %p3614_p1 = scmp.lt.u32.totalorder %s3610_s23, %s4423_s9 }
  0x86   :  { %p3616_p2 = pnand %p3614_p1, %p3611_p0 }
  0x88   :  { %3619 = shalt.err (!%p3616_p2)
}
  0x89   :  { %s3620_s5 = scalar_lea.vmem %s113_s19, 1024  ;;  %p3625_p4 = scmp.lt.s32.totalorder %s113_s19, %s113_s19 }
  0x8a   :  { %p3621_p3 = scmp.ne.s32.totalorder %s113_s19, %s3620_s5  ;;  %p3626_p5 = scmp.lt.s32.totalorder %s3620_s5, %s3620_s5 }
  0x8c   :  { %p3627_p6 = por %p3626_p5, %p3625_p4 }
  0x8e   :  { %p3628_p7 = pnand %p3627_p6, %p3621_p3 }
  0x90   :  { %3631 = shalt.err (!%p3628_p7)
}
  0x91   :  { %118 = dma.hbm_to_vmem [thread:$0]  %s4423_s9, 1024, %s113_s19, [#allocation12], %s3713_s0, %s3713_s0, %s3714_s17  }
  0x92   :  { %s3632_s2 = scalar_lea.hbm %s4427_s13, 1024 }
  0x93   :  { %p3633_p8 = scmp.ne.s32.totalorder %s4427_s13, %s3632_s2  ;;  %p3636_p9 = scmp.lt.u32.totalorder %s3632_s2, %s4427_s13 }
  0x95   :  { %p3638_p10 = pnand %p3636_p9, %p3633_p8 }
  0x97   :  { %3641 = shalt.err (!%p3638_p10)
}
  0x98   :  { %s3642_s20 = scalar_lea.vmem %s141_s22, 1024  ;;  %p3647_p12 = scmp.lt.s32.totalorder %s141_s22, %s141_s22 }
  0x99   :  { %p3643_p11 = scmp.ne.s32.totalorder %s141_s22, %s3642_s20  ;;  %p3648_p13 = scmp.lt.s32.totalorder %s3642_s20, %s3642_s20 }
  0x9b   :  { %p3649_p0 = por %p3648_p13, %p3647_p12 }
  0x9d   :  { %p3650_p1 = pnand %p3649_p0, %p3643_p11 }
  0x9f   :  { %3653 = shalt.err (!%p3650_p1)
}
  0xa0   :  { %146 = dma.hbm_to_vmem [thread:$0]  %s4427_s13, 1024, %s141_s22, [#allocation15], %s3713_s0, %s3713_s0, %s3714_s17  }
  0xa1   :  { %3698 = dma.done.wait [#allocation3], 256  }
  0xa2   :  { %3699 = vsyncadd [#allocation3], 4294967040 }
  0xa3   :  { %3700 = dma.done.wait [#allocation6], 4096  }
  0xa4   :  { %3701 = vsyncadd [#allocation6], 4294963200 }
  0xa5   :  { %3702 = dma.done.wait [#allocation9], 13312  }
  0xa6   :  { %3703 = vsyncadd [#allocation9], 4294953984 }
  0xa7   :  { %3704 = dma.done.wait [#allocation12], 2048  }
  0xa8   :  { %3705 = vsyncadd [#allocation12], 4294965248 }
  0xa9   :  { %3706 = dma.done.wait [#allocation15], 2048  }
  0xaa   :  { %3707 = vsyncadd [#allocation15], 4294965248  ;;  %v3725_v0 = vmov 0.0   ;;  %vm3726_vm0 = vmmov 0   ;;  %v3190_v1 = vld [vmem:[#allocation8] sm:$0xff]   ;;  %v3191_v2 = vld [vmem:[#allocation8 + $0x8] sm:$0xff]   ;;  %v356_v45 = vlaneseq }
  0xab   :  { %2855 = vmatprep.subr.bf16.mxu0 %v3725_v0  ;;  %2871 = vmatprep.mubr.msk.bf16.mxu0 %vm3726_vm0, %v3725_v0  ;;  %v3192_v3 = vld [vmem:[#allocation8 + $0x10] sm:$0xff]   ;;  %v3193_v4 = vld [vmem:[#allocation8 + $0x18] sm:$0xff]   ;;  %v3198_v5 = vld [vmem:[#allocation10 + $0x4] ss:$8 sps:$4 sm:$0xff]   ;;  %s3729_s28 = smov [#allocation18]  }
  0xac   :  { %2856 = vmatpush3.bf16.msra.mxu0 %v3190_v1  ;;  %v3200_v6 = vld [vmem:[#allocation10] ss:$8 sps:$4 sm:$0xff]   ;;  %v3201_v7 = vld [vmem:[#allocation10 + $0x14] ss:$8 sps:$4 sm:$0xff]   ;;  %708 = vmatprep.subr.bf16.mxu1 %v3198_v5  ;;  %v3203_v8 = vld [vmem:[#allocation10 + $0x10] ss:$8 sps:$4 sm:$0xff]  }
  0xad   :  { %2857 = vmatprep.subr.bf16.mxu0 %v3725_v0  ;;  %709 = vmatpush1.bf16.msra.mxu1 %v3200_v6  ;;  %v3204_v9 = vld [vmem:[#allocation10 + $0x24] ss:$8 sps:$4 sm:$0xff]   ;;  %v3206_v11 = vld [vmem:[#allocation10 + $0x20] ss:$8 sps:$4 sm:$0xff]   ;;  %v3207_v12 = vld [vmem:[#allocation10 + $0x34] ss:$8 sps:$4 sm:$0xff]  }
  0xae   :  { %710 = vmatprep.subr.bf16.mxu1 %v3201_v7  ;;  %v3194_v10 = vld [vmem:[#allocation8 + $0x20] sm:$0xff]   ;;  %v3195_v13 = vld [vmem:[#allocation8 + $0x28] sm:$0xff]   ;;  %v3209_v14 = vld [vmem:[#allocation10 + $0x30] ss:$8 sps:$4 sm:$0xff]   ;;  %v3971_v46 = vshrl.u32 %v356_v45, 7  ;;  %s2504_s5 = sshll.u32 %s3729_s28, 4  ;;  %s2505_s5 = int_to_ptr.vmem [resolvable:$true] %s2504_s5 }
  0xaf   :  { %v3210_v15 = vld [vmem:[#allocation10 + $0x44] ss:$8 sps:$4 sm:$0xff]   ;;  %v3196_v16 = vld [vmem:[#allocation8 + $0x30] sm:$0xff]   ;;  %v3197_v17 = vld [vmem:[#allocation8 + $0x38] sm:$0xff]   ;;  %s3654_s27 = scalar_lea.vmem %s2505_s5, 256  ;;  %p3659_p3 = scmp.lt.s32.totalorder %s2505_s5, %s2505_s5 }
  0xb0   :  { %2858 = vmatpush3.bf16.msra.mxu0 %v3191_v2  ;;  %v3960_v18 = vld [vmem:[#allocation2] sm:$0xff]  ;;  %v3212_v19 = vld [vmem:[#allocation10 + $0x40] ss:$8 sps:$4 sm:$0xff]   ;;  %v3962_v20 = vld [vmem:[#allocation2 + $0x8] sm:$0xff]  ;;  %v358_v47 = vadd.s32 8, %v3971_v46  ;;  %v363_v50 = vand.u32 7, %v3971_v46  ;;  %p3655_p2 = scmp.ne.s32.totalorder %s2505_s5, %s3654_s27  ;;  %p3660_p4 = scmp.lt.s32.totalorder %s3654_s27, %s3654_s27 }
  0xb1   :  { %2859 = vmatprep.subr.bf16.mxu0 %v3725_v0  ;;  %711 = vmatpush1.bf16.msra.mxu1 %v3203_v8  ;;  %v3213_v21 = vld [vmem:[#allocation10 + $0x54] ss:$8 sps:$4 sm:$0xff]   ;;  %v3215_v22 = vld [vmem:[#allocation10 + $0x50] ss:$8 sps:$4 sm:$0xff]   ;;  %v3216_v23 = vld [vmem:[#allocation10 + $0x64] ss:$8 sps:$4 sm:$0xff]   ;;  %v243_v24 = vpack.c.bf16 %v3962_v20, %v3960_v18 }
  0xb2   :  { %712 = vmatprep.subr.bf16.mxu1 %v3204_v9  ;;  %v3218_v25 = vld [vmem:[#allocation10 + $0x60] ss:$8 sps:$4 sm:$0xff]   ;;  %v3219_v26 = vld [vmem:[#allocation10 + $0x74] ss:$8 sps:$4 sm:$0xff]   ;;  %v3221_v27 = vld [vmem:[#allocation10 + $0x70] ss:$8 sps:$4 sm:$0xff]   ;;  %p3661_p5 = por %p3660_p4, %p3659_p3 }
  0xb3   :  { %v3222_v28 = vld [vmem:[#allocation10 + $0x84] ss:$8 sps:$4 sm:$0xff]   ;;  %v3224_v29 = vld [vmem:[#allocation10 + $0x80] ss:$8 sps:$4 sm:$0xff]   ;;  %v3225_v30 = vld [vmem:[#allocation10 + $0x94] ss:$8 sps:$4 sm:$0xff]  }
  0xb4   :  { %2860 = vmatpush3.bf16.msra.mxu0 %v3192_v3  ;;  %v3227_v31 = vld [vmem:[#allocation10 + $0x90] ss:$8 sps:$4 sm:$0xff]   ;;  %v3228_v32 = vld [vmem:[#allocation10 + $0xa4] ss:$8 sps:$4 sm:$0xff]   ;;  %v3230_v33 = vld [vmem:[#allocation10 + $0xa0] ss:$8 sps:$4 sm:$0xff]   ;;  %p3662_p6 = pnand %p3661_p5, %p3655_p2 }
  0xb5   :  { %2861 = vmatprep.subr.bf16.mxu0 %v3725_v0  ;;  %713 = vmatpush1.bf16.msra.mxu1 %v3206_v11  ;;  %v3231_v34 = vld [vmem:[#allocation10 + $0xb4] ss:$8 sps:$4 sm:$0xff]   ;;  %v3233_v35 = vld [vmem:[#allocation10 + $0xb0] ss:$8 sps:$4 sm:$0xff]   ;;  %v3234_v36 = vld [vmem:[#allocation10 + $0xc4] ss:$8 sps:$4 sm:$0xff]  }
  0xb6   :  { %714 = vmatprep.subr.bf16.mxu1 %v3207_v12  ;;  %v3236_v37 = vld [vmem:[#allocation10 + $0xc0] ss:$8 sps:$4 sm:$0xff]   ;;  %v3237_v38 = vld [vmem:[#allocation10 + $0xd4] ss:$8 sps:$4 sm:$0xff]   ;;  %v3239_v39 = vld [vmem:[#allocation10 + $0xd0] ss:$8 sps:$4 sm:$0xff]  }
  0xb7   :  { %v3240_v40 = vld [vmem:[#allocation10 + $0xe4] ss:$8 sps:$4 sm:$0xff]   ;;  %v3242_v41 = vld [vmem:[#allocation10 + $0xe0] ss:$8 sps:$4 sm:$0xff]   ;;  %v3243_v42 = vld [vmem:[#allocation10 + $0xf4] ss:$8 sps:$4 sm:$0xff]  }
  0xb8   :  { %2862 = vmatpush3.bf16.msra.mxu0 %v3193_v4  ;;  %v3245_v43 = vld [vmem:[#allocation10 + $0xf0] ss:$8 sps:$4 sm:$0xff]   ;;  %v3248_v44 = vld [vmem:[#allocation10 + $0x104] ss:$8 sps:$4 sm:$0xff]   ;;  %v370_v51 = vand.u32 7, %v358_v47  ;;  %vm401_vm1 = vcmp.lt.s32.totalorder %v3971_v46, 1 }
  0xb9   :  { %2863 = vmatprep.subr.bf16.mxu0 %v3725_v0  ;;  %715 = vmatpush1.bf16.msra.mxu1 %v3209_v14  ;;  %v2524_v48 = vld [vmem:[%s4418_s4] ss:$0 sm:$0xff]  ;;  %vm393_vm2 = vcmp.lt.s32.totalorder %v3971_v46, 2  ;;  %vm3984_vm3 = vcmp.lt.s32.totalorder %v363_v50, 1  ;;  %vm3992_vm5 = vcmp.lt.s32.totalorder %v363_v50, 2 }
  0xba   :  { %716 = vmatprep.subr.bf16.mxu1 %v3210_v15  ;;  %vm3988_vm4 = vcmp.lt.s32.totalorder %v370_v51, 1  ;;  %vm3996_vm6 = vcmp.lt.s32.totalorder %v370_v51, 2  ;;  %v3246_v11 = vld [vmem:[#allocation10 + $0x100] ss:$8 sps:$4 sm:$0xff]   ;;  %v3249_v14 = vld [vmem:[#allocation10 + $0x110] ss:$8 sps:$4 sm:$0xff]  }
  0xbb   :  { %v3727_v15 = vmov 0   ;;  %v3374_v57 = vld [vmem:[#allocation10 + $0x2a4] ss:$8 sps:$4 sm:$0xff]   ;;  %v3372_v58 = vld [vmem:[#allocation10 + $0x2a0] ss:$8 sps:$4 sm:$0xff]  }
  0xbc   :  { %2864 = vmatpush3.bf16.msra.mxu0 %v3194_v10  ;;  %v3377_v59 = vld [vmem:[#allocation10 + $0x2b4] ss:$8 sps:$4 sm:$0xff]   ;;  %v3380_v60 = vld [vmem:[#allocation10 + $0x2c4] ss:$8 sps:$4 sm:$0xff]  }
  0xbd   :  { %2865 = vmatprep.subr.bf16.mxu0 %v3725_v0  ;;  %717 = vmatpush1.bf16.msra.mxu1 %v3212_v19  ;;  %v3257_v19 = vld [vmem:[#allocation10 + $0x134] ss:$8 sps:$4 sm:$0xff]  }
  0xbe   :  { %718 = vmatprep.subr.bf16.mxu1 %v3213_v21  ;;  %v3255_v21 = vld [vmem:[#allocation10 + $0x130] ss:$8 sps:$4 sm:$0xff]  }
  0xc0   :  { %2866 = vmatpush3.bf16.msra.mxu0 %v3195_v13  ;;  %v3251_v13 = vld [vmem:[#allocation10 + $0x114] ss:$8 sps:$4 sm:$0xff]  }
  0xc1   :  { %2867 = vmatprep.subr.bf16.mxu0 %v3725_v0  ;;  %719 = vmatpush1.bf16.msra.mxu1 %v3215_v22  ;;  %v3260_v22 = vld [vmem:[#allocation10 + $0x144] ss:$8 sps:$4 sm:$0xff]  }
  0xc2   :  { %720 = vmatprep.subr.bf16.mxu1 %v3216_v23  ;;  %v3258_v23 = vld [vmem:[#allocation10 + $0x140] ss:$8 sps:$4 sm:$0xff]  }
  0xc4   :  { %2868 = vmatpush3.bf16.msra.mxu0 %v3196_v16  ;;  %v3254_v16 = vld [vmem:[#allocation10 + $0x124] ss:$8 sps:$4 sm:$0xff]  }
  0xc5   :  { %2869 = vmatprep.subr.bf16.mxu0 %v3725_v0  ;;  %721 = vmatpush1.bf16.msra.mxu1 %v3218_v25  ;;  %v3261_v25 = vld [vmem:[#allocation10 + $0x150] ss:$8 sps:$4 sm:$0xff]  }
  0xc6   :  { %722 = vmatprep.subr.bf16.mxu1 %v3219_v26  ;;  %v3266_v26 = vld [vmem:[#allocation10 + $0x164] ss:$8 sps:$4 sm:$0xff]  }
  0xc8   :  { %2870 = vmatpush3.bf16.msra.mxu0 %v3197_v17  ;;  %v3252_v17 = vld [vmem:[#allocation10 + $0x120] ss:$8 sps:$4 sm:$0xff]  }
  0xc9   :  { %2875 = vmatprep.subr.bf16.mxu0 %v3725_v0  ;;  %723 = vmatpush1.bf16.msra.mxu1 %v3221_v27  ;;  %v3264_v27 = vld [vmem:[#allocation10 + $0x160] ss:$8 sps:$4 sm:$0xff]  }
  0xca   :  { %724 = vmatprep.subr.bf16.mxu1 %v3222_v28  ;;  %v3269_v28 = vld [vmem:[#allocation10 + $0x174] ss:$8 sps:$4 sm:$0xff]  }
  0xcb   :  { %2872 = vmatmul.mubr.bf16.vlgmr.msra.gmra.mrb[0].mxu0 %v243_v24  ;;  %v3263_v24 = vld [vmem:[#allocation10 + $0x154] ss:$8 sps:$4 sm:$0xff]  }
  0xcc   :  { %2891 = vmatprep.mubr.msk.bf16.mxu0 %vm3726_vm0, %v3725_v0 }
  0xcd   :  { %725 = vmatpush1.bf16.msra.mxu1 %v3224_v29  ;;  %v3267_v29 = vld [vmem:[#allocation10 + $0x170] ss:$8 sps:$4 sm:$0xff]  }
  0xce   :  { %726 = vmatprep.subr.bf16.mxu1 %v3225_v30 }
  0xd1   :  { %727 = vmatpush1.bf16.msra.mxu1 %v3227_v31  ;;  %v3270_v31 = vld [vmem:[#allocation11] sm:$0xff]  }
  0xd2   :  { %728 = vmatprep.subr.bf16.mxu1 %v3228_v32  ;;  %2876 = vmatpush3.bf16.msra.mxu0 %v3270_v31  ;;  %v3271_v32 = vld [vmem:[#allocation11 + $0x8] sm:$0xff]   ;;  %v4107_v31 = vld [vmem:[#allocation5 + $0x60] sm:$0xff]  }
  0xd3   :  { %2877 = vmatprep.subr.bf16.mxu0 %v3725_v0 }
  0xd5   :  { %729 = vmatpush1.bf16.msra.mxu1 %v3230_v33  ;;  %v3272_v33 = vld [vmem:[#allocation11 + $0x10] sm:$0xff]  }
  0xd6   :  { %730 = vmatprep.subr.bf16.mxu1 %v3231_v34  ;;  %2878 = vmatpush3.bf16.msra.mxu0 %v3271_v32  ;;  %v3273_v34 = vld [vmem:[#allocation11 + $0x18] sm:$0xff]   ;;  %v4111_v32 = vld [vmem:[#allocation5 + $0x68] sm:$0xff]  }
  0xd7   :  { %2879 = vmatprep.subr.bf16.mxu0 %v3725_v0 }
  0xd9   :  { %731 = vmatpush1.bf16.msra.mxu1 %v3233_v35  ;;  %v3274_v35 = vld [vmem:[#allocation11 + $0x20] sm:$0xff]  }
  0xda   :  { %732 = vmatprep.subr.bf16.mxu1 %v3234_v36  ;;  %2880 = vmatpush3.bf16.msra.mxu0 %v3272_v33  ;;  %v3275_v36 = vld [vmem:[#allocation11 + $0x28] sm:$0xff]  }
  0xdb   :  { %2881 = vmatprep.subr.bf16.mxu0 %v3725_v0 }
  0xdd   :  { %733 = vmatpush1.bf16.msra.mxu1 %v3236_v37  ;;  %v3276_v37 = vld [vmem:[#allocation11 + $0x30] sm:$0xff]  }
  0xde   :  { %734 = vmatprep.subr.bf16.mxu1 %v3237_v38  ;;  %2882 = vmatpush3.bf16.msra.mxu0 %v3273_v34  ;;  %v3277_v38 = vld [vmem:[#allocation11 + $0x38] sm:$0xff]   ;;  %v4116_v34 = vld [vmem:[#allocation5 + $0x70] sm:$0xff]  }
  0xdf   :  { %2883 = vmatprep.subr.bf16.mxu0 %v3725_v0 }
  0xe1   :  { %735 = vmatpush1.bf16.msra.mxu1 %v3239_v39  ;;  %v464_v39 = vsub.s32 1, %v3971_v46 }
  0xe2   :  { %736 = vmatprep.subr.bf16.mxu1 %v3240_v40  ;;  %2884 = vmatpush3.bf16.msra.mxu0 %v3274_v35  ;;  %v456_v40 = vld [vmem:[%s4420_s6] sm:$0x3] }
  0xe3   :  { %2885 = vmatprep.subr.bf16.mxu0 %v3725_v0 }
  0xe5   :  { %737 = vmatpush1.bf16.msra.mxu1 %v3242_v41  ;;  %v465_v41 = vrot.slane %v456_v40, %v464_v39 }
  0xe6   :  { %738 = vmatprep.subr.bf16.mxu1 %v3243_v42  ;;  %2886 = vmatpush3.bf16.msra.mxu0 %v3275_v36  ;;  %v4121_v36 = vld [vmem:[#allocation5 + $0x78] sm:$0xff]  }
  0xe7   :  { %2887 = vmatprep.subr.bf16.mxu0 %v3725_v0 }
  0xe9   :  { %739 = vmatpush1.bf16.msra.mxu1 %v3245_v43 }
  0xea   :  { %751 = vmatprep.subr.bf16.mxu1 %v3248_v44  ;;  %2888 = vmatpush3.bf16.msra.mxu0 %v3276_v37 }
  0xeb   :  { %2889 = vmatprep.subr.bf16.mxu0 %v3725_v0 }
  0xee   :  { %2890 = vmatpush3.bf16.msra.mxu0 %v3277_v38 }
  0xef   :  { %2895 = vmatprep.subr.bf16.mxu0 %v3725_v0 }
 0x19e   :  { %v349_v49 = vpop.f32.mrb[0].mxu0 }
 0x19f   :  { %v3978_v52 = vadd.f32 %v2524_v48, %v349_v49  ;;  %v2873_v53 = vpop.f32.mrb[1].mxu0 }
 0x1a0   :  { %v352_v54 = vpop.f32.mrb[2].mxu0 }
 0x1a1   :  { %v3980_v55 = vadd.f32 %v2524_v48, %v352_v54  ;;  %v2874_v56 = vpop.f32.mrb[3].mxu0  ;;  %v391_v61 = vrot.slane %v3978_v52, 6  ;;  %v399_v63 = vrot.slane %v3978_v52, 7 }
 0x1a3   :  { %v392_v62 = vrot.slane %v3980_v55, 6  ;;  %v400_v1 = vrot.slane %v3980_v55, 7  ;;  %v407_v30 = vpack.c.bf16 %v3980_v55, %v3978_v52 }
 0x1a5   :  { %v402_v2 = vsel %vm401_vm1, %v399_v63, %v400_v1  ;;  %v403_v3 = vsel %vm401_vm1, %v400_v1, %v399_v63  ;;  %v394_v4 = vsel %vm393_vm2, %v391_v61, %v392_v62  ;;  %v395_v5 = vsel %vm393_vm2, %v392_v62, %v391_v61 }
 0x1a6   :  { %v404_v6 = vsel %vm3984_vm3, 1.0, %v403_v3  ;;  %v405_v7 = vsel %vm3988_vm4, 1.0, %v402_v2  ;;  %v396_v8 = vsel %vm3992_vm5, 1.0, %v395_v5  ;;  %v397_v9 = vsel %vm3996_vm6, 1.0, %v394_v4 }
 0x1a7   :  { %v406_v10 = vpack.c.bf16 %v405_v7, %v404_v6  ;;  %v398_v12 = vpack.c.bf16 %v397_v9, %v396_v8  ;;  %v460_v62 = vsub.s32 0, %v3971_v46  ;;  %v4047_v7 = vld [vmem:[#allocation5] sm:$0xff]   ;;  %v4052_v9 = vld [vmem:[#allocation5 + $0x8] sm:$0xff]  }
 0x1a9   :  { %740 = vmatprep.mubr.bf16.mxu1 %v406_v10  ;;  %v461_v63 = vrot.slane %v456_v40, %v460_v62  ;;  %v4058_v10 = vld [vmem:[#allocation5 + $0x10] sm:$0xff]   ;;  %v3728_v40 = vmov -1e+30  }
 0x1aa   :  { %741 = vmatmul.mubr.bf16.vlgmr.msra.gmra.mrb[0].mxu1 %v398_v12  ;;  %v4066_v12 = vld [vmem:[#allocation5 + $0x20] sm:$0xff]  }
 0x1ab   :  { %752 = vmatpush1.bf16.msra.mxu1 %v3246_v11  ;;  %783 = vmatprep.mubr.bf16.mxu1 %v3727_v15  ;;  %v4062_v11 = vld [vmem:[#allocation5 + $0x18] sm:$0xff]  }
 0x1ac   :  { %753 = vmatprep.subr.bf16.mxu1 %v3251_v13  ;;  %v4070_v13 = vld [vmem:[#allocation5 + $0x28] sm:$0xff]  }
 0x1af   :  { %754 = vmatpush1.bf16.msra.mxu1 %v3249_v14  ;;  %v4075_v14 = vld [vmem:[#allocation5 + $0x30] sm:$0xff]  }
 0x1b0   :  { %755 = vmatprep.subr.bf16.mxu1 %v3254_v16  ;;  %v4079_v16 = vld [vmem:[#allocation5 + $0x38] sm:$0xff]  }
 0x1b3   :  { %756 = vmatpush1.bf16.msra.mxu1 %v3252_v17  ;;  %v4086_v17 = vld [vmem:[%s4422_s8] ss:$0 sm:$0xff] }
 0x1b4   :  { %757 = vmatprep.subr.bf16.mxu1 %v3257_v19 }
 0x1b7   :  { %758 = vmatpush1.bf16.msra.mxu1 %v3255_v21 }
 0x1b8   :  { %759 = vmatprep.subr.bf16.mxu1 %v3260_v22 }
 0x1bb   :  { %760 = vmatpush1.bf16.msra.mxu1 %v3258_v23 }
 0x1bc   :  { %761 = vmatprep.subr.bf16.mxu1 %v3263_v24 }
 0x1bf   :  { %762 = vmatpush1.bf16.msra.mxu1 %v3261_v25 }
 0x1c0   :  { %763 = vmatprep.subr.bf16.mxu1 %v3266_v26 }
 0x1c3   :  { %764 = vmatpush1.bf16.msra.mxu1 %v3264_v27  ;;  %v4090_v27 = vld [vmem:[#allocation5 + $0x40] sm:$0xff]  }
 0x1c4   :  { %765 = vmatprep.subr.bf16.mxu1 %v3269_v28 }
 0x1c7   :  { %766 = vmatpush1.bf16.msra.mxu1 %v3267_v29  ;;  %v4093_v29 = vld [vmem:[#allocation5 + $0x48] sm:$0xff]  }
 0x1c8   :  { %2935 = vmatprep.subr.bf16.mxu1 %v3725_v0 }
 0x1ca   :  { %784 = vmatmul.mubr.bf16.vlgmr.msra.gmra.mrb[0].mxu1 %v407_v30  ;;  %v4099_v30 = vld [vmem:[#allocation5 + $0x50] sm:$0xff]  }
 0x1cb   :  { %2951 = vmatprep.mubr.msk.bf16.mxu1 %vm3726_vm0, %v3725_v0 }
 0x29d   :  { %v785_v42 = vpop.f32.mrb[0].mxu1 }
 0x29e   :  { %v787_v43 = vpop.f32.mrb[1].mxu1  ;;  %v3155_v1 = vadd.f32 %v785_v42, %v461_v63 }
 0x29f   :  { %v3156_v44 = vadd.f32 %v787_v43, %v465_v41  ;;  %v789_v47 = vpop.f32.mrb[2].mxu1 }
 0x2a0   :  { %v791_v48 = vpop.f32.mrb[3].mxu1  ;;  %v3157_v3 = vadd.f32 %v789_v47, %v461_v63  ;;  %v4144_v63 = vld [vmem:[#allocation7 + $0x18] sm:$0xff]  }
 0x2a1   :  { %v2581_v49 = vmul.f32 -1.442695, %v3156_v44  ;;  %v3158_v50 = vadd.f32 %v791_v48, %v465_v41 }
 0x2a3   :  { %3422 = vpow2.f32 %v2581_v49  ;;  %v2582_v51 = vmul.f32 -1.442695, %v3158_v50 }
 0x2a5   :  { %3424 = vpow2.f32 %v2582_v51 }
 0x2ad   :  { %v3423_v53 = vpop.eup %3422 }
 0x2ae   :  { %v800_v54 = vadd.f32 1.0, %v3423_v53 }
 0x2af   :  { %v3425_v56 = vpop.eup %3424 }
 0x2b0   :  { %3426 = vrcp.f32 %v800_v54  ;;  %v801_v61 = vadd.f32 1.0, %v3425_v56  ;;  %v4133_v56 = vld [vmem:[#allocation7] sm:$0xff]  }
 0x2b1   :  { %2936 = vmatpush3.bf16.msra.mxu1 %v4133_v56 }
 0x2b2   :  { %3428 = vrcp.f32 %v801_v61  ;;  %2937 = vmatprep.subr.bf16.mxu1 %v3725_v0  ;;  %v4140_v61 = vld [vmem:[#allocation7 + $0x10] sm:$0xff]  }
 0x2ba   :  { %v3427_v2 = vpop.eup %3426 }
 0x2bb   :  { %v4043_v4 = vmul.f32 %v3427_v2, %v3155_v1 }
 0x2bc   :  { %v3429_v5 = vpop.eup %3428 }
 0x2bd   :  { %v4045_v6 = vmul.f32 %v3429_v5, %v3157_v3 }
 0x2bf   :  { %v808_v8 = vpack.c.bf16 %v4045_v6, %v4043_v4 }
 0x2c1   :  { %2892 = vmatmul.mubr.bf16.vlgmr.msra.gmra.mrb[4].mxu0 %v808_v8  ;;  %v4149_v8 = vld [vmem:[#allocation7 + $0x20] sm:$0xff]  }
 0x2c2   :  { %2896 = vmatpush3.bf16.msra.mxu0 %v4047_v7  ;;  %2911 = vmatprep.mubr.msk.bf16.mxu0 %vm3726_vm0, %v3725_v0 }
 0x2c3   :  { %2897 = vmatprep.subr.bf16.mxu0 %v3725_v0 }
 0x2c6   :  { %2898 = vmatpush3.bf16.msra.mxu0 %v4052_v9 }
 0x2c7   :  { %2899 = vmatprep.subr.bf16.mxu0 %v3725_v0 }
 0x2ca   :  { %2900 = vmatpush3.bf16.msra.mxu0 %v4058_v10 }
 0x2cb   :  { %2901 = vmatprep.subr.bf16.mxu0 %v3725_v0 }
 0x2ce   :  { %2902 = vmatpush3.bf16.msra.mxu0 %v4062_v11 }
 0x2cf   :  { %2903 = vmatprep.subr.bf16.mxu0 %v3725_v0 }
 0x2d2   :  { %2904 = vmatpush3.bf16.msra.mxu0 %v4066_v12 }
 0x2d3   :  { %2905 = vmatprep.subr.bf16.mxu0 %v3725_v0 }
 0x2d6   :  { %2906 = vmatpush3.bf16.msra.mxu0 %v4070_v13 }
 0x2d7   :  { %2907 = vmatprep.subr.bf16.mxu0 %v3725_v0 }
 0x2da   :  { %2908 = vmatpush3.bf16.msra.mxu0 %v4075_v14 }
 0x2db   :  { %2909 = vmatprep.subr.bf16.mxu0 %v3725_v0 }
 0x2de   :  { %2910 = vmatpush3.bf16.msra.mxu0 %v4079_v16 }
 0x2df   :  { %2915 = vmatprep.subr.bf16.mxu0 %v3725_v0 }
 0x394   :  { %v914_v19 = vpop.f32.mrb[4].mxu0 }
 0x395   :  { %v915_v21 = vadd.f32 %v4086_v17, %v914_v19  ;;  %v2893_v22 = vpop.f32.mrb[5].mxu0  ;;  %v4152_v19 = vld [vmem:[#allocation7 + $0x28] sm:$0xff]  }
 0x396   :  { %v917_v23 = vpop.f32.mrb[6].mxu0 }
 0x397   :  { %v921_v24 = vadd.f32 %v915_v21, %v3960_v18  ;;  %v2894_v25 = vpop.f32.mrb[7].mxu0  ;;  %v4103_v18 = vld [vmem:[#allocation5 + $0x58] sm:$0xff]   ;;  %v918_v33 = vadd.f32 %v4086_v17, %v917_v23 }
 0x398   :  { %v4160_v25 = vld [vmem:[#allocation7 + $0x38] sm:$0xff]  }
 0x399   :  { %v923_v26 = vmul.f32 0.70710677, %v921_v24  ;;  %v922_v35 = vadd.f32 %v918_v33, %v3962_v20  ;;  %v388_v20 = vand.u32 127, %v356_v45  ;;  %v4136_v45 = vld [vmem:[#allocation7 + $0x8] sm:$0xff]   ;;  %v4156_v24 = vld [vmem:[#allocation7 + $0x30] sm:$0xff]  }
 0x39a   :  { %2938 = vmatpush3.bf16.msra.mxu1 %v4136_v45 }
 0x39b   :  { %v925_v28 = vpack.c.bf16 %v923_v26, %v923_v26  ;;  %v924_v37 = vmul.f32 0.70710677, %v922_v35  ;;  %vm389_vm7 = vcmp.lt.s32.totalorder %v388_v20, 8  ;;  %2939 = vmatprep.subr.bf16.mxu1 %v3725_v0  ;;  %v4164_v26 = vld [vmem:[#allocation7 + $0x40] sm:$0xff]   ;;  %v4172_v35 = vld [vmem:[#allocation7 + $0x50] sm:$0xff]   ;;  %v4184_v20 = vld [vmem:[#allocation7 + $0x68] sm:$0xff]  }
 0x39c   :  { %v4129_v41 = vsel %vm389_vm7, 0.0, %v3728_v40  ;;  %v4188_v40 = vld [vmem:[#allocation7 + $0x70] sm:$0xff]  }
 0x39d   :  { %2912 = vmatmul.mubr.bf16.vlgmr.msra.gmra.mrb[8].mxu0 %v925_v28  ;;  %v926_v38 = vpack.c.bf16 %v924_v37, %v924_v37  ;;  %v4168_v28 = vld [vmem:[#allocation7 + $0x48] sm:$0xff]   ;;  %v4176_v37 = vld [vmem:[#allocation7 + $0x58] sm:$0xff]  }
 0x39e   :  { %2916 = vmatpush3.bf16.msra.mxu0 %v4090_v27  ;;  %2931 = vmatprep.mubr.msk.bf16.mxu0 %vm3726_vm0, %v3725_v0 }
 0x39f   :  { %2917 = vmatprep.subr.bf16.mxu0 %v3725_v0  ;;  %2940 = vmatpush3.bf16.msra.mxu1 %v4140_v61 }
 0x3a0   :  { %2941 = vmatprep.subr.bf16.mxu1 %v3725_v0 }
 0x3a2   :  { %2918 = vmatpush3.bf16.msra.mxu0 %v4093_v29 }
 0x3a3   :  { %2919 = vmatprep.subr.bf16.mxu0 %v3725_v0  ;;  %2942 = vmatpush3.bf16.msra.mxu1 %v4144_v63 }
 0x3a4   :  { %2943 = vmatprep.subr.bf16.mxu1 %v3725_v0 }
 0x3a6   :  { %2920 = vmatpush3.bf16.msra.mxu0 %v4099_v30 }
 0x3a7   :  { %2921 = vmatprep.subr.bf16.mxu0 %v3725_v0  ;;  %2944 = vmatpush3.bf16.msra.mxu1 %v4149_v8 }
 0x3a8   :  { %2945 = vmatprep.subr.bf16.mxu1 %v3725_v0 }
 0x3aa   :  { %2922 = vmatpush3.bf16.msra.mxu0 %v4103_v18 }
 0x3ab   :  { %2923 = vmatprep.subr.bf16.mxu0 %v3725_v0  ;;  %2946 = vmatpush3.bf16.msra.mxu1 %v4152_v19 }
 0x3ac   :  { %2947 = vmatprep.subr.bf16.mxu1 %v3725_v0 }
 0x3ae   :  { %2924 = vmatpush3.bf16.msra.mxu0 %v4107_v31 }
 0x3af   :  { %2925 = vmatprep.subr.bf16.mxu0 %v3725_v0  ;;  %2948 = vmatpush3.bf16.msra.mxu1 %v4156_v24 }
 0x3b0   :  { %2949 = vmatprep.subr.bf16.mxu1 %v3725_v0 }
 0x3b2   :  { %2926 = vmatpush3.bf16.msra.mxu0 %v4111_v32 }
 0x3b3   :  { %2927 = vmatprep.subr.bf16.mxu0 %v3725_v0  ;;  %2950 = vmatpush3.bf16.msra.mxu1 %v4160_v25 }
 0x3b4   :  { %2975 = vmatprep.subr.bf16.mxu1 %v3725_v0 }
 0x3b6   :  { %2928 = vmatpush3.bf16.msra.mxu0 %v4116_v34 }
 0x3b7   :  { %2929 = vmatprep.subr.bf16.mxu0 %v3725_v0 }
 0x3ba   :  { %2930 = vmatpush3.bf16.msra.mxu0 %v4121_v36 }
 0x3bb   :  { %2955 = vmatprep.subr.bf16.mxu0 %v3725_v0 }
 0x3bd   :  { %2932 = vmatmul.mubr.bf16.vlgmr.msra.gmra.mrb[12].mxu0 %v926_v38  ;;  %v4181_v38 = vld [vmem:[#allocation7 + $0x60] sm:$0xff]  }
 0x3be   :  { %2971 = vmatprep.mubr.msk.bf16.mxu0 %vm3726_vm0, %v3725_v0  ;;  %2956 = vmatpush3.bf16.msra.mxu0 %v4164_v26 }
 0x3bf   :  { %2957 = vmatprep.subr.bf16.mxu0 %v3725_v0 }
 0x3c2   :  { %2958 = vmatpush3.bf16.msra.mxu0 %v4168_v28 }
 0x3c3   :  { %2959 = vmatprep.subr.bf16.mxu0 %v3725_v0 }
 0x3c6   :  { %2960 = vmatpush3.bf16.msra.mxu0 %v4172_v35 }
 0x3c7   :  { %2961 = vmatprep.subr.bf16.mxu0 %v3725_v0 }
 0x3ca   :  { %2962 = vmatpush3.bf16.msra.mxu0 %v4176_v37 }
 0x3cb   :  { %2963 = vmatprep.subr.bf16.mxu0 %v3725_v0 }
 0x3ce   :  { %2964 = vmatpush3.bf16.msra.mxu0 %v4181_v38 }
 0x3cf   :  { %2965 = vmatprep.subr.bf16.mxu0 %v3725_v0 }
 0x3d2   :  { %2966 = vmatpush3.bf16.msra.mxu0 %v4184_v20 }
 0x3d3   :  { %2967 = vmatprep.subr.bf16.mxu0 %v3725_v0 }
 0x3d6   :  { %2968 = vmatpush3.bf16.msra.mxu0 %v4188_v40 }
 0x3d7   :  { %2969 = vmatprep.subr.bf16.mxu0 %v3725_v0 }
 0x470   :  { %v1009_v42 = vpop.f32.mrb[8].mxu0 }
 0x471   :  { %v1010_v43 = vadd.f32 %v1009_v42, %v4129_v41  ;;  %v2913_v44 = vpop.f32.mrb[9].mxu0  ;;  %v4192_v42 = vld [vmem:[#allocation7 + $0x78] sm:$0xff]  }
 0x472   :  { %v1012_v47 = vpop.f32.mrb[10].mxu0  ;;  %2970 = vmatpush3.bf16.msra.mxu0 %v4192_v42 }
 0x473   :  { %1103 = vmax.xlane.f32.xlu0 %v1010_v43  ;;  %v2914_v48 = vpop.f32.mrb[11].mxu0 }
 0x490   :  { %v1097_v49 = vpop.f32.mrb[12].mxu0 }
 0x491   :  { %v1098_v50 = vadd.f32 %v1097_v49, %v4129_v41  ;;  %v2933_v51 = vpop.f32.mrb[13].mxu0 }
 0x492   :  { %v1100_v53 = vpop.f32.mrb[14].mxu0 }
 0x493   :  { %1105 = vmax.xlane.f32.xlu0 %v1098_v50  ;;  %v2934_v54 = vpop.f32.mrb[15].mxu0 }
 0x494   :  { %v3310_v54 = vld [vmem:[#allocation13] sm:$0xff]  }
 0x500   :  { %v1104_v1 = vpop.xlane.xlu0 %1103 }
 0x501   :  { %v1107_v2 = vsub.f32 %v1010_v43, %v1104_v1  ;;  %v3311_v1 = vld [vmem:[#allocation13 + $0x8] sm:$0xff]  }
 0x503   :  { %v1109_v3 = vmul.f32 1.442695, %v1107_v2  ;;  %v3312_v2 = vld [vmem:[#allocation13 + $0x10] sm:$0xff]  }
 0x505   :  { %3430 = vpow2.f32 %v1109_v3  ;;  %v3313_v3 = vld [vmem:[#allocation13 + $0x18] sm:$0xff]  }
 0x50f   :  { %v3431_v5 = vpop.eup %3430 }
 0x510   :  { %1113 = vadd.xlane.f32.xlu1 %v3431_v5 }
 0x520   :  { %v1106_v21 = vpop.xlane.xlu0 %1105 }
 0x521   :  { %v1108_v22 = vsub.f32 %v1098_v50, %v1106_v21  ;;  %v3315_v21 = vld [vmem:[#allocation13 + $0x28] sm:$0xff]  }
 0x523   :  { %v1111_v23 = vmul.f32 1.442695, %v1108_v22  ;;  %v3316_v22 = vld [vmem:[#allocation13 + $0x30] sm:$0xff]  }
 0x525   :  { %3432 = vpow2.f32 %v1111_v23  ;;  %v3317_v23 = vld [vmem:[#allocation13 + $0x38] sm:$0xff]  }
 0x52f   :  { %v3433_v33 = vpop.eup %3432 }
 0x530   :  { %1115 = vadd.xlane.f32.xlu1 %v3433_v33 }
 0x59d   :  { %v1114_v43 = vpop.xlane.xlu1 %1113 }
 0x59e   :  { %3434 = vrcp.f32 %v1114_v43  ;;  %v3320_v43 = vld [vmem:[#allocation10 + $0x184] ss:$8 sps:$4 sm:$0xff]  }
 0x59f   :  { %1737 = vmatprep.subr.bf16.mxu0 %v3320_v43  ;;  %v3347_v43 = vld [vmem:[#allocation10 + $0x214] ss:$8 sps:$4 sm:$0xff]  }
 0x5a8   :  { %v3435_v44 = vpop.eup %3434 }
 0x5a9   :  { %v1119_v47 = vmul.f32 %v3435_v44, %v3431_v5  ;;  %v3314_v5 = vld [vmem:[#allocation13 + $0x20] sm:$0xff]   ;;  %v3323_v44 = vld [vmem:[#allocation10 + $0x194] ss:$8 sps:$4 sm:$0xff]  }
 0x5ab   :  { %v1121_v48 = vpack.c.bf16 %v1119_v47, %v1119_v47  ;;  %v3321_v47 = vld [vmem:[#allocation10 + $0x190] ss:$8 sps:$4 sm:$0xff]  }
 0x5ad   :  { %2952 = vmatmul.mubr.bf16.vlgmr.msra.gmra.mrb[4].mxu1 %v1121_v48  ;;  %v3326_v48 = vld [vmem:[#allocation10 + $0x1a4] ss:$8 sps:$4 sm:$0xff]  }
 0x5ae   :  { %2991 = vmatprep.mubr.msk.bf16.mxu1 %vm3726_vm0, %v3725_v0  ;;  %2976 = vmatpush3.bf16.msra.mxu1 %v3310_v54  ;;  %v3330_v54 = vld [vmem:[#allocation10 + $0x1c0] ss:$8 sps:$4 sm:$0xff]  }
 0x5af   :  { %2977 = vmatprep.subr.bf16.mxu1 %v3725_v0 }
 0x5b2   :  { %2978 = vmatpush3.bf16.msra.mxu1 %v3311_v1  ;;  %v3335_v1 = vld [vmem:[#allocation10 + $0x1d4] ss:$8 sps:$4 sm:$0xff]  }
 0x5b3   :  { %2979 = vmatprep.subr.bf16.mxu1 %v3725_v0 }
 0x5b6   :  { %2980 = vmatpush3.bf16.msra.mxu1 %v3312_v2  ;;  %v3333_v2 = vld [vmem:[#allocation10 + $0x1d0] ss:$8 sps:$4 sm:$0xff]  }
 0x5b7   :  { %2981 = vmatprep.subr.bf16.mxu1 %v3725_v0 }
 0x5ba   :  { %2982 = vmatpush3.bf16.msra.mxu1 %v3313_v3  ;;  %v3338_v3 = vld [vmem:[#allocation10 + $0x1e4] ss:$8 sps:$4 sm:$0xff]  }
 0x5bb   :  { %2983 = vmatprep.subr.bf16.mxu1 %v3725_v0 }
 0x5bd   :  { %v1116_v49 = vpop.xlane.xlu1 %1115 }
 0x5be   :  { %3436 = vrcp.f32 %v1116_v49  ;;  %2984 = vmatpush3.bf16.msra.mxu1 %v3314_v5  ;;  %v3324_v49 = vld [vmem:[#allocation10 + $0x1a0] ss:$8 sps:$4 sm:$0xff]  }
 0x5bf   :  { %2985 = vmatprep.subr.bf16.mxu1 %v3725_v0  ;;  %v3336_v5 = vld [vmem:[#allocation10 + $0x1e0] ss:$8 sps:$4 sm:$0xff]  }
 0x5c2   :  { %2986 = vmatpush3.bf16.msra.mxu1 %v3315_v21  ;;  %v3341_v21 = vld [vmem:[#allocation10 + $0x1f4] ss:$8 sps:$4 sm:$0xff]  }
 0x5c3   :  { %2987 = vmatprep.subr.bf16.mxu1 %v3725_v0 }
 0x5c6   :  { %2988 = vmatpush3.bf16.msra.mxu1 %v3316_v22  ;;  %v3339_v22 = vld [vmem:[#allocation10 + $0x1f0] ss:$8 sps:$4 sm:$0xff]  }
 0x5c7   :  { %2989 = vmatprep.subr.bf16.mxu1 %v3725_v0 }
 0x5c8   :  { %v3437_v50 = vpop.eup %3436 }
 0x5c9   :  { %v1120_v51 = vmul.f32 %v3437_v50, %v3433_v33  ;;  %v3318_v33 = vld [vmem:[#allocation10 + $0x180] ss:$8 sps:$4 sm:$0xff]   ;;  %v3329_v50 = vld [vmem:[#allocation10 + $0x1b4] ss:$8 sps:$4 sm:$0xff]  }
 0x5ca   :  { %2990 = vmatpush3.bf16.msra.mxu1 %v3317_v23  ;;  %v3344_v23 = vld [vmem:[#allocation10 + $0x204] ss:$8 sps:$4 sm:$0xff]  }
 0x5cb   :  { %v1122_v53 = vpack.c.bf16 %v1120_v51, %v1120_v51  ;;  %2995 = vmatprep.subr.bf16.mxu1 %v3725_v0  ;;  %v3327_v51 = vld [vmem:[#allocation10 + $0x1b0] ss:$8 sps:$4 sm:$0xff]  }
 0x5cd   :  { %2972 = vmatmul.mubr.bf16.vlgmr.msra.gmra.mrb[16].mxu0 %v1122_v53  ;;  %v3332_v53 = vld [vmem:[#allocation10 + $0x1c4] ss:$8 sps:$4 sm:$0xff]  }
 0x5ce   :  { %1738 = vmatpush1.bf16.msra.mxu0 %v3318_v33  ;;  %v3342_v33 = vld [vmem:[#allocation10 + $0x200] ss:$8 sps:$4 sm:$0xff]  }
 0x5cf   :  { %1739 = vmatprep.subr.bf16.mxu0 %v3323_v44  ;;  %v3345_v44 = vld [vmem:[#allocation10 + $0x210] ss:$8 sps:$4 sm:$0xff]  }
 0x5d2   :  { %1740 = vmatpush1.bf16.msra.mxu0 %v3321_v47  ;;  %v3350_v47 = vld [vmem:[#allocation10 + $0x224] ss:$8 sps:$4 sm:$0xff]  }
 0x5d3   :  { %1741 = vmatprep.subr.bf16.mxu0 %v3326_v48  ;;  %v3348_v48 = vld [vmem:[#allocation10 + $0x220] ss:$8 sps:$4 sm:$0xff]  }
 0x5d6   :  { %1742 = vmatpush1.bf16.msra.mxu0 %v3324_v49  ;;  %v3353_v49 = vld [vmem:[#allocation10 + $0x234] ss:$8 sps:$4 sm:$0xff]  }
 0x5d7   :  { %1743 = vmatprep.subr.bf16.mxu0 %v3329_v50  ;;  %v3351_v50 = vld [vmem:[#allocation10 + $0x230] ss:$8 sps:$4 sm:$0xff]  }
 0x5da   :  { %1744 = vmatpush1.bf16.msra.mxu0 %v3327_v51 }
 0x5db   :  { %1745 = vmatprep.subr.bf16.mxu0 %v3332_v53 }
 0x5de   :  { %1746 = vmatpush1.bf16.msra.mxu0 %v3330_v54 }
 0x5df   :  { %1747 = vmatprep.subr.bf16.mxu0 %v3335_v1 }
 0x5e2   :  { %1748 = vmatpush1.bf16.msra.mxu0 %v3333_v2 }
 0x5e3   :  { %1749 = vmatprep.subr.bf16.mxu0 %v3338_v3 }
 0x5e6   :  { %1750 = vmatpush1.bf16.msra.mxu0 %v3336_v5 }
 0x5e7   :  { %1751 = vmatprep.subr.bf16.mxu0 %v3341_v21 }
 0x5ea   :  { %1752 = vmatpush1.bf16.msra.mxu0 %v3339_v22 }
 0x5eb   :  { %1753 = vmatprep.subr.bf16.mxu0 %v3344_v23  ;;  %v3356_v23 = vld [vmem:[#allocation10 + $0x244] ss:$8 sps:$4 sm:$0xff]  }
 0x5ee   :  { %1754 = vmatpush1.bf16.msra.mxu0 %v3342_v33  ;;  %v3354_v33 = vld [vmem:[#allocation10 + $0x240] ss:$8 sps:$4 sm:$0xff]  }
 0x5ef   :  { %1755 = vmatprep.subr.bf16.mxu0 %v3347_v43  ;;  %v3359_v43 = vld [vmem:[#allocation10 + $0x254] ss:$8 sps:$4 sm:$0xff]  }
 0x5f2   :  { %1756 = vmatpush1.bf16.msra.mxu0 %v3345_v44  ;;  %v3357_v44 = vld [vmem:[#allocation10 + $0x250] ss:$8 sps:$4 sm:$0xff]  }
 0x5f3   :  { %1757 = vmatprep.subr.bf16.mxu0 %v3350_v47  ;;  %v3362_v47 = vld [vmem:[#allocation10 + $0x264] ss:$8 sps:$4 sm:$0xff]  }
 0x5f6   :  { %1758 = vmatpush1.bf16.msra.mxu0 %v3348_v48  ;;  %v3360_v48 = vld [vmem:[#allocation10 + $0x260] ss:$8 sps:$4 sm:$0xff]  }
 0x5f7   :  { %1759 = vmatprep.subr.bf16.mxu0 %v3353_v49  ;;  %v3363_v49 = vld [vmem:[#allocation10 + $0x270] ss:$8 sps:$4 sm:$0xff]  }
 0x5fa   :  { %1760 = vmatpush1.bf16.msra.mxu0 %v3351_v50  ;;  %v3365_v50 = vld [vmem:[#allocation10 + $0x274] ss:$8 sps:$4 sm:$0xff]  }
 0x5fb   :  { %1761 = vmatprep.subr.bf16.mxu0 %v3356_v23 }
 0x5fe   :  { %1762 = vmatpush1.bf16.msra.mxu0 %v3354_v33 }
 0x5ff   :  { %1763 = vmatprep.subr.bf16.mxu0 %v3359_v43 }
 0x602   :  { %1764 = vmatpush1.bf16.msra.mxu0 %v3357_v44 }
 0x603   :  { %1765 = vmatprep.subr.bf16.mxu0 %v3362_v47 }
 0x606   :  { %1766 = vmatpush1.bf16.msra.mxu0 %v3360_v48 }
 0x607   :  { %1767 = vmatprep.subr.bf16.mxu0 %v3365_v50 }
 0x60a   :  { %1768 = vmatpush1.bf16.msra.mxu0 %v3363_v49 }
 0x680   :  { %v1205_v51 = vpop.f32.mrb[4].mxu1 }
 0x681   :  { %v2953_v53 = vpop.f32.mrb[5].mxu1 }
 0x682   :  { %v1208_v54 = vpop.f32.mrb[6].mxu1  ;;  %v4211_v53 = vld [vmem:[%s4424_s10] ss:$0 sm:$0xff] }
 0x683   :  { %v2954_v1 = vpop.f32.mrb[7].mxu1 }
 0x6a0   :  { %v1293_v2 = vpop.f32.mrb[16].mxu0 }
 0x6a1   :  { %v1299_v3 = vpack.c.bf16 %v1293_v2, %v1205_v51  ;;  %v2973_v5 = vpop.f32.mrb[17].mxu0  ;;  %v3368_v51 = vld [vmem:[#allocation10 + $0x284] ss:$8 sps:$4 sm:$0xff]  }
 0x6a2   :  { %v1296_v21 = vpop.f32.mrb[18].mxu0  ;;  %1780 = vmatprep.subr.bf16.mxu0 %v3368_v51 }
 0x6a3   :  { %v2974_v22 = vpop.f32.mrb[19].mxu0  ;;  %2992 = vmatmul.mubr.bf16.vlgmr.msra.gmra.mrb[8].mxu1 %v1299_v3 }
 0x6a4   :  { %3011 = vmatprep.mubr.msk.bf16.mxu1 %vm3726_vm0, %v3725_v0 }
 0x776   :  { %v1405_v54 = vpop.f32.mrb[8].mxu1 }
 0x777   :  { %v1406_v1 = vadd.f32 %v4211_v53, %v1405_v54  ;;  %v2993_v2 = vpop.f32.mrb[9].mxu1 }
 0x778   :  { %v1408_v3 = vpop.f32.mrb[10].mxu1 }
 0x779   :  { %v1412_v5 = vadd.f32 %v1406_v1, %v4043_v4  ;;  %v1409_v21 = vadd.f32 %v4211_v53, %v1408_v3  ;;  %v2994_v22 = vpop.f32.mrb[11].mxu1 }
 0x77b   :  { %v1414_v23 = vmul.f32 0.70710677, %v1412_v5  ;;  %v1413_v33 = vadd.f32 %v1409_v21, %v4045_v6 }
 0x77d   :  { %v1416_v43 = vadd.f32 %v1414_v23, %v3978_v52  ;;  %v1415_v44 = vmul.f32 0.70710677, %v1413_v33  ;;  %v3366_v23 = vld [vmem:[#allocation10 + $0x280] ss:$8 sps:$4 sm:$0xff]  }
 0x77f   :  { %v4218_v47 = vmul.f32 0.70710677, %v1416_v43  ;;  %v1417_v48 = vadd.f32 %v1415_v44, %v3980_v55  ;;  %v3371_v43 = vld [vmem:[#allocation10 + $0x294] ss:$8 sps:$4 sm:$0xff]   ;;  %v3369_v44 = vld [vmem:[#allocation10 + $0x290] ss:$8 sps:$4 sm:$0xff]  }
 0x781   :  { %v4221_v49 = vmul.f32 0.70710677, %v1417_v48  ;;  %v1420_v50 = vrot.slane %v4218_v47, 6  ;;  %v1427_v4 = vrot.slane %v4218_v47, 7  ;;  %v3375_v48 = vld [vmem:[#allocation10 + $0x2b0] ss:$8 sps:$4 sm:$0xff]  }
 0x783   :  { %v1421_v51 = vrot.slane %v4221_v49, 6  ;;  %v1428_v54 = vrot.slane %v4221_v49, 7 }
 0x785   :  { %v1429_v6 = vsel %vm401_vm1, %v1427_v4, %v1428_v54  ;;  %v1430_v52 = vsel %vm401_vm1, %v1428_v54, %v1427_v4  ;;  %v1422_v1 = vsel %vm393_vm2, %v1420_v50, %v1421_v51  ;;  %v1423_v55 = vsel %vm393_vm2, %v1421_v51, %v1420_v50  ;;  %v3378_v50 = vld [vmem:[#allocation10 + $0x2c0] ss:$8 sps:$4 sm:$0xff]   ;;  %v3383_v51 = vld [vmem:[#allocation10 + $0x2d4] ss:$8 sps:$4 sm:$0xff]   ;;  %v3381_v4 = vld [vmem:[#allocation10 + $0x2d0] ss:$8 sps:$4 sm:$0xff]  }
 0x786   :  { %v1431_v2 = vsel %vm3984_vm3, 1.0, %v1430_v52  ;;  %v1432_v3 = vsel %vm3988_vm4, 1.0, %v1429_v6  ;;  %v1424_v5 = vsel %vm3992_vm5, 1.0, %v1423_v55  ;;  %v1425_v21 = vsel %vm3996_vm6, 1.0, %v1422_v1  ;;  %v3386_v54 = vld [vmem:[#allocation10 + $0x2e4] ss:$8 sps:$4 sm:$0xff]  }
 0x787   :  { %v1433_v22 = vpack.c.bf16 %v1432_v3, %v1431_v2  ;;  %v1426_v33 = vpack.c.bf16 %v1425_v21, %v1424_v5  ;;  %v3389_v6 = vld [vmem:[#allocation10 + $0x2f4] ss:$8 sps:$4 sm:$0xff]   ;;  %v3387_v52 = vld [vmem:[#allocation10 + $0x2f0] ss:$8 sps:$4 sm:$0xff]   ;;  %v1434_v1 = vpack.c.bf16 %v4221_v49, %v4218_v47 }
 0x788   :  { %v2633_v55 = vld [vmem:[%s4420_s6 + $0x2] sm:$0x3] }
 0x789   :  { %1769 = vmatprep.mubr.bf16.mxu0 %v1433_v22  ;;  %v1494_v2 = vrot.slane %v2633_v55, %v464_v39 }
 0x78a   :  { %1770 = vmatmul.mubr.bf16.vlgmr.msra.gmra.mrb[20].mxu0 %v1426_v33 }
 0x78b   :  { %1781 = vmatpush1.bf16.msra.mxu0 %v3366_v23  ;;  %1812 = vmatprep.mubr.bf16.mxu0 %v3727_v15  ;;  %v3384_v15 = vld [vmem:[#allocation10 + $0x2e0] ss:$8 sps:$4 sm:$0xff]  }
 0x78c   :  { %1782 = vmatprep.subr.bf16.mxu0 %v3371_v43 }
 0x78f   :  { %1783 = vmatpush1.bf16.msra.mxu0 %v3369_v44 }
 0x790   :  { %1784 = vmatprep.subr.bf16.mxu0 %v3374_v57 }
 0x793   :  { %1785 = vmatpush1.bf16.msra.mxu0 %v3372_v58 }
 0x794   :  { %1786 = vmatprep.subr.bf16.mxu0 %v3377_v59 }
 0x797   :  { %1787 = vmatpush1.bf16.msra.mxu0 %v3375_v48 }
 0x798   :  { %1788 = vmatprep.subr.bf16.mxu0 %v3380_v60  ;;  %v1490_v60 = vrot.slane %v2633_v55, %v460_v62 }
 0x79b   :  { %1789 = vmatpush1.bf16.msra.mxu0 %v3378_v50 }
 0x79c   :  { %1790 = vmatprep.subr.bf16.mxu0 %v3383_v51 }
 0x79f   :  { %1791 = vmatpush1.bf16.msra.mxu0 %v3381_v4 }
 0x7a0   :  { %1792 = vmatprep.subr.bf16.mxu0 %v3386_v54 }
 0x7a3   :  { %1793 = vmatpush1.bf16.msra.mxu0 %v3384_v15 }
 0x7a4   :  { %1794 = vmatprep.subr.bf16.mxu0 %v3389_v6 }
 0x7a7   :  { %1795 = vmatpush1.bf16.msra.mxu0 %v3387_v52 }
 0x7a8   :  { %3055 = vmatprep.subr.bf16.mxu0 %v3725_v0 }
 0x7aa   :  { %1813 = vmatmul.mubr.bf16.vlgmr.msra.gmra.mrb[20].mxu0 %v1434_v1 }
 0x7ab   :  { %3056 = vmatpush3.bf16.msra.mxu0 %v4133_v56  ;;  %3071 = vmatprep.mubr.msk.bf16.mxu0 %vm3726_vm0, %v3725_v0  ;;  %v3390_v56 = vld [vmem:[#allocation11] sm:$0xff]  }
 0x7ac   :  { %3057 = vmatprep.subr.bf16.mxu0 %v3725_v0  ;;  %2996 = vmatpush3.bf16.msra.mxu1 %v3390_v56 }
 0x7ad   :  { %2997 = vmatprep.subr.bf16.mxu1 %v3725_v0 }
 0x7af   :  { %3058 = vmatpush3.bf16.msra.mxu0 %v4136_v45  ;;  %v3391_v45 = vld [vmem:[#allocation11 + $0x8] sm:$0xff]  }
 0x7b0   :  { %3059 = vmatprep.subr.bf16.mxu0 %v3725_v0  ;;  %2998 = vmatpush3.bf16.msra.mxu1 %v3391_v45 }
 0x7b1   :  { %2999 = vmatprep.subr.bf16.mxu1 %v3725_v0 }
 0x7b3   :  { %3060 = vmatpush3.bf16.msra.mxu0 %v4140_v61  ;;  %v3392_v61 = vld [vmem:[#allocation11 + $0x10] sm:$0xff]  }
 0x7b4   :  { %3061 = vmatprep.subr.bf16.mxu0 %v3725_v0  ;;  %3000 = vmatpush3.bf16.msra.mxu1 %v3392_v61 }
 0x7b5   :  { %3001 = vmatprep.subr.bf16.mxu1 %v3725_v0 }
 0x7b7   :  { %3062 = vmatpush3.bf16.msra.mxu0 %v4144_v63  ;;  %v3393_v63 = vld [vmem:[#allocation11 + $0x18] sm:$0xff]  }
 0x7b8   :  { %3063 = vmatprep.subr.bf16.mxu0 %v3725_v0  ;;  %3002 = vmatpush3.bf16.msra.mxu1 %v3393_v63 }
 0x7b9   :  { %3003 = vmatprep.subr.bf16.mxu1 %v3725_v0 }
 0x7bb   :  { %3064 = vmatpush3.bf16.msra.mxu0 %v4149_v8  ;;  %v3394_v8 = vld [vmem:[#allocation11 + $0x20] sm:$0xff]  }
 0x7bc   :  { %3065 = vmatprep.subr.bf16.mxu0 %v3725_v0  ;;  %3004 = vmatpush3.bf16.msra.mxu1 %v3394_v8 }
 0x7bd   :  { %3005 = vmatprep.subr.bf16.mxu1 %v3725_v0 }
 0x7bf   :  { %3066 = vmatpush3.bf16.msra.mxu0 %v4152_v19  ;;  %v3395_v19 = vld [vmem:[#allocation11 + $0x28] sm:$0xff]  }
 0x7c0   :  { %3067 = vmatprep.subr.bf16.mxu0 %v3725_v0  ;;  %3006 = vmatpush3.bf16.msra.mxu1 %v3395_v19 }
 0x7c1   :  { %3007 = vmatprep.subr.bf16.mxu1 %v3725_v0 }
 0x7c3   :  { %3068 = vmatpush3.bf16.msra.mxu0 %v4156_v24  ;;  %v3396_v24 = vld [vmem:[#allocation11 + $0x30] sm:$0xff]  }
 0x7c4   :  { %3069 = vmatprep.subr.bf16.mxu0 %v3725_v0  ;;  %3008 = vmatpush3.bf16.msra.mxu1 %v3396_v24 }
 0x7c5   :  { %3009 = vmatprep.subr.bf16.mxu1 %v3725_v0 }
 0x7c7   :  { %3070 = vmatpush3.bf16.msra.mxu0 %v4160_v25  ;;  %v3397_v25 = vld [vmem:[#allocation11 + $0x38] sm:$0xff]  }
 0x7c8   :  { %3095 = vmatprep.subr.bf16.mxu0 %v3725_v0  ;;  %3010 = vmatpush3.bf16.msra.mxu1 %v3397_v25 }
 0x7c9   :  { %3015 = vmatprep.subr.bf16.mxu1 %v3725_v0 }
 0x87d   :  { %v1814_v3 = vpop.f32.mrb[20].mxu0 }
 0x87e   :  { %v1816_v5 = vpop.f32.mrb[21].mxu0  ;;  %v3159_v39 = vadd.f32 %v1814_v3, %v1490_v60  ;;  %v3398_v3 = vld [vmem:[#allocation13] sm:$0xff]  }
 0x87f   :  { %v3160_v21 = vadd.f32 %v1816_v5, %v1494_v2  ;;  %v1818_v22 = vpop.f32.mrb[22].mxu0  ;;  %v3399_v5 = vld [vmem:[#allocation13 + $0x8] sm:$0xff]  }
 0x880   :  { %v1820_v23 = vpop.f32.mrb[23].mxu0  ;;  %v3161_v51 = vadd.f32 %v1818_v22, %v1490_v60  ;;  %v3401_v22 = vld [vmem:[#allocation13 + $0x18] sm:$0xff]  }
 0x881   :  { %v2682_v33 = vmul.f32 -1.442695, %v3160_v21  ;;  %v3162_v43 = vadd.f32 %v1820_v23, %v1494_v2  ;;  %v3400_v21 = vld [vmem:[#allocation13 + $0x10] sm:$0xff]   ;;  %v3402_v23 = vld [vmem:[#allocation13 + $0x20] sm:$0xff]  }
 0x883   :  { %3438 = vpow2.f32 %v2682_v33  ;;  %v2683_v44 = vmul.f32 -1.442695, %v3162_v43  ;;  %v3403_v33 = vld [vmem:[#allocation13 + $0x28] sm:$0xff]   ;;  %v3404_v43 = vld [vmem:[#allocation13 + $0x30] sm:$0xff]  }
 0x885   :  { %3440 = vpow2.f32 %v2683_v44  ;;  %v3405_v44 = vld [vmem:[#allocation13 + $0x38] sm:$0xff]  }
 0x88d   :  { %v3439_v57 = vpop.eup %3438 }
 0x88e   :  { %v1829_v58 = vadd.f32 1.0, %v3439_v57  ;;  %v3406_v57 = vld [vmem:[#allocation14] sm:$0xff]  }
 0x88f   :  { %v3441_v59 = vpop.eup %3440 }
 0x890   :  { %3442 = vrcp.f32 %v1829_v58  ;;  %v1830_v48 = vadd.f32 1.0, %v3441_v59  ;;  %v3407_v58 = vld [vmem:[#allocation14 + $0x8] sm:$0xff]   ;;  %v3408_v59 = vld [vmem:[#allocation14 + $0x10] sm:$0xff]  }
 0x892   :  { %3444 = vrcp.f32 %v1830_v48  ;;  %v3409_v48 = vld [vmem:[#allocation14 + $0x18] sm:$0xff]  }
 0x89a   :  { %v3443_v50 = vpop.eup %3442 }
 0x89b   :  { %v4280_v4 = vmul.f32 %v3443_v50, %v3159_v39 }
 0x89c   :  { %v3445_v54 = vpop.eup %3444 }
 0x89d   :  { %v4282_v15 = vmul.f32 %v3445_v54, %v3161_v51 }
 0x89f   :  { %v1837_v6 = vpack.c.bf16 %v4282_v15, %v4280_v4 }
 0x8a1   :  { %3012 = vmatmul.mubr.bf16.vlgmr.msra.gmra.mrb[12].mxu1 %v1837_v6 }
 0x8a2   :  { %3016 = vmatpush3.bf16.msra.mxu1 %v4047_v7  ;;  %3031 = vmatprep.mubr.msk.bf16.mxu1 %vm3726_vm0, %v3725_v0 }
 0x8a3   :  { %3017 = vmatprep.subr.bf16.mxu1 %v3725_v0 }
 0x8a6   :  { %3018 = vmatpush3.bf16.msra.mxu1 %v4052_v9 }
 0x8a7   :  { %3019 = vmatprep.subr.bf16.mxu1 %v3725_v0 }
 0x8aa   :  { %3020 = vmatpush3.bf16.msra.mxu1 %v4058_v10  ;;  %v3454_v10 = vld [vmem:[#allocation2] sm:$0xff] }
 0x8ab   :  { %3021 = vmatprep.subr.bf16.mxu1 %v3725_v0 }
 0x8ae   :  { %3022 = vmatpush3.bf16.msra.mxu1 %v4062_v11 }
 0x8af   :  { %3023 = vmatprep.subr.bf16.mxu1 %v3725_v0 }
 0x8b2   :  { %3024 = vmatpush3.bf16.msra.mxu1 %v4066_v12 }
 0x8b3   :  { %3025 = vmatprep.subr.bf16.mxu1 %v3725_v0 }
 0x8b6   :  { %3026 = vmatpush3.bf16.msra.mxu1 %v4070_v13 }
 0x8b7   :  { %3027 = vmatprep.subr.bf16.mxu1 %v3725_v0 }
 0x8ba   :  { %3028 = vmatpush3.bf16.msra.mxu1 %v4075_v14 }
 0x8bb   :  { %3029 = vmatprep.subr.bf16.mxu1 %v3725_v0 }
 0x8be   :  { %3030 = vmatpush3.bf16.msra.mxu1 %v4079_v16  ;;  %v3455_v16 = vld [vmem:[#allocation2 + $0x8] sm:$0xff] }
 0x8bf   :  { %3035 = vmatprep.subr.bf16.mxu1 %v3725_v0 }
 0x974   :  { %v1943_v46 = vpop.f32.mrb[12].mxu1 }
 0x975   :  { %v1944_v62 = vadd.f32 %v4086_v17, %v1943_v46  ;;  %v3013_v7 = vpop.f32.mrb[13].mxu1 }
 0x976   :  { %v1946_v9 = vpop.f32.mrb[14].mxu1 }
 0x977   :  { %v1950_v11 = vadd.f32 %v3454_v10, %v1944_v62  ;;  %v3014_v12 = vpop.f32.mrb[15].mxu1  ;;  %v1947_v14 = vadd.f32 %v4086_v17, %v1946_v9  ;;  %v3410_v9 = vld [vmem:[#allocation14 + $0x20] sm:$0xff]   ;;  %v3411_v10 = vld [vmem:[#allocation14 + $0x28] sm:$0xff]  }
 0x978   :  { %v3413_v12 = vld [vmem:[#allocation14 + $0x38] sm:$0xff]  }
 0x979   :  { %v1952_v52 = vmul.f32 0.70710677, %v1950_v11  ;;  %v3412_v11 = vld [vmem:[#allocation14 + $0x30] sm:$0xff]  }
 0x97b   :  { %v1954_v13 = vpack.c.bf16 %v1952_v52, %v1952_v52  ;;  %v3414_v52 = vld [vmem:[#allocation16] sm:$0xff]  }
 0x97d   :  { %3032 = vmatmul.mubr.bf16.vlgmr.msra.gmra.mrb[16].mxu1 %v1954_v13  ;;  %v3415_v13 = vld [vmem:[#allocation16 + $0x8] sm:$0xff]  }
 0x97e   :  { %3036 = vmatpush3.bf16.msra.mxu1 %v4090_v27  ;;  %3051 = vmatprep.mubr.msk.bf16.mxu1 %vm3726_vm0, %v3725_v0  ;;  %v1951_v27 = vadd.f32 %v3455_v16, %v1947_v14  ;;  %v3416_v14 = vld [vmem:[#allocation16 + $0x10] sm:$0xff]   ;;  %v3417_v16 = vld [vmem:[#allocation16 + $0x18] sm:$0xff]  }
 0x97f   :  { %3037 = vmatprep.subr.bf16.mxu1 %v3725_v0 }
 0x982   :  { %3038 = vmatpush3.bf16.msra.mxu1 %v4093_v29  ;;  %v1953_v29 = vmul.f32 0.70710677, %v1951_v27  ;;  %v3418_v27 = vld [vmem:[#allocation16 + $0x20] sm:$0xff]  }
 0x983   :  { %3039 = vmatprep.subr.bf16.mxu1 %v3725_v0 }
 0x986   :  { %3040 = vmatpush3.bf16.msra.mxu1 %v4099_v30  ;;  %v1955_v30 = vpack.c.bf16 %v1953_v29, %v1953_v29  ;;  %v3419_v29 = vld [vmem:[#allocation16 + $0x28] sm:$0xff]  }
 0x987   :  { %3041 = vmatprep.subr.bf16.mxu1 %v3725_v0 }
 0x98a   :  { %3042 = vmatpush3.bf16.msra.mxu1 %v4103_v18 }
 0x98b   :  { %3043 = vmatprep.subr.bf16.mxu1 %v3725_v0 }
 0x98e   :  { %3044 = vmatpush3.bf16.msra.mxu1 %v4107_v31 }
 0x98f   :  { %3045 = vmatprep.subr.bf16.mxu1 %v3725_v0 }
 0x992   :  { %3046 = vmatpush3.bf16.msra.mxu1 %v4111_v32 }
 0x993   :  { %3047 = vmatprep.subr.bf16.mxu1 %v3725_v0 }
 0x996   :  { %3048 = vmatpush3.bf16.msra.mxu1 %v4116_v34 }
 0x997   :  { %3049 = vmatprep.subr.bf16.mxu1 %v3725_v0 }
 0x99a   :  { %3050 = vmatpush3.bf16.msra.mxu1 %v4121_v36 }
 0x99b   :  { %3075 = vmatprep.subr.bf16.mxu1 %v3725_v0 }
 0x99d   :  { %3052 = vmatmul.mubr.bf16.vlgmr.msra.gmra.mrb[20].mxu1 %v1955_v30 }
 0x99e   :  { %3076 = vmatpush3.bf16.msra.mxu1 %v4164_v26  ;;  %3091 = vmatprep.mubr.msk.bf16.mxu1 %vm3726_vm0, %v3725_v0 }
 0x99f   :  { %3077 = vmatprep.subr.bf16.mxu1 %v3725_v0 }
 0x9a2   :  { %3078 = vmatpush3.bf16.msra.mxu1 %v4168_v28 }
 0x9a3   :  { %3079 = vmatprep.subr.bf16.mxu1 %v3725_v0 }
 0x9a6   :  { %3080 = vmatpush3.bf16.msra.mxu1 %v4172_v35 }
 0x9a7   :  { %3081 = vmatprep.subr.bf16.mxu1 %v3725_v0 }
 0x9aa   :  { %3082 = vmatpush3.bf16.msra.mxu1 %v4176_v37 }
 0x9ab   :  { %3083 = vmatprep.subr.bf16.mxu1 %v3725_v0 }
 0x9ae   :  { %3084 = vmatpush3.bf16.msra.mxu1 %v4181_v38 }
 0x9af   :  { %3085 = vmatprep.subr.bf16.mxu1 %v3725_v0 }
 0x9b2   :  { %3086 = vmatpush3.bf16.msra.mxu1 %v4184_v20 }
 0x9b3   :  { %3087 = vmatprep.subr.bf16.mxu1 %v3725_v0 }
 0x9b6   :  { %3088 = vmatpush3.bf16.msra.mxu1 %v4188_v40 }
 0x9b7   :  { %3089 = vmatprep.subr.bf16.mxu1 %v3725_v0 }
 0x9ba   :  { %3090 = vmatpush3.bf16.msra.mxu1 %v4192_v42 }
 0x9bb   :  { %3115 = vmatprep.subr.bf16.mxu1 %v3725_v0 }
 0xa50   :  { %v1990_v17 = vpop.f32.mrb[16].mxu1 }
 0xa51   :  { %v1991_v18 = vadd.f32 %v1990_v17, %v4129_v41  ;;  %v3033_v31 = vpop.f32.mrb[17].mxu1 }
 0xa52   :  { %v1993_v32 = vpop.f32.mrb[18].mxu1 }
 0xa53   :  { %2036 = vmax.xlane.f32.xlu0 %v1991_v18  ;;  %v3034_v34 = vpop.f32.mrb[19].mxu1 }
 0xa70   :  { %v2030_v36 = vpop.f32.mrb[20].mxu1 }
 0xa71   :  { %v2031_v26 = vadd.f32 %v2030_v36, %v4129_v41  ;;  %v3053_v28 = vpop.f32.mrb[21].mxu1 }
 0xa72   :  { %v2033_v35 = vpop.f32.mrb[22].mxu1 }
 0xa73   :  { %2038 = vmax.xlane.f32.xlu1 %v2031_v26  ;;  %v3054_v37 = vpop.f32.mrb[23].mxu1 }
 0xae0   :  { %v2037_v38 = vpop.xlane.xlu0 %2036 }
 0xae1   :  { %v2040_v20 = vsub.f32 %v1991_v18, %v2037_v38 }
 0xae3   :  { %v2042_v40 = vmul.f32 1.442695, %v2040_v20 }
 0xae5   :  { %3446 = vpow2.f32 %v2042_v40 }
 0xaef   :  { %v3447_v42 = vpop.eup %3446 }
 0xaf0   :  { %2046 = vadd.xlane.f32.xlu0 %v3447_v42 }
 0xb00   :  { %v2039_v1 = vpop.xlane.xlu1 %2038 }
 0xb01   :  { %v2041_v56 = vsub.f32 %v2031_v26, %v2039_v1  ;;  %v3420_v1 = vld [vmem:[#allocation16 + $0x30] sm:$0xff]  }
 0xb03   :  { %v2044_v45 = vmul.f32 1.442695, %v2041_v56 }
 0xb05   :  { %3448 = vpow2.f32 %v2044_v45 }
 0xb0f   :  { %v3449_v61 = vpop.eup %3448 }
 0xb10   :  { %2048 = vadd.xlane.f32.xlu1 %v3449_v61 }
 0xb7d   :  { %v2047_v63 = vpop.xlane.xlu0 %2046 }
 0xb7e   :  { %3450 = vrcp.f32 %v2047_v63 }
 0xb88   :  { %v3451_v8 = vpop.eup %3450 }
 0xb89   :  { %v2052_v41 = vmul.f32 %v3451_v8, %v3447_v42 }
 0xb8b   :  { %v2054_v19 = vpack.c.bf16 %v2052_v41, %v2052_v41  ;;  %2485 = vst [vmem:[#allocation18] sm:$0xff] %v2052_v41 }
 0xb8d   :  { %3072 = vmatmul.mubr.bf16.vlgmr.msra.gmra.mrb[24].mxu0 %v2054_v19 }
 0xb8e   :  { %3111 = vmatprep.mubr.msk.bf16.mxu0 %vm3726_vm0, %v3725_v0  ;;  %3096 = vmatpush3.bf16.msra.mxu0 %v3398_v3 }
 0xb8f   :  { %3097 = vmatprep.subr.bf16.mxu0 %v3725_v0 }
 0xb92   :  { %3098 = vmatpush3.bf16.msra.mxu0 %v3399_v5 }
 0xb93   :  { %3099 = vmatprep.subr.bf16.mxu0 %v3725_v0 }
 0xb96   :  { %3100 = vmatpush3.bf16.msra.mxu0 %v3400_v21 }
 0xb97   :  { %3101 = vmatprep.subr.bf16.mxu0 %v3725_v0 }
 0xb9a   :  { %3102 = vmatpush3.bf16.msra.mxu0 %v3401_v22 }
 0xb9b   :  { %3103 = vmatprep.subr.bf16.mxu0 %v3725_v0 }
 0xb9d   :  { %v2049_v24 = vpop.xlane.xlu1 %2048 }
 0xb9e   :  { %3452 = vrcp.f32 %v2049_v24  ;;  %3104 = vmatpush3.bf16.msra.mxu0 %v3402_v23 }
 0xb9f   :  { %3105 = vmatprep.subr.bf16.mxu0 %v3725_v0 }
 0xba2   :  { %3106 = vmatpush3.bf16.msra.mxu0 %v3403_v33 }
 0xba3   :  { %3107 = vmatprep.subr.bf16.mxu0 %v3725_v0 }
 0xba6   :  { %3108 = vmatpush3.bf16.msra.mxu0 %v3404_v43 }
 0xba7   :  { %3109 = vmatprep.subr.bf16.mxu0 %v3725_v0 }
 0xba8   :  { %v3453_v25 = vpop.eup %3452 }
 0xba9   :  { %v2053_v55 = vmul.f32 %v3453_v25, %v3449_v61 }
 0xbaa   :  { %3110 = vmatpush3.bf16.msra.mxu0 %v3405_v44 }
 0xbab   :  { %v2055_v2 = vpack.c.bf16 %v2053_v55, %v2053_v55  ;;  %2486 = vst [vmem:[#allocation18 + $0x8] sm:$0xff] %v2053_v55  ;;  %3135 = vmatprep.subr.bf16.mxu0 %v3725_v0 }
 0xbad   :  { %3092 = vmatmul.mubr.bf16.vlgmr.msra.gmra.mrb[24].mxu1 %v2055_v2 }
 0xbae   :  { %3131 = vmatprep.mubr.msk.bf16.mxu1 %vm3726_vm0, %v3725_v0  ;;  %3116 = vmatpush3.bf16.msra.mxu1 %v3406_v57 }
 0xbaf   :  { %3117 = vmatprep.subr.bf16.mxu1 %v3725_v0 }
 0xbb2   :  { %3118 = vmatpush3.bf16.msra.mxu1 %v3407_v58 }
 0xbb3   :  { %3119 = vmatprep.subr.bf16.mxu1 %v3725_v0 }
 0xbb6   :  { %3120 = vmatpush3.bf16.msra.mxu1 %v3408_v59 }
 0xbb7   :  { %3121 = vmatprep.subr.bf16.mxu1 %v3725_v0 }
 0xbba   :  { %3122 = vmatpush3.bf16.msra.mxu1 %v3409_v48 }
 0xbbb   :  { %3123 = vmatprep.subr.bf16.mxu1 %v3725_v0 }
 0xbbe   :  { %3124 = vmatpush3.bf16.msra.mxu1 %v3410_v9 }
 0xbbf   :  { %3125 = vmatprep.subr.bf16.mxu1 %v3725_v0 }
 0xbc2   :  { %3126 = vmatpush3.bf16.msra.mxu1 %v3411_v10 }
 0xbc3   :  { %3127 = vmatprep.subr.bf16.mxu1 %v3725_v0 }
 0xbc6   :  { %3128 = vmatpush3.bf16.msra.mxu1 %v3412_v11 }
 0xbc7   :  { %3129 = vmatprep.subr.bf16.mxu1 %v3725_v0 }
 0xbca   :  { %3130 = vmatpush3.bf16.msra.mxu1 %v3413_v12 }
 0xc60   :  { %v2090_v60 = vpop.f32.mrb[24].mxu0 }
 0xc61   :  { %v3073_v39 = vpop.f32.mrb[25].mxu0 }
 0xc62   :  { %v2093_v50 = vpop.f32.mrb[26].mxu0 }
 0xc63   :  { %v3074_v51 = vpop.f32.mrb[27].mxu0 }
 0xc80   :  { %v2130_v54 = vpop.f32.mrb[24].mxu1 }
 0xc81   :  { %v2136_v6 = vpack.c.bf16 %v2130_v54, %v2090_v60  ;;  %v3093_v46 = vpop.f32.mrb[25].mxu1 }
 0xc82   :  { %v2133_v62 = vpop.f32.mrb[26].mxu1 }
 0xc83   :  { %v3094_v7 = vpop.f32.mrb[27].mxu1  ;;  %3112 = vmatmul.mubr.bf16.vlgmr.msra.gmra.mrb[28].mxu0 %v2136_v6 }
 0xc84   :  { %3151 = vmatprep.mubr.msk.bf16.mxu0 %vm3726_vm0, %v3725_v0  ;;  %3136 = vmatpush3.bf16.msra.mxu0 %v3414_v52 }
 0xc85   :  { %3137 = vmatprep.subr.bf16.mxu0 %v3725_v0 }
 0xc88   :  { %3138 = vmatpush3.bf16.msra.mxu0 %v3415_v13 }
 0xc89   :  { %3139 = vmatprep.subr.bf16.mxu0 %v3725_v0 }
 0xc8c   :  { %3140 = vmatpush3.bf16.msra.mxu0 %v3416_v14 }
 0xc8d   :  { %3141 = vmatprep.subr.bf16.mxu0 %v3725_v0 }
 0xc90   :  { %3142 = vmatpush3.bf16.msra.mxu0 %v3417_v16 }
 0xc91   :  { %3143 = vmatprep.subr.bf16.mxu0 %v3725_v0 }
 0xc94   :  { %3144 = vmatpush3.bf16.msra.mxu0 %v3418_v27 }
 0xc95   :  { %3145 = vmatprep.subr.bf16.mxu0 %v3725_v0 }
 0xc98   :  { %3146 = vmatpush3.bf16.msra.mxu0 %v3419_v29 }
 0xc99   :  { %3147 = vmatprep.subr.bf16.mxu0 %v3725_v0 }
 0xc9c   :  { %3148 = vmatpush3.bf16.msra.mxu0 %v3420_v1 }
 0xc9d   :  { %3149 = vmatprep.subr.bf16.mxu0 %v3725_v0 }
 0xd56   :  { %v2242_v30 = vpop.f32.mrb[28].mxu0 }
 0xd57   :  { %v2243_v17 = vadd.f32 %v4211_v53, %v2242_v30  ;;  %v3113_v18 = vpop.f32.mrb[29].mxu0 }
 0xd58   :  { %v2245_v31 = vpop.f32.mrb[30].mxu0 }
 0xd59   :  { %v2249_v32 = vadd.f32 %v2243_v17, %v4280_v4  ;;  %v2246_v34 = vadd.f32 %v4211_v53, %v2245_v31  ;;  %v3114_v36 = vpop.f32.mrb[31].mxu0  ;;  %v3421_v4 = vld [vmem:[#allocation16 + $0x38] sm:$0xff]   ;;  %v2702_v53 = vld [vmem:[%s4426_s12] ss:$0 sm:$0xff] }
 0xd5a   :  { %3150 = vmatpush3.bf16.msra.mxu0 %v3421_v4 }
 0xd5b   :  { %v2251_v26 = vmul.f32 0.70710677, %v2249_v32  ;;  %v2250_v28 = vadd.f32 %v2246_v34, %v4282_v15 }
 0xd5d   :  { %v2253_v35 = vadd.f32 %v2251_v26, %v4218_v47  ;;  %v2252_v37 = vmul.f32 0.70710677, %v2250_v28 }
 0xd5f   :  { %v2254_v38 = vadd.f32 %v2252_v37, %v4221_v49  ;;  %v2255_v20 = vmul.f32 0.70710677, %v2253_v35 }
 0xd61   :  { %v2256_v40 = vmul.f32 0.70710677, %v2254_v38 }
 0xd63   :  { %v2257_v42 = vpack.c.bf16 %v2256_v40, %v2255_v20 }
 0xd65   :  { %3132 = vmatmul.mubr.bf16.vlgmr.msra.gmra.mrb[28].mxu1 %v2257_v42 }
 0xe38   :  { %v2363_v15 = vpop.f32.mrb[28].mxu1 }
 0xe39   :  { %v3133_v56 = vpop.f32.mrb[29].mxu1  ;;  %v2364_v45 = vadd.f32 %v2702_v53, %v2363_v15 }
 0xe3a   :  { %v2366_v47 = vpop.f32.mrb[30].mxu1 }
 0xe3b   :  { %v2367_v61 = vadd.f32 %v2702_v53, %v2366_v47  ;;  %v3134_v49 = vpop.f32.mrb[31].mxu1 }
 0xe3d   :  { %v2370_v63 = vpack.c.bf16 %v2367_v61, %v2364_v45 }
 0xe3f   :  { %3152 = vmatmul.mubr.bf16.vlgmr.msra.gmra.mrb[32].mxu0 %v2370_v63 }
 0xe40   :  { %3665 = shalt.err (!%p3662_p6)
}
 0xe41   :  { %s3666_s29 = scalar_lea.hbm %s4430_s16, 256 }
 0xe42   :  { %p3667_p7 = scmp.ne.s32.totalorder %s4430_s16, %s3666_s29  ;;  %p3670_p8 = scmp.lt.u32.totalorder %s3666_s29, %s4430_s16 }
 0xe44   :  { %p3672_p9 = pnand %p3670_p8, %p3667_p7 }
 0xe46   :  { %3675 = shalt.err (!%p3672_p9)
}
 0xe47   :  { %2510 = dma.vmem_to_hbm [thread:$0]  %s2505_s5, 256, %s4430_s16, [#allocation19], %s3719_s11, %s3719_s11, %s3720_s30  }
 0xe48   :  { %v2711_v0 = vld [vmem:[%s4428_s14] ss:$0 sm:$0xff]  ;;  %s3730_s19 = smov [#allocation17]  }
 0xe49   :  { %s2492_s13 = sshll.u32 %s3730_s19, 4  ;;  %s2493_s13 = int_to_ptr.vmem [resolvable:$true] %s2492_s13 }
 0xe4a   :  { %s3676_s0 = scalar_lea.vmem %s2493_s13, 256  ;;  %p3681_p11 = scmp.lt.s32.totalorder %s2493_s13, %s2493_s13 }
 0xe4b   :  { %p3677_p10 = scmp.ne.s32.totalorder %s2493_s13, %s3676_s0  ;;  %p3682_p12 = scmp.lt.s32.totalorder %s3676_s0, %s3676_s0 }
 0xe4d   :  { %p3683_p13 = por %p3682_p12, %p3681_p11 }
 0xe4f   :  { %p3684_p0 = pnand %p3683_p13, %p3677_p10 }
 0xf12   :  { %v2476_v8 = vpop.f32.mrb[32].mxu0 }
 0xf13   :  { %v2477_v41 = vadd.f32 %v2711_v0, %v2476_v8  ;;  %v3153_v19 = vpop.f32.mrb[33].mxu0 }
 0xf14   :  { %v2479_v24 = vpop.f32.mrb[34].mxu0 }
 0xf15   :  { %2483 = vst [vmem:[#allocation17] sm:$0xff] %v2477_v41  ;;  %v2480_v25 = vadd.f32 %v2711_v0, %v2479_v24  ;;  %v3154_v55 = vpop.f32.mrb[35].mxu0 }
 0xf17   :  { %2484 = vst [vmem:[#allocation17 + $0x8] sm:$0xff] %v2480_v25 }
 0xf18   :  { %3687 = shalt.err (!%p3684_p0)
}
 0xf19   :  { %s4444_s4 = sld [smem:[#allocation28_spill]] }
 0xf1f   :  { %s3688_s17 = scalar_lea.hbm %s4444_s4, 256 }
 0xf20   :  { %p3689_p1 = scmp.ne.s32.totalorder %s4444_s4, %s3688_s17  ;;  %p3692_p2 = scmp.lt.u32.totalorder %s3688_s17, %s4444_s4 }
 0xf22   :  { %p3694_p3 = pnand %p3692_p2, %p3689_p1 }
 0xf24   :  { %3697 = shalt.err (!%p3694_p3)
}
 0xf25   :  { %2498 = dma.vmem_to_hbm [thread:$0]  %s2493_s13, 256, %s4444_s4, [#allocation4], %s3719_s11, %s3719_s11, %s3720_s30  }
 0xf26   :  { %3708 = dma.done.wait [#allocation4], 256  }
 0xf27   :  { %3709 = vsyncadd [#allocation4], 4294967040 }
 0xf28   :  { %3710 = dma.done.wait [#allocation19], 256  }
 0xf29   :  { %3711 = vsyncadd [#allocation19], 4294967040 }
 0xf2a   :  { %2517 = vsyncpa [#allocation3], 1 }
 0xf2b   :  { %2518 = vsyncpa [#allocation6], 1 }
 0xf2c   :  { %2519 = vsyncpa [#allocation9], 1 }
 0xf2d   :  { %2520 = vsyncpa [#allocation12], 1 }
 0xf2e   :  { %2521 = vsyncpa [#allocation15], 1 }
 0xf2f   :  { %2522 = vsyncpa [#allocation4], 1 }
 0xf30   :  { %2523 = vsyncpa [#allocation19], 1 }

// kernel: tpu_custom_call.1
= control target key start
LH: loop header
LB: loop body
LE: loop exit
PB: predicated region body
PF: predicated region fallthrough
CT: control target
= control target key end

     0   :  { %s4414_s0 = inlined_call_operand.hbm [shape: f32[16,128], index: 0, kind: input, shape index: {}]   ;;  %s4415_s1 = inlined_call_operand.hbm [shape: bf16[2,128,128], index: 1, kind: input, shape index: {}]   ;;  %s4416_s2 = inlined_call_operand.hbm [shape: bf16[2,128,128], index: 2, kind: input, shape index: {}]   ;;  %s4417_s3 = inlined_call_operand.hbm [shape: bf16[128,128], index: 3, kind: input, shape index: {}]   ;;  %s4418_s4 = inlined_call_operand.vmem [shape: f32[1,128], index: 4, kind: input, shape index: {}]   ;;  %s4419_s5 = inlined_call_operand.hbm [shape: bf16[2,384,256], index: 5, kind: input, shape index: {}]   ;;  %s4420_s6 = inlined_call_operand.vmem [shape: f32[2,1,256], index: 6, kind: input, shape index: {}]   ;;  %s4421_s7 = inlined_call_operand.hbm [shape: bf16[128,128], index: 7, kind: input, shape index: {}]   ;;  %s4422_s8 = inlined_call_operand.vmem [shape: f32[1,128], index: 8, kind: input, shape index: {}]   ;;  %s4423_s9 = inlined_call_operand.hbm [shape: bf16[128,128], index: 9, kind: input, shape index: {}]   ;;  %s4424_s10 = inlined_call_operand.vmem [shape: f32[1,128], index: 10, kind: input, shape index: {}]   ;;  %s4425_s11 = inlined_call_operand.hbm [shape: bf16[128,128], index: 11, kind: input, shape index: {}]   ;;  %s4426_s12 = inlined_call_operand.vmem [shape: f32[1,128], index: 12, kind: input, shape index: {}]   ;;  %s4427_s13 = inlined_call_operand.hbm [shape: bf16[128,128], index: 13, kind: input, shape index: {}]   ;;  %s4428_s14 = inlined_call_operand.vmem [shape: f32[1,128], index: 14, kind: input, shape index: {}]   ;;  %s4429_s15 = inlined_call_operand.hbm [shape: f32[16,128], index: 15, kind: output, shape index: {0}]   ;;  %s4430_s16 = inlined_call_operand.hbm [shape: f32[16,128], index: 16, kind: output, shape index: {1}]  }
   0x1   :  { %4433 = sst [smem:[#allocation27_spill]] %s4414_s0 }
   0x2   :  { %4434 = sst [smem:[#allocation28_spill]] %s4429_s15 }
   0x3   :  { %22 = vsyncpa [#allocation3], 0 }
   0x4   :  { %23 = vsyncpa [#allocation6], 0 }
   0x5   :  { %24 = vsyncpa [#allocation9], 0 }
   0x6   :  { %25 = vsyncpa [#allocation12], 0 }
   0x7   :  { %26 = vsyncpa [#allocation15], 0 }
   0x8   :  { %27 = vsyncpa [#allocation4], 0 }
   0x9   :  { %28 = vsyncpa [#allocation19], 0  ;;  %s3712_s21 = smov [#allocation5]   ;;  %s3456_s25 = scalar_lea.hbm %s4415_s1, 2048 }
   0xa   :  { %s46_s22 = sshll.u32 %s3712_s21, 4  ;;  %p3457_p0 = scmp.ne.s32.totalorder %s4415_s1, %s3456_s25  ;;  %s47_s22 = int_to_ptr.vmem [resolvable:$true] %s46_s22 }
   0xb   :  { %p3460_p1 = scmp.lt.u32.totalorder %s3456_s25, %s4415_s1 }
   0xd   :  { %p3462_p2 = pnand %p3460_p1, %p3457_p0 }
   0xf   :  { %3465 = shalt.err (!%p3462_p2)
}
  0x10   :  { %s3466_s30 = scalar_lea.vmem %s47_s22, 2048  ;;  %p3471_p4 = scmp.lt.s32.totalorder %s47_s22, %s47_s22 }
  0x11   :  { %p3467_p3 = scmp.ne.s32.totalorder %s47_s22, %s3466_s30  ;;  %p3472_p5 = scmp.lt.s32.totalorder %s3466_s30, %s3466_s30 }
  0x13   :  { %p3473_p6 = por %p3472_p5, %p3471_p4 }
  0x15   :  { %p3474_p7 = pnand %p3473_p6, %p3467_p3 }
  0x17   :  { %3477 = shalt.err (!%p3474_p7)
}
  0x18   :  { %s3713_s0 = smov 64   ;;  %s3714_s17 = smov 4  }
  0x19   :  { %52 = dma.hbm_to_vmem [thread:$0]  %s4415_s1, 2048, %s47_s22, [#allocation6], %s3713_s0, %s3713_s0, %s3714_s17  }
  0x1a   :  { %s3715_s20 = smov [#allocation8]   ;;  %s3716_s23 = smov [#allocation11]  }
  0x1b   :  { %s70_s21 = sshll.u32 %s3715_s20, 4  ;;  %s98_s24 = sshll.u32 %s3716_s23, 4  ;;  %s71_s21 = int_to_ptr.vmem [resolvable:$true] %s70_s21  ;;  %s99_s24 = int_to_ptr.vmem [resolvable:$true] %s98_s24 }
  0x1c   :  { %s3478_s27 = scalar_lea.hbm %s4417_s3, 1024 }
  0x1d   :  { %p3479_p8 = scmp.ne.s32.totalorder %s4417_s3, %s3478_s27  ;;  %p3482_p9 = scmp.lt.u32.totalorder %s3478_s27, %s4417_s3 }
  0x1f   :  { %p3484_p10 = pnand %p3482_p9, %p3479_p8 }
  0x21   :  { %3487 = shalt.err (!%p3484_p10)
}
  0x22   :  { %s3488_s1 = scalar_lea.vmem %s71_s21, 1024  ;;  %p3493_p12 = scmp.lt.s32.totalorder %s71_s21, %s71_s21 }
  0x23   :  { %p3489_p11 = scmp.ne.s32.totalorder %s71_s21, %s3488_s1  ;;  %p3494_p13 = scmp.lt.s32.totalorder %s3488_s1, %s3488_s1 }
  0x25   :  { %p3495_p0 = por %p3494_p13, %p3493_p12 }
  0x27   :  { %p3496_p1 = pnand %p3495_p0, %p3489_p11 }
  0x29   :  { %3499 = shalt.err (!%p3496_p1)
}
  0x2a   :  { %76 = dma.hbm_to_vmem [thread:$0]  %s4417_s3, 1024, %s71_s21, [#allocation9], %s3713_s0, %s3713_s0, %s3714_s17  }
  0x2b   :  { %s3500_s20 = scalar_lea.hbm %s4421_s7, 1024 }
  0x2c   :  { %p3501_p2 = scmp.ne.s32.totalorder %s4421_s7, %s3500_s20  ;;  %p3504_p3 = scmp.lt.u32.totalorder %s3500_s20, %s4421_s7 }
  0x2e   :  { %p3506_p4 = pnand %p3504_p3, %p3501_p2 }
  0x30   :  { %3509 = shalt.err (!%p3506_p4)
}
  0x31   :  { %s3510_s28 = scalar_lea.vmem %s99_s24, 1024  ;;  %p3515_p6 = scmp.lt.s32.totalorder %s99_s24, %s99_s24 }
  0x32   :  { %p3511_p5 = scmp.ne.s32.totalorder %s99_s24, %s3510_s28  ;;  %p3516_p7 = scmp.lt.s32.totalorder %s3510_s28, %s3510_s28 }
  0x34   :  { %p3517_p8 = por %p3516_p7, %p3515_p6 }
  0x36   :  { %p3518_p9 = pnand %p3517_p8, %p3511_p5 }
  0x38   :  { %3521 = shalt.err (!%p3518_p9)
}
  0x39   :  { %104 = dma.hbm_to_vmem [thread:$0]  %s4421_s7, 1024, %s99_s24, [#allocation12], %s3713_s0, %s3713_s0, %s3714_s17  }
  0x3a   :  { %s3717_s29 = smov [#allocation14]   ;;  %s3718_s1 = smov [#allocation2]  }
  0x3b   :  { %s126_s30 = sshll.u32 %s3717_s29, 4  ;;  %s34_s22 = sshll.u32 %s3718_s1, 4  ;;  %s127_s30 = int_to_ptr.vmem [resolvable:$true] %s126_s30  ;;  %s35_s22 = int_to_ptr.vmem [resolvable:$true] %s34_s22 }
  0x3c   :  { %s3522_s15 = scalar_lea.hbm %s4425_s11, 1024 }
  0x3d   :  { %p3523_p10 = scmp.ne.s32.totalorder %s4425_s11, %s3522_s15  ;;  %p3526_p11 = scmp.lt.u32.totalorder %s3522_s15, %s4425_s11 }
  0x3f   :  { %p3528_p12 = pnand %p3526_p11, %p3523_p10 }
  0x41   :  { %3531 = shalt.err (!%p3528_p12)
}
  0x42   :  { %s3532_s7 = scalar_lea.vmem %s127_s30, 1024  ;;  %p3537_p0 = scmp.lt.s32.totalorder %s127_s30, %s127_s30 }
  0x43   :  { %p3533_p13 = scmp.ne.s32.totalorder %s127_s30, %s3532_s7  ;;  %p3538_p1 = scmp.lt.s32.totalorder %s3532_s7, %s3532_s7 }
  0x45   :  { %p3539_p2 = por %p3538_p1, %p3537_p0 }
  0x47   :  { %p3540_p3 = pnand %p3539_p2, %p3533_p13 }
  0x49   :  { %3543 = shalt.err (!%p3540_p3)
}
  0x4a   :  { %132 = dma.hbm_to_vmem [thread:$0]  %s4425_s11, 1024, %s127_s30, [#allocation15], %s3713_s0, %s3713_s0, %s3714_s17  }
  0x4b   :  { %s4435_s21 = sld [smem:[#allocation27_spill]] }
  0x51   :  { %s3544_s29 = scalar_lea.hbm %s4435_s21, 256 }
  0x52   :  { %p3545_p4 = scmp.ne.s32.totalorder %s4435_s21, %s3544_s29  ;;  %p3548_p5 = scmp.lt.u32.totalorder %s3544_s29, %s4435_s21 }
  0x54   :  { %p3550_p6 = pnand %p3548_p5, %p3545_p4 }
  0x56   :  { %3553 = shalt.err (!%p3550_p6)
}
  0x57   :  { %s3554_s20 = scalar_lea.vmem %s35_s22, 256  ;;  %p3559_p8 = scmp.lt.s32.totalorder %s35_s22, %s35_s22 }
  0x58   :  { %p3555_p7 = scmp.ne.s32.totalorder %s35_s22, %s3554_s20  ;;  %p3560_p9 = scmp.lt.s32.totalorder %s3554_s20, %s3554_s20 }
  0x5a   :  { %p3561_p10 = por %p3560_p9, %p3559_p8 }
  0x5c   :  { %p3562_p11 = pnand %p3561_p10, %p3555_p7 }
  0x5e   :  { %3565 = shalt.err (!%p3562_p11)
}
  0x5f   :  { %s3719_s11 = smov 128   ;;  %s3720_s30 = smov 8  }
  0x60   :  { %40 = dma.hbm_to_vmem [thread:$0]  %s4435_s21, 256, %s35_s22, [#allocation3], %s3719_s11, %s3719_s11, %s3720_s30  }
  0x61   :  { %s3721_s26 = smov [#allocation7]   ;;  %s3722_s24 = smov [#allocation10]  }
  0x62   :  { %s58_s7 = sshll.u32 %s3721_s26, 4  ;;  %s84_s27 = sshll.u32 %s3722_s24, 4  ;;  %s59_s7 = int_to_ptr.vmem [resolvable:$true] %s58_s7  ;;  %s85_s27 = int_to_ptr.vmem [resolvable:$true] %s84_s27 }
  0x63   :  { %s3566_s29 = scalar_lea.hbm %s4416_s2, 2048 }
  0x64   :  { %p3567_p12 = scmp.ne.s32.totalorder %s4416_s2, %s3566_s29  ;;  %p3570_p13 = scmp.lt.u32.totalorder %s3566_s29, %s4416_s2 }
  0x66   :  { %p3572_p0 = pnand %p3570_p13, %p3567_p12 }
  0x68   :  { %3575 = shalt.err (!%p3572_p0)
}
  0x69   :  { %s3576_s22 = scalar_lea.vmem %s59_s7, 2048  ;;  %p3581_p2 = scmp.lt.s32.totalorder %s59_s7, %s59_s7 }
  0x6a   :  { %p3577_p1 = scmp.ne.s32.totalorder %s59_s7, %s3576_s22  ;;  %p3582_p3 = scmp.lt.s32.totalorder %s3576_s22, %s3576_s22 }
  0x6c   :  { %p3583_p4 = por %p3582_p3, %p3581_p2 }
  0x6e   :  { %p3584_p5 = pnand %p3583_p4, %p3577_p1 }
  0x70   :  { %3587 = shalt.err (!%p3584_p5)
}
  0x71   :  { %64 = dma.hbm_to_vmem [thread:$0]  %s4416_s2, 2048, %s59_s7, [#allocation6], %s3713_s0, %s3713_s0, %s3714_s17  }
  0x72   :  { %s3588_s26 = scalar_lea.hbm %s4419_s5, 12288 }
  0x73   :  { %p3589_p6 = scmp.ne.s32.totalorder %s4419_s5, %s3588_s26  ;;  %p3592_p7 = scmp.lt.u32.totalorder %s3588_s26, %s4419_s5 }
  0x75   :  { %p3594_p8 = pnand %p3592_p7, %p3589_p6 }
  0x77   :  { %3597 = shalt.err (!%p3594_p8)
}
  0x78   :  { %s3598_s1 = scalar_lea.vmem %s85_s27, 12288  ;;  %p3603_p10 = scmp.lt.s32.totalorder %s85_s27, %s85_s27 }
  0x79   :  { %p3599_p9 = scmp.ne.s32.totalorder %s85_s27, %s3598_s1  ;;  %p3604_p11 = scmp.lt.s32.totalorder %s3598_s1, %s3598_s1 }
  0x7b   :  { %p3605_p12 = por %p3604_p11, %p3603_p10 }
  0x7d   :  { %p3606_p13 = pnand %p3605_p12, %p3599_p9 }
  0x7f   :  { %3609 = shalt.err (!%p3606_p13)
}
  0x80   :  { %90 = dma.hbm_to_vmem [thread:$0]  %s4419_s5, 12288, %s85_s27, [#allocation9], %s3719_s11, %s3719_s11, %s3720_s30  }
  0x81   :  { %s3723_s18 = smov [#allocation13]   ;;  %s3724_s15 = smov [#allocation16]  }
  0x82   :  { %s112_s19 = sshll.u32 %s3723_s18, 4  ;;  %s140_s22 = sshll.u32 %s3724_s15, 4  ;;  %s113_s19 = int_to_ptr.vmem [resolvable:$true] %s112_s19  ;;  %s141_s22 = int_to_ptr.vmem [resolvable:$true] %s140_s22 }
  0x83   :  { %s3610_s23 = scalar_lea.hbm %s4423_s9, 1024 }
  0x84   :  { %p3611_p0 = scmp.ne.s32.totalorder %s4423_s9, %s3610_s23  ;;  %p3614_p1 = scmp.lt.u32.totalorder %s3610_s23, %s4423_s9 }
  0x86   :  { %p3616_p2 = pnand %p3614_p1, %p3611_p0 }
  0x88   :  { %3619 = shalt.err (!%p3616_p2)
}
  0x89   :  { %s3620_s5 = scalar_lea.vmem %s113_s19, 1024  ;;  %p3625_p4 = scmp.lt.s32.totalorder %s113_s19, %s113_s19 }
  0x8a   :  { %p3621_p3 = scmp.ne.s32.totalorder %s113_s19, %s3620_s5  ;;  %p3626_p5 = scmp.lt.s32.totalorder %s3620_s5, %s3620_s5 }
  0x8c   :  { %p3627_p6 = por %p3626_p5, %p3625_p4 }
  0x8e   :  { %p3628_p7 = pnand %p3627_p6, %p3621_p3 }
  0x90   :  { %3631 = shalt.err (!%p3628_p7)
}
  0x91   :  { %118 = dma.hbm_to_vmem [thread:$0]  %s4423_s9, 1024, %s113_s19, [#allocation12], %s3713_s0, %s3713_s0, %s3714_s17  }
  0x92   :  { %s3632_s2 = scalar_lea.hbm %s4427_s13, 1024 }
  0x93   :  { %p3633_p8 = scmp.ne.s32.totalorder %s4427_s13, %s3632_s2  ;;  %p3636_p9 = scmp.lt.u32.totalorder %s3632_s2, %s4427_s13 }
  0x95   :  { %p3638_p10 = pnand %p3636_p9, %p3633_p8 }
  0x97   :  { %3641 = shalt.err (!%p3638_p10)
}
  0x98   :  { %s3642_s20 = scalar_lea.vmem %s141_s22, 1024  ;;  %p3647_p12 = scmp.lt.s32.totalorder %s141_s22, %s141_s22 }
  0x99   :  { %p3643_p11 = scmp.ne.s32.totalorder %s141_s22, %s3642_s20  ;;  %p3648_p13 = scmp.lt.s32.totalorder %s3642_s20, %s3642_s20 }
  0x9b   :  { %p3649_p0 = por %p3648_p13, %p3647_p12 }
  0x9d   :  { %p3650_p1 = pnand %p3649_p0, %p3643_p11 }
  0x9f   :  { %3653 = shalt.err (!%p3650_p1)
}
  0xa0   :  { %146 = dma.hbm_to_vmem [thread:$0]  %s4427_s13, 1024, %s141_s22, [#allocation15], %s3713_s0, %s3713_s0, %s3714_s17  }
  0xa1   :  { %3698 = dma.done.wait [#allocation3], 256  }
  0xa2   :  { %3699 = vsyncadd [#allocation3], 4294967040 }
  0xa3   :  { %3700 = dma.done.wait [#allocation6], 4096  }
  0xa4   :  { %3701 = vsyncadd [#allocation6], 4294963200 }
  0xa5   :  { %3702 = dma.done.wait [#allocation9], 13312  }
  0xa6   :  { %3703 = vsyncadd [#allocation9], 4294953984 }
  0xa7   :  { %3704 = dma.done.wait [#allocation12], 2048  }
  0xa8   :  { %3705 = vsyncadd [#allocation12], 4294965248 }
  0xa9   :  { %3706 = dma.done.wait [#allocation15], 2048  }
  0xaa   :  { %3707 = vsyncadd [#allocation15], 4294965248  ;;  %v3725_v0 = vmov 0.0   ;;  %vm3726_vm0 = vmmov 0   ;;  %v3190_v1 = vld [vmem:[#allocation8] sm:$0xff]   ;;  %v3191_v2 = vld [vmem:[#allocation8 + $0x8] sm:$0xff]   ;;  %v356_v45 = vlaneseq }
  0xab   :  { %2855 = vmatprep.subr.bf16.mxu0 %v3725_v0  ;;  %2871 = vmatprep.mubr.msk.bf16.mxu0 %vm3726_vm0, %v3725_v0  ;;  %v3192_v3 = vld [vmem:[#allocation8 + $0x10] sm:$0xff]   ;;  %v3193_v4 = vld [vmem:[#allocation8 + $0x18] sm:$0xff]   ;;  %v3198_v5 = vld [vmem:[#allocation10 + $0x4] ss:$8 sps:$4 sm:$0xff]   ;;  %s3729_s28 = smov [#allocation18]  }
  0xac   :  { %2856 = vmatpush3.bf16.msra.mxu0 %v3190_v1  ;;  %v3200_v6 = vld [vmem:[#allocation10] ss:$8 sps:$4 sm:$0xff]   ;;  %v3201_v7 = vld [vmem:[#allocation10 + $0x14] ss:$8 sps:$4 sm:$0xff]   ;;  %708 = vmatprep.subr.bf16.mxu1 %v3198_v5  ;;  %v3203_v8 = vld [vmem:[#allocation10 + $0x10] ss:$8 sps:$4 sm:$0xff]  }
  0xad   :  { %2857 = vmatprep.subr.bf16.mxu0 %v3725_v0  ;;  %709 = vmatpush1.bf16.msra.mxu1 %v3200_v6  ;;  %v3204_v9 = vld [vmem:[#allocation10 + $0x24] ss:$8 sps:$4 sm:$0xff]   ;;  %v3206_v11 = vld [vmem:[#allocation10 + $0x20] ss:$8 sps:$4 sm:$0xff]   ;;  %v3207_v12 = vld [vmem:[#allocation10 + $0x34] ss:$8 sps:$4 sm:$0xff]  }
  0xae   :  { %710 = vmatprep.subr.bf16.mxu1 %v3201_v7  ;;  %v3194_v10 = vld [vmem:[#allocation8 + $0x20] sm:$0xff]   ;;  %v3195_v13 = vld [vmem:[#allocation8 + $0x28] sm:$0xff]   ;;  %v3209_v14 = vld [vmem:[#allocation10 + $0x30] ss:$8 sps:$4 sm:$0xff]   ;;  %v3971_v46 = vshrl.u32 %v356_v45, 7  ;;  %s2504_s5 = sshll.u32 %s3729_s28, 4  ;;  %s2505_s5 = int_to_ptr.vmem [resolvable:$true] %s2504_s5 }
  0xaf   :  { %v3210_v15 = vld [vmem:[#allocation10 + $0x44] ss:$8 sps:$4 sm:$0xff]   ;;  %v3196_v16 = vld [vmem:[#allocation8 + $0x30] sm:$0xff]   ;;  %v3197_v17 = vld [vmem:[#allocation8 + $0x38] sm:$0xff]   ;;  %s3654_s27 = scalar_lea.vmem %s2505_s5, 256  ;;  %p3659_p3 = scmp.lt.s32.totalorder %s2505_s5, %s2505_s5 }
  0xb0   :  { %2858 = vmatpush3.bf16.msra.mxu0 %v3191_v2  ;;  %v3960_v18 = vld [vmem:[#allocation2] sm:$0xff]  ;;  %v3212_v19 = vld [vmem:[#allocation10 + $0x40] ss:$8 sps:$4 sm:$0xff]   ;;  %v3962_v20 = vld [vmem:[#allocation2 + $0x8] sm:$0xff]  ;;  %v358_v47 = vadd.s32 8, %v3971_v46  ;;  %v363_v50 = vand.u32 7, %v3971_v46  ;;  %p3655_p2 = scmp.ne.s32.totalorder %s2505_s5, %s3654_s27  ;;  %p3660_p4 = scmp.lt.s32.totalorder %s3654_s27, %s3654_s27 }
  0xb1   :  { %2859 = vmatprep.subr.bf16.mxu0 %v3725_v0  ;;  %711 = vmatpush1.bf16.msra.mxu1 %v3203_v8  ;;  %v3213_v21 = vld [vmem:[#allocation10 + $0x54] ss:$8 sps:$4 sm:$0xff]   ;;  %v3215_v22 = vld [vmem:[#allocation10 + $0x50] ss:$8 sps:$4 sm:$0xff]   ;;  %v3216_v23 = vld [vmem:[#allocation10 + $0x64] ss:$8 sps:$4 sm:$0xff]   ;;  %v243_v24 = vpack.c.bf16 %v3962_v20, %v3960_v18 }
  0xb2   :  { %712 = vmatprep.subr.bf16.mxu1 %v3204_v9  ;;  %v3218_v25 = vld [vmem:[#allocation10 + $0x60] ss:$8 sps:$4 sm:$0xff]   ;;  %v3219_v26 = vld [vmem:[#allocation10 + $0x74] ss:$8 sps:$4 sm:$0xff]   ;;  %v3221_v27 = vld [vmem:[#allocation10 + $0x70] ss:$8 sps:$4 sm:$0xff]   ;;  %p3661_p5 = por %p3660_p4, %p3659_p3 }
  0xb3   :  { %v3222_v28 = vld [vmem:[#allocation10 + $0x84] ss:$8 sps:$4 sm:$0xff]   ;;  %v3224_v29 = vld [vmem:[#allocation10 + $0x80] ss:$8 sps:$4 sm:$0xff]   ;;  %v3225_v30 = vld [vmem:[#allocation10 + $0x94] ss:$8 sps:$4 sm:$0xff]  }
  0xb4   :  { %2860 = vmatpush3.bf16.msra.mxu0 %v3192_v3  ;;  %v3227_v31 = vld [vmem:[#allocation10 + $0x90] ss:$8 sps:$4 sm:$0xff]   ;;  %v3228_v32 = vld [vmem:[#allocation10 + $0xa4] ss:$8 sps:$4 sm:$0xff]   ;;  %v3230_v33 = vld [vmem:[#allocation10 + $0xa0] ss:$8 sps:$4 sm:$0xff]   ;;  %p3662_p6 = pnand %p3661_p5, %p3655_p2 }
  0xb5   :  { %2861 = vmatprep.subr.bf16.mxu0 %v3725_v0  ;;  %713 = vmatpush1.bf16.msra.mxu1 %v3206_v11  ;;  %v3231_v34 = vld [vmem:[#allocation10 + $0xb4] ss:$8 sps:$4 sm:$0xff]   ;;  %v3233_v35 = vld [vmem:[#allocation10 + $0xb0] ss:$8 sps:$4 sm:$0xff]   ;;  %v3234_v36 = vld [vmem:[#allocation10 + $0xc4] ss:$8 sps:$4 sm:$0xff]  }
  0xb6   :  { %714 = vmatprep.subr.bf16.mxu1 %v3207_v12  ;;  %v3236_v37 = vld [vmem:[#allocation10 + $0xc0] ss:$8 sps:$4 sm:$0xff]   ;;  %v3237_v38 = vld [vmem:[#allocation10 + $0xd4] ss:$8 sps:$4 sm:$0xff]   ;;  %v3239_v39 = vld [vmem:[#allocation10 + $0xd0] ss:$8 sps:$4 sm:$0xff]  }
  0xb7   :  { %v3240_v40 = vld [vmem:[#allocation10 + $0xe4] ss:$8 sps:$4 sm:$0xff]   ;;  %v3242_v41 = vld [vmem:[#allocation10 + $0xe0] ss:$8 sps:$4 sm:$0xff]   ;;  %v3243_v42 = vld [vmem:[#allocation10 + $0xf4] ss:$8 sps:$4 sm:$0xff]  }
  0xb8   :  { %2862 = vmatpush3.bf16.msra.mxu0 %v3193_v4  ;;  %v3245_v43 = vld [vmem:[#allocation10 + $0xf0] ss:$8 sps:$4 sm:$0xff]   ;;  %v3248_v44 = vld [vmem:[#allocation10 + $0x104] ss:$8 sps:$4 sm:$0xff]   ;;  %v370_v51 = vand.u32 7, %v358_v47  ;;  %vm401_vm1 = vcmp.lt.s32.totalorder %v3971_v46, 1 }
  0xb9   :  { %2863 = vmatprep.subr.bf16.mxu0 %v3725_v0  ;;  %715 = vmatpush1.bf16.msra.mxu1 %v3209_v14  ;;  %v2524_v48 = vld [vmem:[%s4418_s4] ss:$0 sm:$0xff]  ;;  %vm393_vm2 = vcmp.lt.s32.totalorder %v3971_v46, 2  ;;  %vm3984_vm3 = vcmp.lt.s32.totalorder %v363_v50, 1  ;;  %vm3992_vm5 = vcmp.lt.s32.totalorder %v363_v50, 2 }
  0xba   :  { %716 = vmatprep.subr.bf16.mxu1 %v3210_v15  ;;  %vm3988_vm4 = vcmp.lt.s32.totalorder %v370_v51, 1  ;;  %vm3996_vm6 = vcmp.lt.s32.totalorder %v370_v51, 2  ;;  %v3246_v11 = vld [vmem:[#allocation10 + $0x100] ss:$8 sps:$4 sm:$0xff]   ;;  %v3249_v14 = vld [vmem:[#allocation10 + $0x110] ss:$8 sps:$4 sm:$0xff]  }
  0xbb   :  { %v3727_v15 = vmov 0   ;;  %v3374_v57 = vld [vmem:[#allocation10 + $0x2a4] ss:$8 sps:$4 sm:$0xff]   ;;  %v3372_v58 = vld [vmem:[#allocation10 + $0x2a0] ss:$8 sps:$4 sm:$0xff]  }
  0xbc   :  { %2864 = vmatpush3.bf16.msra.mxu0 %v3194_v10  ;;  %v3377_v59 = vld [vmem:[#allocation10 + $0x2b4] ss:$8 sps:$4 sm:$0xff]   ;;  %v3380_v60 = vld [vmem:[#allocation10 + $0x2c4] ss:$8 sps:$4 sm:$0xff]  }
  0xbd   :  { %2865 = vmatprep.subr.bf16.mxu0 %v3725_v0  ;;  %717 = vmatpush1.bf16.msra.mxu1 %v3212_v19  ;;  %v3257_v19 = vld [vmem:[#allocation10 + $0x134] ss:$8 sps:$4 sm:$0xff]  }
  0xbe   :  { %718 = vmatprep.subr.bf16.mxu1 %v3213_v21  ;;  %v3255_v21 = vld [vmem:[#allocation10 + $0x130] ss:$8 sps:$4 sm:$0xff]  }
  0xc0   :  { %2866 = vmatpush3.bf16.msra.mxu0 %v3195_v13  ;;  %v3251_v13 = vld [vmem:[#allocation10 + $0x114] ss:$8 sps:$4 sm:$0xff]  }
  0xc1   :  { %2867 = vmatprep.subr.bf16.mxu0 %v3725_v0  ;;  %719 = vmatpush1.bf16.msra.mxu1 %v3215_v22  ;;  %v3260_v22 = vld [vmem:[#allocation10 + $0x144] ss:$8 sps:$4 sm:$0xff]  }
  0xc2   :  { %720 = vmatprep.subr.bf16.mxu1 %v3216_v23  ;;  %v3258_v23 = vld [vmem:[#allocation10 + $0x140] ss:$8 sps:$4 sm:$0xff]  }
  0xc4   :  { %2868 = vmatpush3.bf16.msra.mxu0 %v3196_v16  ;;  %v3254_v16 = vld [vmem:[#allocation10 + $0x124] ss:$8 sps:$4 sm:$0xff]  }
  0xc5   :  { %2869 = vmatprep.subr.bf16.mxu0 %v3725_v0  ;;  %721 = vmatpush1.bf16.msra.mxu1 %v3218_v25  ;;  %v3261_v25 = vld [vmem:[#allocation10 + $0x150] ss:$8 sps:$4 sm:$0xff]  }
  0xc6   :  { %722 = vmatprep.subr.bf16.mxu1 %v3219_v26  ;;  %v3266_v26 = vld [vmem:[#allocation10 + $0x164] ss:$8 sps:$4 sm:$0xff]  }
  0xc8   :  { %2870 = vmatpush3.bf16.msra.mxu0 %v3197_v17  ;;  %v3252_v17 = vld [vmem:[#allocation10 + $0x120] ss:$8 sps:$4 sm:$0xff]  }
  0xc9   :  { %2875 = vmatprep.subr.bf16.mxu0 %v3725_v0  ;;  %723 = vmatpush1.bf16.msra.mxu1 %v3221_v27  ;;  %v3264_v27 = vld [vmem:[#allocation10 + $0x160] ss:$8 sps:$4 sm:$0xff]  }
  0xca   :  { %724 = vmatprep.subr.bf16.mxu1 %v3222_v28  ;;  %v3269_v28 = vld [vmem:[#allocation10 + $0x174] ss:$8 sps:$4 sm:$0xff]  }
  0xcb   :  { %2872 = vmatmul.mubr.bf16.vlgmr.msra.gmra.mrb[0].mxu0 %v243_v24  ;;  %v3263_v24 = vld [vmem:[#allocation10 + $0x154] ss:$8 sps:$4 sm:$0xff]  }
  0xcc   :  { %2891 = vmatprep.mubr.msk.bf16.mxu0 %vm3726_vm0, %v3725_v0 }
  0xcd   :  { %725 = vmatpush1.bf16.msra.mxu1 %v3224_v29  ;;  %v3267_v29 = vld [vmem:[#allocation10 + $0x170] ss:$8 sps:$4 sm:$0xff]  }
  0xce   :  { %726 = vmatprep.subr.bf16.mxu1 %v3225_v30 }
  0xd1   :  { %727 = vmatpush1.bf16.msra.mxu1 %v3227_v31  ;;  %v3270_v31 = vld [vmem:[#allocation11] sm:$0xff]  }
  0xd2   :  { %728 = vmatprep.subr.bf16.mxu1 %v3228_v32  ;;  %2876 = vmatpush3.bf16.msra.mxu0 %v3270_v31  ;;  %v3271_v32 = vld [vmem:[#allocation11 + $0x8] sm:$0xff]   ;;  %v4107_v31 = vld [vmem:[#allocation5 + $0x60] sm:$0xff]  }
  0xd3   :  { %2877 = vmatprep.subr.bf16.mxu0 %v3725_v0 }
  0xd5   :  { %729 = vmatpush1.bf16.msra.mxu1 %v3230_v33  ;;  %v3272_v33 = vld [vmem:[#allocation11 + $0x10] sm:$0xff]  }
  0xd6   :  { %730 = vmatprep.subr.bf16.mxu1 %v3231_v34  ;;  %2878 = vmatpush3.bf16.msra.mxu0 %v3271_v32  ;;  %v3273_v34 = vld [vmem:[#allocation11 + $0x18] sm:$0xff]   ;;  %v4111_v32 = vld [vmem:[#allocation5 + $0x68] sm:$0xff]  }
  0xd7   :  { %2879 = vmatprep.subr.bf16.mxu0 %v3725_v0 }
  0xd9   :  { %731 = vmatpush1.bf16.msra.mxu1 %v3233_v35  ;;  %v3274_v35 = vld [vmem:[#allocation11 + $0x20] sm:$0xff]  }
  0xda   :  { %732 = vmatprep.subr.bf16.mxu1 %v3234_v36  ;;  %2880 = vmatpush3.bf16.msra.mxu0 %v3272_v33  ;;  %v3275_v36 = vld [vmem:[#allocation11 + $0x28] sm:$0xff]  }
  0xdb   :  { %2881 = vmatprep.subr.bf16.mxu0 %v3725_v0 }
  0xdd   :  { %733 = vmatpush1.bf16.msra.mxu1 %v3236_v37  ;;  %v3276_v37 = vld [vmem:[#allocation11 + $0x30] sm:$0xff]  }
  0xde   :  { %734 = vmatprep.subr.bf16.mxu1 %v3237_v38  ;;  %2882 = vmatpush3.bf16.msra.mxu0 %v3273_v34  ;;  %v3277_v38 = vld [vmem:[#allocation11 + $0x38] sm:$0xff]   ;;  %v4116_v34 = vld [vmem:[#allocation5 + $0x70] sm:$0xff]  }
  0xdf   :  { %2883 = vmatprep.subr.bf16.mxu0 %v3725_v0 }
  0xe1   :  { %735 = vmatpush1.bf16.msra.mxu1 %v3239_v39  ;;  %v464_v39 = vsub.s32 1, %v3971_v46 }
  0xe2   :  { %736 = vmatprep.subr.bf16.mxu1 %v3240_v40  ;;  %2884 = vmatpush3.bf16.msra.mxu0 %v3274_v35  ;;  %v456_v40 = vld [vmem:[%s4420_s6] sm:$0x3] }
  0xe3   :  { %2885 = vmatprep.subr.bf16.mxu0 %v3725_v0 }
  0xe5   :  { %737 = vmatpush1.bf16.msra.mxu1 %v3242_v41  ;;  %v465_v41 = vrot.slane %v456_v40, %v464_v39 }
  0xe6   :  { %738 = vmatprep.subr.bf16.mxu1 %v3243_v42  ;;  %2886 = vmatpush3.bf16.msra.mxu0 %v3275_v36  ;;  %v4121_v36 = vld [vmem:[#allocation5 + $0x78] sm:$0xff]  }
  0xe7   :  { %2887 = vmatprep.subr.bf16.mxu0 %v3725_v0 }
  0xe9   :  { %739 = vmatpush1.bf16.msra.mxu1 %v3245_v43 }
  0xea   :  { %751 = vmatprep.subr.bf16.mxu1 %v3248_v44  ;;  %2888 = vmatpush3.bf16.msra.mxu0 %v3276_v37 }
  0xeb   :  { %2889 = vmatprep.subr.bf16.mxu0 %v3725_v0 }
  0xee   :  { %2890 = vmatpush3.bf16.msra.mxu0 %v3277_v38 }
  0xef   :  { %2895 = vmatprep.subr.bf16.mxu0 %v3725_v0 }
 0x19e   :  { %v349_v49 = vpop.f32.mrb[0].mxu0 }
 0x19f   :  { %v3978_v52 = vadd.f32 %v2524_v48, %v349_v49  ;;  %v2873_v53 = vpop.f32.mrb[1].mxu0 }
 0x1a0   :  { %v352_v54 = vpop.f32.mrb[2].mxu0 }
 0x1a1   :  { %v3980_v55 = vadd.f32 %v2524_v48, %v352_v54  ;;  %v2874_v56 = vpop.f32.mrb[3].mxu0  ;;  %v391_v61 = vrot.slane %v3978_v52, 6  ;;  %v399_v63 = vrot.slane %v3978_v52, 7 }
 0x1a3   :  { %v392_v62 = vrot.slane %v3980_v55, 6  ;;  %v400_v1 = vrot.slane %v3980_v55, 7  ;;  %v407_v30 = vpack.c.bf16 %v3980_v55, %v3978_v52 }
 0x1a5   :  { %v402_v2 = vsel %vm401_vm1, %v399_v63, %v400_v1  ;;  %v403_v3 = vsel %vm401_vm1, %v400_v1, %v399_v63  ;;  %v394_v4 = vsel %vm393_vm2, %v391_v61, %v392_v62  ;;  %v395_v5 = vsel %vm393_vm2, %v392_v62, %v391_v61 }
 0x1a6   :  { %v404_v6 = vsel %vm3984_vm3, 1.0, %v403_v3  ;;  %v405_v7 = vsel %vm3988_vm4, 1.0, %v402_v2  ;;  %v396_v8 = vsel %vm3992_vm5, 1.0, %v395_v5  ;;  %v397_v9 = vsel %vm3996_vm6, 1.0, %v394_v4 }
 0x1a7   :  { %v406_v10 = vpack.c.bf16 %v405_v7, %v404_v6  ;;  %v398_v12 = vpack.c.bf16 %v397_v9, %v396_v8  ;;  %v460_v62 = vsub.s32 0, %v3971_v46  ;;  %v4047_v7 = vld [vmem:[#allocation5] sm:$0xff]   ;;  %v4052_v9 = vld [vmem:[#allocation5 + $0x8] sm:$0xff]  }
 0x1a9   :  { %740 = vmatprep.mubr.bf16.mxu1 %v406_v10  ;;  %v461_v63 = vrot.slane %v456_v40, %v460_v62  ;;  %v4058_v10 = vld [vmem:[#allocation5 + $0x10] sm:$0xff]   ;;  %v3728_v40 = vmov -1e+30  }
 0x1aa   :  { %741 = vmatmul.mubr.bf16.vlgmr.msra.gmra.mrb[0].mxu1 %v398_v12  ;;  %v4066_v12 = vld [vmem:[#allocation5 + $0x20] sm:$0xff]  }
 0x1ab   :  { %752 = vmatpush1.bf16.msra.mxu1 %v3246_v11  ;;  %783 = vmatprep.mubr.bf16.mxu1 %v3727_v15  ;;  %v4062_v11 = vld [vmem:[#allocation5 + $0x18] sm:$0xff]  }
 0x1ac   :  { %753 = vmatprep.subr.bf16.mxu1 %v3251_v13  ;;  %v4070_v13 = vld [vmem:[#allocation5 + $0x28] sm:$0xff]  }
 0x1af   :  { %754 = vmatpush1.bf16.msra.mxu1 %v3249_v14  ;;  %v4075_v14 = vld [vmem:[#allocation5 + $0x30] sm:$0xff]  }
 0x1b0   :  { %755 = vmatprep.subr.bf16.mxu1 %v3254_v16  ;;  %v4079_v16 = vld [vmem:[#allocation5 + $0x38] sm:$0xff]  }
 0x1b3   :  { %756 = vmatpush1.bf16.msra.mxu1 %v3252_v17  ;;  %v4086_v17 = vld [vmem:[%s4422_s8] ss:$0 sm:$0xff] }
 0x1b4   :  { %757 = vmatprep.subr.bf16.mxu1 %v3257_v19 }
 0x1b7   :  { %758 = vmatpush1.bf16.msra.mxu1 %v3255_v21 }
 0x1b8   :  { %759 = vmatprep.subr.bf16.mxu1 %v3260_v22 }
 0x1bb   :  { %760 = vmatpush1.bf16.msra.mxu1 %v3258_v23 }
 0x1bc   :  { %761 = vmatprep.subr.bf16.mxu1 %v3263_v24 }
 0x1bf   :  { %762 = vmatpush1.bf16.msra.mxu1 %v3261_v25 }
 0x1c0   :  { %763 = vmatprep.subr.bf16.mxu1 %v3266_v26 }
 0x1c3   :  { %764 = vmatpush1.bf16.msra.mxu1 %v3264_v27  ;;  %v4090_v27 = vld [vmem:[#allocation5 + $0x40] sm:$0xff]  }
 0x1c4   :  { %765 = vmatprep.subr.bf16.mxu1 %v3269_v28 }
 0x1c7   :  { %766 = vmatpush1.bf16.msra.mxu1 %v3267_v29  ;;  %v4093_v29 = vld [vmem:[#allocation5 + $0x48] sm:$0xff]  }
 0x1c8   :  { %2935 = vmatprep.subr.bf16.mxu1 %v3725_v0 }
 0x1ca   :  { %784 = vmatmul.mubr.bf16.vlgmr.msra.gmra.mrb[0].mxu1 %v407_v30  ;;  %v4099_v30 = vld [vmem:[#allocation5 + $0x50] sm:$0xff]  }
 0x1cb   :  { %2951 = vmatprep.mubr.msk.bf16.mxu1 %vm3726_vm0, %v3725_v0 }
 0x29d   :  { %v785_v42 = vpop.f32.mrb[0].mxu1 }
 0x29e   :  { %v787_v43 = vpop.f32.mrb[1].mxu1  ;;  %v3155_v1 = vadd.f32 %v785_v42, %v461_v63 }
 0x29f   :  { %v3156_v44 = vadd.f32 %v787_v43, %v465_v41  ;;  %v789_v47 = vpop.f32.mrb[2].mxu1 }
 0x2a0   :  { %v791_v48 = vpop.f32.mrb[3].mxu1  ;;  %v3157_v3 = vadd.f32 %v789_v47, %v461_v63  ;;  %v4144_v63 = vld [vmem:[#allocation7 + $0x18] sm:$0xff]  }
 0x2a1   :  { %v2581_v49 = vmul.f32 -1.442695, %v3156_v44  ;;  %v3158_v50 = vadd.f32 %v791_v48, %v465_v41 }
 0x2a3   :  { %3422 = vpow2.f32 %v2581_v49  ;;  %v2582_v51 = vmul.f32 -1.442695, %v3158_v50 }
 0x2a5   :  { %3424 = vpow2.f32 %v2582_v51 }
 0x2ad   :  { %v3423_v53 = vpop.eup %3422 }
 0x2ae   :  { %v800_v54 = vadd.f32 1.0, %v3423_v53 }
 0x2af   :  { %v3425_v56 = vpop.eup %3424 }
 0x2b0   :  { %3426 = vrcp.f32 %v800_v54  ;;  %v801_v61 = vadd.f32 1.0, %v3425_v56  ;;  %v4133_v56 = vld [vmem:[#allocation7] sm:$0xff]  }
 0x2b1   :  { %2936 = vmatpush3.bf16.msra.mxu1 %v4133_v56 }
 0x2b2   :  { %3428 = vrcp.f32 %v801_v61  ;;  %2937 = vmatprep.subr.bf16.mxu1 %v3725_v0  ;;  %v4140_v61 = vld [vmem:[#allocation7 + $0x10] sm:$0xff]  }
 0x2ba   :  { %v3427_v2 = vpop.eup %3426 }
 0x2bb   :  { %v4043_v4 = vmul.f32 %v3427_v2, %v3155_v1 }
 0x2bc   :  { %v3429_v5 = vpop.eup %3428 }
 0x2bd   :  { %v4045_v6 = vmul.f32 %v3429_v5, %v3157_v3 }
 0x2bf   :  { %v808_v8 = vpack.c.bf16 %v4045_v6, %v4043_v4 }
 0x2c1   :  { %2892 = vmatmul.mubr.bf16.vlgmr.msra.gmra.mrb[4].mxu0 %v808_v8  ;;  %v4149_v8 = vld [vmem:[#allocation7 + $0x20] sm:$0xff]  }
 0x2c2   :  { %2896 = vmatpush3.bf16.msra.mxu0 %v4047_v7  ;;  %2911 = vmatprep.mubr.msk.bf16.mxu0 %vm3726_vm0, %v3725_v0 }
 0x2c3   :  { %2897 = vmatprep.subr.bf16.mxu0 %v3725_v0 }
 0x2c6   :  { %2898 = vmatpush3.bf16.msra.mxu0 %v4052_v9 }
 0x2c7   :  { %2899 = vmatprep.subr.bf16.mxu0 %v3725_v0 }
 0x2ca   :  { %2900 = vmatpush3.bf16.msra.mxu0 %v4058_v10 }
 0x2cb   :  { %2901 = vmatprep.subr.bf16.mxu0 %v3725_v0 }
 0x2ce   :  { %2902 = vmatpush3.bf16.msra.mxu0 %v4062_v11 }
 0x2cf   :  { %2903 = vmatprep.subr.bf16.mxu0 %v3725_v0 }
 0x2d2   :  { %2904 = vmatpush3.bf16.msra.mxu0 %v4066_v12 }
 0x2d3   :  { %2905 = vmatprep.subr.bf16.mxu0 %v3725_v0 }
 0x2d6   :  { %2906 = vmatpush3.bf16.msra.mxu0 %v4070_v13 }
 0x2d7   :  { %2907 = vmatprep.subr.bf16.mxu0 %v3725_v0 }
 0x2da   :  { %2908 = vmatpush3.bf16.msra.mxu0 %v4075_v14 }
 0x2db   :  { %2909 = vmatprep.subr.bf16.mxu0 %v3725_v0 }
 0x2de   :  { %2910 = vmatpush3.bf16.msra.mxu0 %v4079_v16 }
 0x2df   :  { %2915 = vmatprep.subr.bf16.mxu0 %v3725_v0 }
 0x394   :  { %v914_v19 = vpop.f32.mrb[4].mxu0 }
 0x395   :  { %v915_v21 = vadd.f32 %v4086_v17, %v914_v19  ;;  %v2893_v22 = vpop.f32.mrb[5].mxu0  ;;  %v4152_v19 = vld [vmem:[#allocation7 + $0x28] sm:$0xff]  }
 0x396   :  { %v917_v23 = vpop.f32.mrb[6].mxu0 }
 0x397   :  { %v921_v24 = vadd.f32 %v915_v21, %v3960_v18  ;;  %v2894_v25 = vpop.f32.mrb[7].mxu0  ;;  %v4103_v18 = vld [vmem:[#allocation5 + $0x58] sm:$0xff]   ;;  %v918_v33 = vadd.f32 %v4086_v17, %v917_v23 }
 0x398   :  { %v4160_v25 = vld [vmem:[#allocation7 + $0x38] sm:$0xff]  }
 0x399   :  { %v923_v26 = vmul.f32 0.70710677, %v921_v24  ;;  %v922_v35 = vadd.f32 %v918_v33, %v3962_v20  ;;  %v388_v20 = vand.u32 127, %v356_v45  ;;  %v4136_v45 = vld [vmem:[#allocation7 + $0x8] sm:$0xff]   ;;  %v4156_v24 = vld [vmem:[#allocation7 + $0x30] sm:$0xff]  }
 0x39a   :  { %2938 = vmatpush3.bf16.msra.mxu1 %v4136_v45 }
 0x39b   :  { %v925_v28 = vpack.c.bf16 %v923_v26, %v923_v26  ;;  %v924_v37 = vmul.f32 0.70710677, %v922_v35  ;;  %vm389_vm7 = vcmp.lt.s32.totalorder %v388_v20, 8  ;;  %2939 = vmatprep.subr.bf16.mxu1 %v3725_v0  ;;  %v4164_v26 = vld [vmem:[#allocation7 + $0x40] sm:$0xff]   ;;  %v4172_v35 = vld [vmem:[#allocation7 + $0x50] sm:$0xff]   ;;  %v4184_v20 = vld [vmem:[#allocation7 + $0x68] sm:$0xff]  }
 0x39c   :  { %v4129_v41 = vsel %vm389_vm7, 0.0, %v3728_v40  ;;  %v4188_v40 = vld [vmem:[#allocation7 + $0x70] sm:$0xff]  }
 0x39d   :  { %2912 = vmatmul.mubr.bf16.vlgmr.msra.gmra.mrb[8].mxu0 %v925_v28  ;;  %v926_v38 = vpack.c.bf16 %v924_v37, %v924_v37  ;;  %v4168_v28 = vld [vmem:[#allocation7 + $0x48] sm:$0xff]   ;;  %v4176_v37 = vld [vmem:[#allocation7 + $0x58] sm:$0xff]  }
 0x39e   :  { %2916 = vmatpush3.bf16.msra.mxu0 %v4090_v27  ;;  %2931 = vmatprep.mubr.msk.bf16.mxu0 %vm3726_vm0, %v3725_v0 }
 0x39f   :  { %2917 = vmatprep.subr.bf16.mxu0 %v3725_v0  ;;  %2940 = vmatpush3.bf16.msra.mxu1 %v4140_v61 }
 0x3a0   :  { %2941 = vmatprep.subr.bf16.mxu1 %v3725_v0 }
 0x3a2   :  { %2918 = vmatpush3.bf16.msra.mxu0 %v4093_v29 }
 0x3a3   :  { %2919 = vmatprep.subr.bf16.mxu0 %v3725_v0  ;;  %2942 = vmatpush3.bf16.msra.mxu1 %v4144_v63 }
 0x3a4   :  { %2943 = vmatprep.subr.bf16.mxu1 %v3725_v0 }
 0x3a6   :  { %2920 = vmatpush3.bf16.msra.mxu0 %v4099_v30 }
 0x3a7   :  { %2921 = vmatprep.subr.bf16.mxu0 %v3725_v0  ;;  %2944 = vmatpush3.bf16.msra.mxu1 %v4149_v8 }
 0x3a8   :  { %2945 = vmatprep.subr.bf16.mxu1 %v3725_v0 }
 0x3aa   :  { %2922 = vmatpush3.bf16.msra.mxu0 %v4103_v18 }
 0x3ab   :  { %2923 = vmatprep.subr.bf16.mxu0 %v3725_v0  ;;  %2946 = vmatpush3.bf16.msra.mxu1 %v4152_v19 }
 0x3ac   :  { %2947 = vmatprep.subr.bf16.mxu1 %v3725_v0 }
 0x3ae   :  { %2924 = vmatpush3.bf16.msra.mxu0 %v4107_v31 }
 0x3af   :  { %2925 = vmatprep.subr.bf16.mxu0 %v3725_v0  ;;  %2948 = vmatpush3.bf16.msra.mxu1 %v4156_v24 }
 0x3b0   :  { %2949 = vmatprep.subr.bf16.mxu1 %v3725_v0 }
 0x3b2   :  { %2926 = vmatpush3.bf16.msra.mxu0 %v4111_v32 }
 0x3b3   :  { %2927 = vmatprep.subr.bf16.mxu0 %v3725_v0  ;;  %2950 = vmatpush3.bf16.msra.mxu1 %v4160_v25 }
 0x3b4   :  { %2975 = vmatprep.subr.bf16.mxu1 %v3725_v0 }
 0x3b6   :  { %2928 = vmatpush3.bf16.msra.mxu0 %v4116_v34 }
 0x3b7   :  { %2929 = vmatprep.subr.bf16.mxu0 %v3725_v0 }
 0x3ba   :  { %2930 = vmatpush3.bf16.msra.mxu0 %v4121_v36 }
 0x3bb   :  { %2955 = vmatprep.subr.bf16.mxu0 %v3725_v0 }
 0x3bd   :  { %2932 = vmatmul.mubr.bf16.vlgmr.msra.gmra.mrb[12].mxu0 %v926_v38  ;;  %v4181_v38 = vld [vmem:[#allocation7 + $0x60] sm:$0xff]  }
 0x3be   :  { %2971 = vmatprep.mubr.msk.bf16.mxu0 %vm3726_vm0, %v3725_v0  ;;  %2956 = vmatpush3.bf16.msra.mxu0 %v4164_v26 }
 0x3bf   :  { %2957 = vmatprep.subr.bf16.mxu0 %v3725_v0 }
 0x3c2   :  { %2958 = vmatpush3.bf16.msra.mxu0 %v4168_v28 }
 0x3c3   :  { %2959 = vmatprep.subr.bf16.mxu0 %v3725_v0 }
 0x3c6   :  { %2960 = vmatpush3.bf16.msra.mxu0 %v4172_v35 }
 0x3c7   :  { %2961 = vmatprep.subr.bf16.mxu0 %v3725_v0 }
 0x3ca   :  { %2962 = vmatpush3.bf16.msra.mxu0 %v4176_v37 }
 0x3cb   :  { %2963 = vmatprep.subr.bf16.mxu0 %v3725_v0 }
 0x3ce   :  { %2964 = vmatpush3.bf16.msra.mxu0 %v4181_v38 }
 0x3cf   :  { %2965 = vmatprep.subr.bf16.mxu0 %v3725_v0 }
 0x3d2   :  { %2966 = vmatpush3.bf16.msra.mxu0 %v4184_v20 }
 0x3d3   :  { %2967 = vmatprep.subr.bf16.mxu0 %v3725_v0 }
 0x3d6   :  { %2968 = vmatpush3.bf16.msra.mxu0 %v4188_v40 }
 0x3d7   :  { %2969 = vmatprep.subr.bf16.mxu0 %v3725_v0 }
 0x470   :  { %v1009_v42 = vpop.f32.mrb[8].mxu0 }
 0x471   :  { %v1010_v43 = vadd.f32 %v1009_v42, %v4129_v41  ;;  %v2913_v44 = vpop.f32.mrb[9].mxu0  ;;  %v4192_v42 = vld [vmem:[#allocation7 + $0x78] sm:$0xff]  }
 0x472   :  { %v1012_v47 = vpop.f32.mrb[10].mxu0  ;;  %2970 = vmatpush3.bf16.msra.mxu0 %v4192_v42 }
 0x473   :  { %1103 = vmax.xlane.f32.xlu0 %v1010_v43  ;;  %v2914_v48 = vpop.f32.mrb[11].mxu0 }
 0x490   :  { %v1097_v49 = vpop.f32.mrb[12].mxu0 }
 0x491   :  { %v1098_v50 = vadd.f32 %v1097_v49, %v4129_v41  ;;  %v2933_v51 = vpop.f32.mrb[13].mxu0 }
 0x492   :  { %v1100_v53 = vpop.f32.mrb[14].mxu0 }
 0x493   :  { %1105 = vmax.xlane.f32.xlu0 %v1098_v50  ;;  %v2934_v54 = vpop.f32.mrb[15].mxu0 }
 0x494   :  { %v3310_v54 = vld [vmem:[#allocation13] sm:$0xff]  }
 0x500   :  { %v1104_v1 = vpop.xlane.xlu0 %1103 }
 0x501   :  { %v1107_v2 = vsub.f32 %v1010_v43, %v1104_v1  ;;  %v3311_v1 = vld [vmem:[#allocation13 + $0x8] sm:$0xff]  }
 0x503   :  { %v1109_v3 = vmul.f32 1.442695, %v1107_v2  ;;  %v3312_v2 = vld [vmem:[#allocation13 + $0x10] sm:$0xff]  }
 0x505   :  { %3430 = vpow2.f32 %v1109_v3  ;;  %v3313_v3 = vld [vmem:[#allocation13 + $0x18] sm:$0xff]  }
 0x50f   :  { %v3431_v5 = vpop.eup %3430 }
 0x510   :  { %1113 = vadd.xlane.f32.xlu1 %v3431_v5 }
 0x520   :  { %v1106_v21 = vpop.xlane.xlu0 %1105 }
 0x521   :  { %v1108_v22 = vsub.f32 %v1098_v50, %v1106_v21  ;;  %v3315_v21 = vld [vmem:[#allocation13 + $0x28] sm:$0xff]  }
 0x523   :  { %v1111_v23 = vmul.f32 1.442695, %v1108_v22  ;;  %v3316_v22 = vld [vmem:[#allocation13 + $0x30] sm:$0xff]  }
 0x525   :  { %3432 = vpow2.f32 %v1111_v23  ;;  %v3317_v23 = vld [vmem:[#allocation13 + $0x38] sm:$0xff]  }
 0x52f   :  { %v3433_v33 = vpop.eup %3432 }
 0x530   :  { %1115 = vadd.xlane.f32.xlu1 %v3433_v33 }
 0x59d   :  { %v1114_v43 = vpop.xlane.xlu1 %1113 }
 0x59e   :  { %3434 = vrcp.f32 %v1114_v43  ;;  %v3320_v43 = vld [vmem:[#allocation10 + $0x184] ss:$8 sps:$4 sm:$0xff]  }
 0x59f   :  { %1737 = vmatprep.subr.bf16.mxu0 %v3320_v43  ;;  %v3347_v43 = vld [vmem:[#allocation10 + $0x214] ss:$8 sps:$4 sm:$0xff]  }
 0x5a8   :  { %v3435_v44 = vpop.eup %3434 }
 0x5a9   :  { %v1119_v47 = vmul.f32 %v3435_v44, %v3431_v5  ;;  %v3314_v5 = vld [vmem:[#allocation13 + $0x20] sm:$0xff]   ;;  %v3323_v44 = vld [vmem:[#allocation10 + $0x194] ss:$8 sps:$4 sm:$0xff]  }
 0x5ab   :  { %v1121_v48 = vpack.c.bf16 %v1119_v47, %v1119_v47  ;;  %v3321_v47 = vld [vmem:[#allocation10 + $0x190] ss:$8 sps:$4 sm:$0xff]  }
 0x5ad   :  { %2952 = vmatmul.mubr.bf16.vlgmr.msra.gmra.mrb[4].mxu1 %v1121_v48  ;;  %v3326_v48 = vld [vmem:[#allocation10 + $0x1a4] ss:$8 sps:$4 sm:$0xff]  }
 0x5ae   :  { %2991 = vmatprep.mubr.msk.bf16.mxu1 %vm3726_vm0, %v3725_v0  ;;  %2976 = vmatpush3.bf16.msra.mxu1 %v3310_v54  ;;  %v3330_v54 = vld [vmem:[#allocation10 + $0x1c0] ss:$8 sps:$4 sm:$0xff]  }
 0x5af   :  { %2977 = vmatprep.subr.bf16.mxu1 %v3725_v0 }
 0x5b2   :  { %2978 = vmatpush3.bf16.msra.mxu1 %v3311_v1  ;;  %v3335_v1 = vld [vmem:[#allocation10 + $0x1d4] ss:$8 sps:$4 sm:$0xff]  }
 0x5b3   :  { %2979 = vmatprep.subr.bf16.mxu1 %v3725_v0 }
 0x5b6   :  { %2980 = vmatpush3.bf16.msra.mxu1 %v3312_v2  ;;  %v3333_v2 = vld [vmem:[#allocation10 + $0x1d0] ss:$8 sps:$4 sm:$0xff]  }
 0x5b7   :  { %2981 = vmatprep.subr.bf16.mxu1 %v3725_v0 }
 0x5ba   :  { %2982 = vmatpush3.bf16.msra.mxu1 %v3313_v3  ;;  %v3338_v3 = vld [vmem:[#allocation10 + $0x1e4] ss:$8 sps:$4 sm:$0xff]  }
 0x5bb   :  { %2983 = vmatprep.subr.bf16.mxu1 %v3725_v0 }
 0x5bd   :  { %v1116_v49 = vpop.xlane.xlu1 %1115 }
 0x5be   :  { %3436 = vrcp.f32 %v1116_v49  ;;  %2984 = vmatpush3.bf16.msra.mxu1 %v3314_v5  ;;  %v3324_v49 = vld [vmem:[#allocation10 + $0x1a0] ss:$8 sps:$4 sm:$0xff]  }
 0x5bf   :  { %2985 = vmatprep.subr.bf16.mxu1 %v3725_v0  ;;  %v3336_v5 = vld [vmem:[#allocation10 + $0x1e0] ss:$8 sps:$4 sm:$0xff]  }
 0x5c2   :  { %2986 = vmatpush3.bf16.msra.mxu1 %v3315_v21  ;;  %v3341_v21 = vld [vmem:[#allocation10 + $0x1f4] ss:$8 sps:$4 sm:$0xff]  }
 0x5c3   :  { %2987 = vmatprep.subr.bf16.mxu1 %v3725_v0 }
 0x5c6   :  { %2988 = vmatpush3.bf16.msra.mxu1 %v3316_v22  ;;  %v3339_v22 = vld [vmem:[#allocation10 + $0x1f0] ss:$8 sps:$4 sm:$0xff]  }
 0x5c7   :  { %2989 = vmatprep.subr.bf16.mxu1 %v3725_v0 }
 0x5c8   :  { %v3437_v50 = vpop.eup %3436 }
 0x5c9   :  { %v1120_v51 = vmul.f32 %v3437_v50, %v3433_v33  ;;  %v3318_v33 = vld [vmem:[#allocation10 + $0x180] ss:$8 sps:$4 sm:$0xff]   ;;  %v3329_v50 = vld [vmem:[#allocation10 + $0x1b4] ss:$8 sps:$4 sm:$0xff]  }
 0x5ca   :  { %2990 = vmatpush3.bf16.msra.mxu1 %v3317_v23  ;;  %v3344_v23 = vld [vmem:[#allocation10 + $0x204] ss:$8 sps:$4 sm:$0xff]  }
 0x5cb   :  { %v1122_v53 = vpack.c.bf16 %v1120_v51, %v1120_v51  ;;  %2995 = vmatprep.subr.bf16.mxu1 %v3725_v0  ;;  %v3327_v51 = vld [vmem:[#allocation10 + $0x1b0] ss:$8 sps:$4 sm:$0xff]  }
 0x5cd   :  { %2972 = vmatmul.mubr.bf16.vlgmr.msra.gmra.mrb[16].mxu0 %v1122_v53  ;;  %v3332_v53 = vld [vmem:[#allocation10 + $0x1c4] ss:$8 sps:$4 sm:$0xff]  }
 0x5ce   :  { %1738 = vmatpush1.bf16.msra.mxu0 %v3318_v33  ;;  %v3342_v33 = vld [vmem:[#allocation10 + $0x200] ss:$8 sps:$4 sm:$0xff]  }
 0x5cf   :  { %1739 = vmatprep.subr.bf16.mxu0 %v3323_v44  ;;  %v3345_v44 = vld [vmem:[#allocation10 + $0x210] ss:$8 sps:$4 sm:$0xff]  }
 0x5d2   :  { %1740 = vmatpush1.bf16.msra.mxu0 %v3321_v47  ;;  %v3350_v47 = vld [vmem:[#allocation10 + $0x224] ss:$8 sps:$4 sm:$0xff]  }
 0x5d3   :  { %1741 = vmatprep.subr.bf16.mxu0 %v3326_v48  ;;  %v3348_v48 = vld [vmem:[#allocation10 + $0x220] ss:$8 sps:$4 sm:$0xff]  }
 0x5d6   :  { %1742 = vmatpush1.bf16.msra.mxu0 %v3324_v49  ;;  %v3353_v49 = vld [vmem:[#allocation10 + $0x234] ss:$8 sps:$4 sm:$0xff]  }
 0x5d7   :  { %1743 = vmatprep.subr.bf16.mxu0 %v3329_v50  ;;  %v3351_v50 = vld [vmem:[#allocation10 + $0x230] ss:$8 sps:$4 sm:$0xff]  }
 0x5da   :  { %1744 = vmatpush1.bf16.msra.mxu0 %v3327_v51 }
 0x5db   :  { %1745 = vmatprep.subr.bf16.mxu0 %v3332_v53 }
 0x5de   :  { %1746 = vmatpush1.bf16.msra.mxu0 %v3330_v54 }
 0x5df   :  { %1747 = vmatprep.subr.bf16.mxu0 %v3335_v1 }
 0x5e2   :  { %1748 = vmatpush1.bf16.msra.mxu0 %v3333_v2 }
 0x5e3   :  { %1749 = vmatprep.subr.bf16.mxu0 %v3338_v3 }
 0x5e6   :  { %1750 = vmatpush1.bf16.msra.mxu0 %v3336_v5 }
 0x5e7   :  { %1751 = vmatprep.subr.bf16.mxu0 %v3341_v21 }
 0x5ea   :  { %1752 = vmatpush1.bf16.msra.mxu0 %v3339_v22 }
 0x5eb   :  { %1753 = vmatprep.subr.bf16.mxu0 %v3344_v23  ;;  %v3356_v23 = vld [vmem:[#allocation10 + $0x244] ss:$8 sps:$4 sm:$0xff]  }
 0x5ee   :  { %1754 = vmatpush1.bf16.msra.mxu0 %v3342_v33  ;;  %v3354_v33 = vld [vmem:[#allocation10 + $0x240] ss:$8 sps:$4 sm:$0xff]  }
 0x5ef   :  { %1755 = vmatprep.subr.bf16.mxu0 %v3347_v43  ;;  %v3359_v43 = vld [vmem:[#allocation10 + $0x254] ss:$8 sps:$4 sm:$0xff]  }
 0x5f2   :  { %1756 = vmatpush1.bf16.msra.mxu0 %v3345_v44  ;;  %v3357_v44 = vld [vmem:[#allocation10 + $0x250] ss:$8 sps:$4 sm:$0xff]  }
 0x5f3   :  { %1757 = vmatprep.subr.bf16.mxu0 %v3350_v47  ;;  %v3362_v47 = vld [vmem:[#allocation10 + $0x264] ss:$8 sps:$4 sm:$0xff]  }
 0x5f6   :  { %1758 = vmatpush1.bf16.msra.mxu0 %v3348_v48  ;;  %v3360_v48 = vld [vmem:[#allocation10 + $0x260] ss:$8 sps:$4 sm:$0xff]  }
 0x5f7   :  { %1759 = vmatprep.subr.bf16.mxu0 %v3353_v49  ;;  %v3363_v49 = vld [vmem:[#allocation10 + $0x270] ss:$8 sps:$4 sm:$0xff]  }
 0x5fa   :  { %1760 = vmatpush1.bf16.msra.mxu0 %v3351_v50  ;;  %v3365_v50 = vld [vmem:[#allocation10 + $0x274] ss:$8 sps:$4 sm:$0xff]  }
 0x5fb   :  { %1761 = vmatprep.subr.bf16.mxu0 %v3356_v23 }
 0x5fe   :  { %1762 = vmatpush1.bf16.msra.mxu0 %v3354_v33 }
 0x5ff   :  { %1763 = vmatprep.subr.bf16.mxu0 %v3359_v43 }
 0x602   :  { %1764 = vmatpush1.bf16.msra.mxu0 %v3357_v44 }
 0x603   :  { %1765 = vmatprep.subr.bf16.mxu0 %v3362_v47 }
 0x606   :  { %1766 = vmatpush1.bf16.msra.mxu0 %v3360_v48 }
 0x607   :  { %1767 = vmatprep.subr.bf16.mxu0 %v3365_v50 }
 0x60a   :  { %1768 = vmatpush1.bf16.msra.mxu0 %v3363_v49 }
 0x680   :  { %v1205_v51 = vpop.f32.mrb[4].mxu1 }
 0x681   :  { %v2953_v53 = vpop.f32.mrb[5].mxu1 }
 0x682   :  { %v1208_v54 = vpop.f32.mrb[6].mxu1  ;;  %v4211_v53 = vld [vmem:[%s4424_s10] ss:$0 sm:$0xff] }
 0x683   :  { %v2954_v1 = vpop.f32.mrb[7].mxu1 }
 0x6a0   :  { %v1293_v2 = vpop.f32.mrb[16].mxu0 }
 0x6a1   :  { %v1299_v3 = vpack.c.bf16 %v1293_v2, %v1205_v51  ;;  %v2973_v5 = vpop.f32.mrb[17].mxu0  ;;  %v3368_v51 = vld [vmem:[#allocation10 + $0x284] ss:$8 sps:$4 sm:$0xff]  }
 0x6a2   :  { %v1296_v21 = vpop.f32.mrb[18].mxu0  ;;  %1780 = vmatprep.subr.bf16.mxu0 %v3368_v51 }
 0x6a3   :  { %v2974_v22 = vpop.f32.mrb[19].mxu0  ;;  %2992 = vmatmul.mubr.bf16.vlgmr.msra.gmra.mrb[8].mxu1 %v1299_v3 }
 0x6a4   :  { %3011 = vmatprep.mubr.msk.bf16.mxu1 %vm3726_vm0, %v3725_v0 }
 0x776   :  { %v1405_v54 = vpop.f32.mrb[8].mxu1 }
 0x777   :  { %v1406_v1 = vadd.f32 %v4211_v53, %v1405_v54  ;;  %v2993_v2 = vpop.f32.mrb[9].mxu1 }
 0x778   :  { %v1408_v3 = vpop.f32.mrb[10].mxu1 }
 0x779   :  { %v1412_v5 = vadd.f32 %v1406_v1, %v4043_v4  ;;  %v1409_v21 = vadd.f32 %v4211_v53, %v1408_v3  ;;  %v2994_v22 = vpop.f32.mrb[11].mxu1 }
 0x77b   :  { %v1414_v23 = vmul.f32 0.70710677, %v1412_v5  ;;  %v1413_v33 = vadd.f32 %v1409_v21, %v4045_v6 }
 0x77d   :  { %v1416_v43 = vadd.f32 %v1414_v23, %v3978_v52  ;;  %v1415_v44 = vmul.f32 0.70710677, %v1413_v33  ;;  %v3366_v23 = vld [vmem:[#allocation10 + $0x280] ss:$8 sps:$4 sm:$0xff]  }
 0x77f   :  { %v4218_v47 = vmul.f32 0.70710677, %v1416_v43  ;;  %v1417_v48 = vadd.f32 %v1415_v44, %v3980_v55  ;;  %v3371_v43 = vld [vmem:[#allocation10 + $0x294] ss:$8 sps:$4 sm:$0xff]   ;;  %v3369_v44 = vld [vmem:[#allocation10 + $0x290] ss:$8 sps:$4 sm:$0xff]  }
 0x781   :  { %v4221_v49 = vmul.f32 0.70710677, %v1417_v48  ;;  %v1420_v50 = vrot.slane %v4218_v47, 6  ;;  %v1427_v4 = vrot.slane %v4218_v47, 7  ;;  %v3375_v48 = vld [vmem:[#allocation10 + $0x2b0] ss:$8 sps:$4 sm:$0xff]  }
 0x783   :  { %v1421_v51 = vrot.slane %v4221_v49, 6  ;;  %v1428_v54 = vrot.slane %v4221_v49, 7 }
 0x785   :  { %v1429_v6 = vsel %vm401_vm1, %v1427_v4, %v1428_v54  ;;  %v1430_v52 = vsel %vm401_vm1, %v1428_v54, %v1427_v4  ;;  %v1422_v1 = vsel %vm393_vm2, %v1420_v50, %v1421_v51  ;;  %v1423_v55 = vsel %vm393_vm2, %v1421_v51, %v1420_v50  ;;  %v3378_v50 = vld [vmem:[#allocation10 + $0x2c0] ss:$8 sps:$4 sm:$0xff]   ;;  %v3383_v51 = vld [vmem:[#allocation10 + $0x2d4] ss:$8 sps:$4 sm:$0xff]   ;;  %v3381_v4 = vld [vmem:[#allocation10 + $0x2d0] ss:$8 sps:$4 sm:$0xff]  }
 0x786   :  { %v1431_v2 = vsel %vm3984_vm3, 1.0, %v1430_v52  ;;  %v1432_v3 = vsel %vm3988_vm4, 1.0, %v1429_v6  ;;  %v1424_v5 = vsel %vm3992_vm5, 1.0, %v1423_v55  ;;  %v1425_v21 = vsel %vm3996_vm6, 1.0, %v1422_v1  ;;  %v3386_v54 = vld [vmem:[#allocation10 + $0x2e4] ss:$8 sps:$4 sm:$0xff]  }
 0x787   :  { %v1433_v22 = vpack.c.bf16 %v1432_v3, %v1431_v2  ;;  %v1426_v33 = vpack.c.bf16 %v1425_v21, %v1424_v5  ;;  %v3389_v6 = vld [vmem:[#allocation10 + $0x2f4] ss:$8 sps:$4 sm:$0xff]   ;;  %v3387_v52 = vld [vmem:[#allocation10 + $0x2f0] ss:$8 sps:$4 sm:$0xff]   ;;  %v1434_v1 = vpack.c.bf16 %v4221_v49, %v4218_v47 }
 0x788   :  { %v2633_v55 = vld [vmem:[%s4420_s6 + $0x2] sm:$0x3] }
 0x789   :  { %1769 = vmatprep.mubr.bf16.mxu0 %v1433_v22  ;;  %v1494_v2 = vrot.slane %v2633_v55, %v464_v39 }
 0x78a   :  { %1770 = vmatmul.mubr.bf16.vlgmr.msra.gmra.mrb[20].mxu0 %v1426_v33 }
 0x78b   :  { %1781 = vmatpush1.bf16.msra.mxu0 %v3366_v23  ;;  %1812 = vmatprep.mubr.bf16.mxu0 %v3727_v15  ;;  %v3384_v15 = vld [vmem:[#allocation10 + $0x2e0] ss:$8 sps:$4 sm:$0xff]  }
 0x78c   :  { %1782 = vmatprep.subr.bf16.mxu0 %v3371_v43 }
 0x78f   :  { %1783 = vmatpush1.bf16.msra.mxu0 %v3369_v44 }
 0x790   :  { %1784 = vmatprep.subr.bf16.mxu0 %v3374_v57 }
 0x793   :  { %1785 = vmatpush1.bf16.msra.mxu0 %v3372_v58 }
 0x794   :  { %1786 = vmatprep.subr.bf16.mxu0 %v3377_v59 }
 0x797   :  { %1787 = vmatpush1.bf16.msra.mxu0 %v3375_v48 }
 0x798   :  { %1788 = vmatprep.subr.bf16.mxu0 %v3380_v60  ;;  %v1490_v60 = vrot.slane %v2633_v55, %v460_v62 }
 0x79b   :  { %1789 = vmatpush1.bf16.msra.mxu0 %v3378_v50 }
 0x79c   :  { %1790 = vmatprep.subr.bf16.mxu0 %v3383_v51 }
 0x79f   :  { %1791 = vmatpush1.bf16.msra.mxu0 %v3381_v4 }
 0x7a0   :  { %1792 = vmatprep.subr.bf16.mxu0 %v3386_v54 }
 0x7a3   :  { %1793 = vmatpush1.bf16.msra.mxu0 %v3384_v15 }
 0x7a4   :  { %1794 = vmatprep.subr.bf16.mxu0 %v3389_v6 }
 0x7a7   :  { %1795 = vmatpush1.bf16.msra.mxu0 %v3387_v52 }
 0x7a8   :  { %3055 = vmatprep.subr.bf16.mxu0 %v3725_v0 }
 0x7aa   :  { %1813 = vmatmul.mubr.bf16.vlgmr.msra.gmra.mrb[20].mxu0 %v1434_v1 }
 0x7ab   :  { %3056 = vmatpush3.bf16.msra.mxu0 %v4133_v56  ;;  %3071 = vmatprep.mubr.msk.bf16.mxu0 %vm3726_vm0, %v3725_v0  ;;  %v3390_v56 = vld [vmem:[#allocation11] sm:$0xff]  }
 0x7ac   :  { %3057 = vmatprep.subr.bf16.mxu0 %v3725_v0  ;;  %2996 = vmatpush3.bf16.msra.mxu1 %v3390_v56 }
 0x7ad   :  { %2997 = vmatprep.subr.bf16.mxu1 %v3725_v0 }
 0x7af   :  { %3058 = vmatpush3.bf16.msra.mxu0 %v4136_v45  ;;  %v3391_v45 = vld [vmem:[#allocation11 + $0x8] sm:$0xff]  }
 0x7b0   :  { %3059 = vmatprep.subr.bf16.mxu0 %v3725_v0  ;;  %2998 = vmatpush3.bf16.msra.mxu1 %v3391_v45 }
 0x7b1   :  { %2999 = vmatprep.subr.bf16.mxu1 %v3725_v0 }
 0x7b3   :  { %3060 = vmatpush3.bf16.msra.mxu0 %v4140_v61  ;;  %v3392_v61 = vld [vmem:[#allocation11 + $0x10] sm:$0xff]  }
 0x7b4   :  { %3061 = vmatprep.subr.bf16.mxu0 %v3725_v0  ;;  %3000 = vmatpush3.bf16.msra.mxu1 %v3392_v61 }
 0x7b5   :  { %3001 = vmatprep.subr.bf16.mxu1 %v3725_v0 }
 0x7b7   :  { %3062 = vmatpush3.bf16.msra.mxu0 %v4144_v63  ;;  %v3393_v63 = vld [vmem:[#allocation11 + $0x18] sm:$0xff]  }
 0x7b8   :  { %3063 = vmatprep.subr.bf16.mxu0 %v3725_v0  ;;  %3002 = vmatpush3.bf16.msra.mxu1 %v3393_v63 }
 0x7b9   :  { %3003 = vmatprep.subr.bf16.mxu1 %v3725_v0 }
 0x7bb   :  { %3064 = vmatpush3.bf16.msra.mxu0 %v4149_v8  ;;  %v3394_v8 = vld [vmem:[#allocation11 + $0x20] sm:$0xff]  }
 0x7bc   :  { %3065 = vmatprep.subr.bf16.mxu0 %v3725_v0  ;;  %3004 = vmatpush3.bf16.msra.mxu1 %v3394_v8 }
 0x7bd   :  { %3005 = vmatprep.subr.bf16.mxu1 %v3725_v0 }
 0x7bf   :  { %3066 = vmatpush3.bf16.msra.mxu0 %v4152_v19  ;;  %v3395_v19 = vld [vmem:[#allocation11 + $0x28] sm:$0xff]  }
 0x7c0   :  { %3067 = vmatprep.subr.bf16.mxu0 %v3725_v0  ;;  %3006 = vmatpush3.bf16.msra.mxu1 %v3395_v19 }
 0x7c1   :  { %3007 = vmatprep.subr.bf16.mxu1 %v3725_v0 }
 0x7c3   :  { %3068 = vmatpush3.bf16.msra.mxu0 %v4156_v24  ;;  %v3396_v24 = vld [vmem:[#allocation11 + $0x30] sm:$0xff]  }
 0x7c4   :  { %3069 = vmatprep.subr.bf16.mxu0 %v3725_v0  ;;  %3008 = vmatpush3.bf16.msra.mxu1 %v3396_v24 }
 0x7c5   :  { %3009 = vmatprep.subr.bf16.mxu1 %v3725_v0 }
 0x7c7   :  { %3070 = vmatpush3.bf16.msra.mxu0 %v4160_v25  ;;  %v3397_v25 = vld [vmem:[#allocation11 + $0x38] sm:$0xff]  }
 0x7c8   :  { %3095 = vmatprep.subr.bf16.mxu0 %v3725_v0  ;;  %3010 = vmatpush3.bf16.msra.mxu1 %v3397_v25 }
 0x7c9   :  { %3015 = vmatprep.subr.bf16.mxu1 %v3725_v0 }
 0x87d   :  { %v1814_v3 = vpop.f32.mrb[20].mxu0 }
 0x87e   :  { %v1816_v5 = vpop.f32.mrb[21].mxu0  ;;  %v3159_v39 = vadd.f32 %v1814_v3, %v1490_v60  ;;  %v3398_v3 = vld [vmem:[#allocation13] sm:$0xff]  }
 0x87f   :  { %v3160_v21 = vadd.f32 %v1816_v5, %v1494_v2  ;;  %v1818_v22 = vpop.f32.mrb[22].mxu0  ;;  %v3399_v5 = vld [vmem:[#allocation13 + $0x8] sm:$0xff]  }
 0x880   :  { %v1820_v23 = vpop.f32.mrb[23].mxu0  ;;  %v3161_v51 = vadd.f32 %v1818_v22, %v1490_v60  ;;  %v3401_v22 = vld [vmem:[#allocation13 + $0x18] sm:$0xff]  }
 0x881   :  { %v2682_v33 = vmul.f32 -1.442695, %v3160_v21  ;;  %v3162_v43 = vadd.f32 %v1820_v23, %v1494_v2  ;;  %v3400_v21 = vld [vmem:[#allocation13 + $0x10] sm:$0xff]   ;;  %v3402_v23 = vld [vmem:[#allocation13 + $0x20] sm:$0xff]  }
 0x883   :  { %3438 = vpow2.f32 %v2682_v33  ;;  %v2683_v44 = vmul.f32 -1.442695, %v3162_v43  ;;  %v3403_v33 = vld [vmem:[#allocation13 + $0x28] sm:$0xff]   ;;  %v3404_v43 = vld [vmem:[#allocation13 + $0x30] sm:$0xff]  }
 0x885   :  { %3440 = vpow2.f32 %v2683_v44  ;;  %v3405_v44 = vld [vmem:[#allocation13 + $0x38] sm:$0xff]  }
 0x88d   :  { %v3439_v57 = vpop.eup %3438 }
 0x88e   :  { %v1829_v58 = vadd.f32 1.0, %v3439_v57  ;;  %v3406_v57 = vld [vmem:[#allocation14] sm:$0xff]  }
 0x88f   :  { %v3441_v59 = vpop.eup %3440 }
 0x890   :  { %3442 = vrcp.f32 %v1829_v58  ;;  %v1830_v48 = vadd.f32 1.0, %v3441_v59  ;;  %v3407_v58 = vld [vmem:[#allocation14 + $0x8] sm:$0xff]   ;;  %v3408_v59 = vld [vmem:[#allocation14 + $0x10] sm:$0xff]  }
 0x892   :  { %3444 = vrcp.f32 %v1830_v48  ;;  %v3409_v48 = vld [vmem:[#allocation14 + $0x18] sm:$0xff]  }
 0x89a   :  { %v3443_v50 = vpop.eup %3442 }
 0x89b   :  { %v4280_v4 = vmul.f32 %v3443_v50, %v3159_v39 }
 0x89c   :  { %v3445_v54 = vpop.eup %3444 }
 0x89d   :  { %v4282_v15 = vmul.f32 %v3445_v54, %v3161_v51 }
 0x89f   :  { %v1837_v6 = vpack.c.bf16 %v4282_v15, %v4280_v4 }
 0x8a1   :  { %3012 = vmatmul.mubr.bf16.vlgmr.msra.gmra.mrb[12].mxu1 %v1837_v6 }
 0x8a2   :  { %3016 = vmatpush3.bf16.msra.mxu1 %v4047_v7  ;;  %3031 = vmatprep.mubr.msk.bf16.mxu1 %vm3726_vm0, %v3725_v0 }
 0x8a3   :  { %3017 = vmatprep.subr.bf16.mxu1 %v3725_v0 }
 0x8a6   :  { %3018 = vmatpush3.bf16.msra.mxu1 %v4052_v9 }
 0x8a7   :  { %3019 = vmatprep.subr.bf16.mxu1 %v3725_v0 }
 0x8aa   :  { %3020 = vmatpush3.bf16.msra.mxu1 %v4058_v10  ;;  %v3454_v10 = vld [vmem:[#allocation2] sm:$0xff] }
 0x8ab   :  { %3021 = vmatprep.subr.bf16.mxu1 %v3725_v0 }
 0x8ae   :  { %3022 = vmatpush3.bf16.msra.mxu1 %v4062_v11 }
 0x8af   :  { %3023 = vmatprep.subr.bf16.mxu1 %v3725_v0 }
 0x8b2   :  { %3024 = vmatpush3.bf16.msra.mxu1 %v4066_v12 }
 0x8b3   :  { %3025 = vmatprep.subr.bf16.mxu1 %v3725_v0 }
 0x8b6   :  { %3026 = vmatpush3.bf16.msra.mxu1 %v4070_v13 }
 0x8b7   :  { %3027 = vmatprep.subr.bf16.mxu1 %v3725_v0 }
 0x8ba   :  { %3028 = vmatpush3.bf16.msra.mxu1 %v4075_v14 }
 0x8bb   :  { %3029 = vmatprep.subr.bf16.mxu1 %v3725_v0 }
 0x8be   :  { %3030 = vmatpush3.bf16.msra.mxu1 %v4079_v16  ;;  %v3455_v16 = vld [vmem:[#allocation2 + $0x8] sm:$0xff] }
 0x8bf   :  { %3035 = vmatprep.subr.bf16.mxu1 %v3725_v0 }
 0x974   :  { %v1943_v46 = vpop.f32.mrb[12].mxu1 }
 0x975   :  { %v1944_v62 = vadd.f32 %v4086_v17, %v1943_v46  ;;  %v3013_v7 = vpop.f32.mrb[13].mxu1 }
 0x976   :  { %v1946_v9 = vpop.f32.mrb[14].mxu1 }
 0x977   :  { %v1950_v11 = vadd.f32 %v3454_v10, %v1944_v62  ;;  %v3014_v12 = vpop.f32.mrb[15].mxu1  ;;  %v1947_v14 = vadd.f32 %v4086_v17, %v1946_v9  ;;  %v3410_v9 = vld [vmem:[#allocation14 + $0x20] sm:$0xff]   ;;  %v3411_v10 = vld [vmem:[#allocation14 + $0x28] sm:$0xff]  }
 0x978   :  { %v3413_v12 = vld [vmem:[#allocation14 + $0x38] sm:$0xff]  }
 0x979   :  { %v1952_v52 = vmul.f32 0.70710677, %v1950_v11  ;;  %v3412_v11 = vld [vmem:[#allocation14 + $0x30] sm:$0xff]  }
 0x97b   :  { %v1954_v13 = vpack.c.bf16 %v1952_v52, %v1952_v52  ;;  %v3414_v52 = vld [vmem:[#allocation16] sm:$0xff]  }
 0x97d   :  { %3032 = vmatmul.mubr.bf16.vlgmr.msra.gmra.mrb[16].mxu1 %v1954_v13  ;;  %v3415_v13 = vld [vmem:[#allocation16 + $0x8] sm:$0xff]  }
 0x97e   :  { %3036 = vmatpush3.bf16.msra.mxu1 %v4090_v27  ;;  %3051 = vmatprep.mubr.msk.bf16.mxu1 %vm3726_vm0, %v3725_v0  ;;  %v1951_v27 = vadd.f32 %v3455_v16, %v1947_v14  ;;  %v3416_v14 = vld [vmem:[#allocation16 + $0x10] sm:$0xff]   ;;  %v3417_v16 = vld [vmem:[#allocation16 + $0x18] sm:$0xff]  }
 0x97f   :  { %3037 = vmatprep.subr.bf16.mxu1 %v3725_v0 }
 0x982   :  { %3038 = vmatpush3.bf16.msra.mxu1 %v4093_v29  ;;  %v1953_v29 = vmul.f32 0.70710677, %v1951_v27  ;;  %v3418_v27 = vld [vmem:[#allocation16 + $0x20] sm:$0xff]  }
 0x983   :  { %3039 = vmatprep.subr.bf16.mxu1 %v3725_v0 }
 0x986   :  { %3040 = vmatpush3.bf16.msra.mxu1 %v4099_v30  ;;  %v1955_v30 = vpack.c.bf16 %v1953_v29, %v1953_v29  ;;  %v3419_v29 = vld [vmem:[#allocation16 + $0x28] sm:$0xff]  }
 0x987   :  { %3041 = vmatprep.subr.bf16.mxu1 %v3725_v0 }
 0x98a   :  { %3042 = vmatpush3.bf16.msra.mxu1 %v4103_v18 }
 0x98b   :  { %3043 = vmatprep.subr.bf16.mxu1 %v3725_v0 }
 0x98e   :  { %3044 = vmatpush3.bf16.msra.mxu1 %v4107_v31 }
 0x98f   :  { %3045 = vmatprep.subr.bf16.mxu1 %v3725_v0 }
 0x992   :  { %3046 = vmatpush3.bf16.msra.mxu1 %v4111_v32 }
 0x993   :  { %3047 = vmatprep.subr.bf16.mxu1 %v3725_v0 }
 0x996   :  { %3048 = vmatpush3.bf16.msra.mxu1 %v4116_v34 }
 0x997   :  { %3049 = vmatprep.subr.bf16.mxu1 %v3725_v0 }
 0x99a   :  { %3050 = vmatpush3.bf16.msra.mxu1 %v4121_v36 }
 0x99b   :  { %3075 = vmatprep.subr.bf16.mxu1 %v3725_v0 }
 0x99d   :  { %3052 = vmatmul.mubr.bf16.vlgmr.msra.gmra.mrb[20].mxu1 %v1955_v30 }
 0x99e   :  { %3076 = vmatpush3.bf16.msra.mxu1 %v4164_v26  ;;  %3091 = vmatprep.mubr.msk.bf16.mxu1 %vm3726_vm0, %v3725_v0 }
 0x99f   :  { %3077 = vmatprep.subr.bf16.mxu1 %v3725_v0 }
 0x9a2   :  { %3078 = vmatpush3.bf16.msra.mxu1 %v4168_v28 }
 0x9a3   :  { %3079 = vmatprep.subr.bf16.mxu1 %v3725_v0 }
 0x9a6   :  { %3080 = vmatpush3.bf16.msra.mxu1 %v4172_v35 }
 0x9a7   :  { %3081 = vmatprep.subr.bf16.mxu1 %v3725_v0 }
 0x9aa   :  { %3082 = vmatpush3.bf16.msra.mxu1 %v4176_v37 }
 0x9ab   :  { %3083 = vmatprep.subr.bf16.mxu1 %v3725_v0 }
 0x9ae   :  { %3084 = vmatpush3.bf16.msra.mxu1 %v4181_v38 }
 0x9af   :  { %3085 = vmatprep.subr.bf16.mxu1 %v3725_v0 }
 0x9b2   :  { %3086 = vmatpush3.bf16.msra.mxu1 %v4184_v20 }
 0x9b3   :  { %3087 = vmatprep.subr.bf16.mxu1 %v3725_v0 }
 0x9b6   :  { %3088 = vmatpush3.bf16.msra.mxu1 %v4188_v40 }
 0x9b7   :  { %3089 = vmatprep.subr.bf16.mxu1 %v3725_v0 }
 0x9ba   :  { %3090 = vmatpush3.bf16.msra.mxu1 %v4192_v42 }
 0x9bb   :  { %3115 = vmatprep.subr.bf16.mxu1 %v3725_v0 }
 0xa50   :  { %v1990_v17 = vpop.f32.mrb[16].mxu1 }
 0xa51   :  { %v1991_v18 = vadd.f32 %v1990_v17, %v4129_v41  ;;  %v3033_v31 = vpop.f32.mrb[17].mxu1 }
 0xa52   :  { %v1993_v32 = vpop.f32.mrb[18].mxu1 }
 0xa53   :  { %2036 = vmax.xlane.f32.xlu0 %v1991_v18  ;;  %v3034_v34 = vpop.f32.mrb[19].mxu1 }
 0xa70   :  { %v2030_v36 = vpop.f32.mrb[20].mxu1 }
 0xa71   :  { %v2031_v26 = vadd.f32 %v2030_v36, %v4129_v41  ;;  %v3053_v28 = vpop.f32.mrb[21].mxu1 }
 0xa72   :  { %v2033_v35 = vpop.f32.mrb[22].mxu1 }
 0xa73   :  { %2038 = vmax.xlane.f32.xlu1 %v2031_v26  ;;  %v3054_v37 = vpop.f32.mrb[23].mxu1 }
 0xae0   :  { %v2037_v38 = vpop.xlane.xlu0 %2036 }
 0xae1   :  { %v2040_v20 = vsub.f32 %v1991_v18, %v2037_v38 }
 0xae3   :  { %v2042_v40 = vmul.f32 1.442695, %v2040_v20 }
 0xae5   :  { %3446 = vpow2.f32 %v2042_v40 }
 0xaef   :  { %v3447_v42 = vpop.eup %3446 }
 0xaf0   :  { %2046 = vadd.xlane.f32.xlu0 %v3447_v42 }
 0xb00   :  { %v2039_v1 = vpop.xlane.xlu1 %2038 }
 0xb01   :  { %v2041_v56 = vsub.f32 %v2031_v26, %v2039_v1  ;;  %v3420_v1 = vld [vmem:[#allocation16 + $0x30] sm:$0xff]  }
 0xb03   :  { %v2044_v45 = vmul.f32 1.442695, %v2041_v56 }
 0xb05   :  { %3448 = vpow2.f32 %v2044_v45 }
 0xb0f   :  { %v3449_v61 = vpop.eup %3448 }
 0xb10   :  { %2048 = vadd.xlane.f32.xlu1 %v3449_v61 }
 0xb7d   :  { %v2047_v63 = vpop.xlane.xlu0 %2046 }
 0xb7e   :  { %3450 = vrcp.f32 %v2047_v63 }
 0xb88   :  { %v3451_v8 = vpop.eup %3450 }
 0xb89   :  { %v2052_v41 = vmul.f32 %v3451_v8, %v3447_v42 }
 0xb8b   :  { %v2054_v19 = vpack.c.bf16 %v2052_v41, %v2052_v41  ;;  %2485 = vst [vmem:[#allocation18] sm:$0xff] %v2052_v41 }
 0xb8d   :  { %3072 = vmatmul.mubr.bf16.vlgmr.msra.gmra.mrb[24].mxu0 %v2054_v19 }
 0xb8e   :  { %3111 = vmatprep.mubr.msk.bf16.mxu0 %vm3726_vm0, %v3725_v0  ;;  %3096 = vmatpush3.bf16.msra.mxu0 %v3398_v3 }
 0xb8f   :  { %3097 = vmatprep.subr.bf16.mxu0 %v3725_v0 }
 0xb92   :  { %3098 = vmatpush3.bf16.msra.mxu0 %v3399_v5 }
 0xb93   :  { %3099 = vmatprep.subr.bf16.mxu0 %v3725_v0 }
 0xb96   :  { %3100 = vmatpush3.bf16.msra.mxu0 %v3400_v21 }
 0xb97   :  { %3101 = vmatprep.subr.bf16.mxu0 %v3725_v0 }
 0xb9a   :  { %3102 = vmatpush3.bf16.msra.mxu0 %v3401_v22 }
 0xb9b   :  { %3103 = vmatprep.subr.bf16.mxu0 %v3725_v0 }
 0xb9d   :  { %v2049_v24 = vpop.xlane.xlu1 %2048 }
 0xb9e   :  { %3452 = vrcp.f32 %v2049_v24  ;;  %3104 = vmatpush3.bf16.msra.mxu0 %v3402_v23 }
 0xb9f   :  { %3105 = vmatprep.subr.bf16.mxu0 %v3725_v0 }
 0xba2   :  { %3106 = vmatpush3.bf16.msra.mxu0 %v3403_v33 }
 0xba3   :  { %3107 = vmatprep.subr.bf16.mxu0 %v3725_v0 }
 0xba6   :  { %3108 = vmatpush3.bf16.msra.mxu0 %v3404_v43 }
 0xba7   :  { %3109 = vmatprep.subr.bf16.mxu0 %v3725_v0 }
 0xba8   :  { %v3453_v25 = vpop.eup %3452 }
 0xba9   :  { %v2053_v55 = vmul.f32 %v3453_v25, %v3449_v61 }
 0xbaa   :  { %3110 = vmatpush3.bf16.msra.mxu0 %v3405_v44 }
 0xbab   :  { %v2055_v2 = vpack.c.bf16 %v2053_v55, %v2053_v55  ;;  %2486 = vst [vmem:[#allocation18 + $0x8] sm:$0xff] %v2053_v55  ;;  %3135 = vmatprep.subr.bf16.mxu0 %v3725_v0 }
 0xbad   :  { %3092 = vmatmul.mubr.bf16.vlgmr.msra.gmra.mrb[24].mxu1 %v2055_v2 }
 0xbae   :  { %3131 = vmatprep.mubr.msk.bf16.mxu1 %vm3726_vm0, %v3725_v0  ;;  %3116 = vmatpush3.bf16.msra.mxu1 %v3406_v57 }
 0xbaf   :  { %3117 = vmatprep.subr.bf16.mxu1 %v3725_v0 }
 0xbb2   :  { %3118 = vmatpush3.bf16.msra.mxu1 %v3407_v58 }
 0xbb3   :  { %3119 = vmatprep.subr.bf16.mxu1 %v3725_v0 }
 0xbb6   :  { %3120 = vmatpush3.bf16.msra.mxu1 %v3408_v59 }
 0xbb7   :  { %3121 = vmatprep.subr.bf16.mxu1 %v3725_v0 }
 0xbba   :  { %3122 = vmatpush3.bf16.msra.mxu1 %v3409_v48 }
 0xbbb   :  { %3123 = vmatprep.subr.bf16.mxu1 %v3725_v0 }
 0xbbe   :  { %3124 = vmatpush3.bf16.msra.mxu1 %v3410_v9 }
 0xbbf   :  { %3125 = vmatprep.subr.bf16.mxu1 %v3725_v0 }
 0xbc2   :  { %3126 = vmatpush3.bf16.msra.mxu1 %v3411_v10 }
 0xbc3   :  { %3127 = vmatprep.subr.bf16.mxu1 %v3725_v0 }
 0xbc6   :  { %3128 = vmatpush3.bf16.msra.mxu1 %v3412_v11 }
 0xbc7   :  { %3129 = vmatprep.subr.bf16.mxu1 %v3725_v0 }
 0xbca   :  { %3130 = vmatpush3.bf16.msra.mxu1 %v3413_v12 }
 0xc60   :  { %v2090_v60 = vpop.f32.mrb[24].mxu0 }
 0xc61   :  { %v3073_v39 = vpop.f32.mrb[25].mxu0 }
 0xc62   :  { %v2093_v50 = vpop.f32.mrb[26].mxu0 }
 0xc63   :  { %v3074_v51 = vpop.f32.mrb[27].mxu0 }
 0xc80   :  { %v2130_v54 = vpop.f32.mrb[24].mxu1 }
 0xc81   :  { %v2136_v6 = vpack.c.bf16 %v2130_v54, %v2090_v60  ;;  %v3093_v46 = vpop.f32.mrb[25].mxu1 }
 0xc82   :  { %v2133_v62 = vpop.f32.mrb[26].mxu1 }
 0xc83   :  { %v3094_v7 = vpop.f32.mrb[27].mxu1  ;;  %3112 = vmatmul.mubr.bf16.vlgmr.msra.gmra.mrb[28].mxu0 %v2136_v6 }
 0xc84   :  { %3151 = vmatprep.mubr.msk.bf16.mxu0 %vm3726_vm0, %v3725_v0  ;;  %3136 = vmatpush3.bf16.msra.mxu0 %v3414_v52 }
 0xc85   :  { %3137 = vmatprep.subr.bf16.mxu0 %v3725_v0 }
 0xc88   :  { %3138 = vmatpush3.bf16.msra.mxu0 %v3415_v13 }
 0xc89   :  { %3139 = vmatprep.subr.bf16.mxu0 %v3725_v0 }
 0xc8c   :  { %3140 = vmatpush3.bf16.msra.mxu0 %v3416_v14 }
 0xc8d   :  { %3141 = vmatprep.subr.bf16.mxu0 %v3725_v0 }
 0xc90   :  { %3142 = vmatpush3.bf16.msra.mxu0 %v3417_v16 }
 0xc91   :  { %3143 = vmatprep.subr.bf16.mxu0 %v3725_v0 }
 0xc94   :  { %3144 = vmatpush3.bf16.msra.mxu0 %v3418_v27 }
 0xc95   :  { %3145 = vmatprep.subr.bf16.mxu0 %v3725_v0 }
 0xc98   :  { %3146 = vmatpush3.bf16.msra.mxu0 %v3419_v29 }
 0xc99   :  { %3147 = vmatprep.subr.bf16.mxu0 %v3725_v0 }
 0xc9c   :  { %3148 = vmatpush3.bf16.msra.mxu0 %v3420_v1 }
 0xc9d   :  { %3149 = vmatprep.subr.bf16.mxu0 %v3725_v0 }
 0xd56   :  { %v2242_v30 = vpop.f32.mrb[28].mxu0 }
 0xd57   :  { %v2243_v17 = vadd.f32 %v4211_v53, %v2242_v30  ;;  %v3113_v18 = vpop.f32.mrb[29].mxu0 }
 0xd58   :  { %v2245_v31 = vpop.f32.mrb[30].mxu0 }
 0xd59   :  { %v2249_v32 = vadd.f32 %v2243_v17, %v4280_v4  ;;  %v2246_v34 = vadd.f32 %v4211_v53, %v2245_v31  ;;  %v3114_v36 = vpop.f32.mrb[31].mxu0  ;;  %v3421_v4 = vld [vmem:[#allocation16 + $0x38] sm:$0xff]   ;;  %v2702_v53 = vld [vmem:[%s4426_s12] ss:$0 sm:$0xff] }
 0xd5a   :  { %3150 = vmatpush3.bf16.msra.mxu0 %v3421_v4 }
 0xd5b   :  { %v2251_v26 = vmul.f32 0.70710677, %v2249_v32  ;;  %v2250_v28 = vadd.f32 %v2246_v34, %v4282_v15 }
 0xd5d   :  { %v2253_v35 = vadd.f32 %v2251_v26, %v4218_v47  ;;  %v2252_v37 = vmul.f32 0.70710677, %v2250_v28 }
 0xd5f   :  { %v2254_v38 = vadd.f32 %v2252_v37, %v4221_v49  ;;  %v2255_v20 = vmul.f32 0.70710677, %v2253_v35 }
 0xd61   :  { %v2256_v40 = vmul.f32 0.70710677, %v2254_v38 }
 0xd63   :  { %v2257_v42 = vpack.c.bf16 %v2256_v40, %v2255_v20 }
 0xd65   :  { %3132 = vmatmul.mubr.bf16.vlgmr.msra.gmra.mrb[28].mxu1 %v2257_v42 }
 0xe38   :  { %v2363_v15 = vpop.f32.mrb[28].mxu1 }
 0xe39   :  { %v3133_v56 = vpop.f32.mrb[29].mxu1  ;;  %v2364_v45 = vadd.f32 %v2702_v53, %v2363_v15 }
 0xe3a   :  { %v2366_v47 = vpop.f32.mrb[30].mxu1 }
 0xe3b   :  { %v2367_v61 = vadd.f32 %v2702_v53, %v2366_v47  ;;  %v3134_v49 = vpop.f32.mrb[31].mxu1 }
 0xe3d   :  { %v2370_v63 = vpack.c.bf16 %v2367_v61, %v2364_v45 }
 0xe3f   :  { %3152 = vmatmul.mubr.bf16.vlgmr.msra.gmra.mrb[32].mxu0 %v2370_v63 }
 0xe40   :  { %3665 = shalt.err (!%p3662_p6)
}
 0xe41   :  { %s3666_s29 = scalar_lea.hbm %s4430_s16, 256 }
 0xe42   :  { %p3667_p7 = scmp.ne.s32.totalorder %s4430_s16, %s3666_s29  ;;  %p3670_p8 = scmp.lt.u32.totalorder %s3666_s29, %s4430_s16 }
 0xe44   :  { %p3672_p9 = pnand %p3670_p8, %p3667_p7 }
 0xe46   :  { %3675 = shalt.err (!%p3672_p9)
}
 0xe47   :  { %2510 = dma.vmem_to_hbm [thread:$0]  %s2505_s5, 256, %s4430_s16, [#allocation19], %s3719_s11, %s3719_s11, %s3720_s30  }
 0xe48   :  { %v2711_v0 = vld [vmem:[%s4428_s14] ss:$0 sm:$0xff]  ;;  %s3730_s19 = smov [#allocation17]  }
 0xe49   :  { %s2492_s13 = sshll.u32 %s3730_s19, 4  ;;  %s2493_s13 = int_to_ptr.vmem [resolvable:$true] %s2492_s13 }
 0xe4a   :  { %s3676_s0 = scalar_lea.vmem %s2493_s13, 256  ;;  %p3681_p11 = scmp.lt.s32.totalorder %s2493_s13, %s2493_s13 }
 0xe4b   :  { %p3677_p10 = scmp.ne.s32.totalorder %s2493_s13, %s3676_s0  ;;  %p3682_p12 = scmp.lt.s32.totalorder %s3676_s0, %s3676_s0 }
 0xe4d   :  { %p3683_p13 = por %p3682_p12, %p3681_p11 }
 0xe4f   :  { %p3684_p0 = pnand %p3683_p13, %p3677_p10 }
 0xf12   :  { %v2476_v8 = vpop.f32.mrb[32].mxu0 }
 0xf13   :  { %v2477_v41 = vadd.f32 %v2711_v0, %v2476_v8  ;;  %v3153_v19 = vpop.f32.mrb[33].mxu0 }
 0xf14   :  { %v2479_v24 = vpop.f32.mrb[34].mxu0 }
 0xf15   :  { %2483 = vst [vmem:[#allocation17] sm:$0xff] %v2477_v41  ;;  %v2480_v25 = vadd.f32 %v2711_v0, %v2479_v24  ;;  %v3154_v55 = vpop.f32.mrb[35].mxu0 }
 0xf17   :  { %2484 = vst [vmem:[#allocation17 + $0x8] sm:$0xff] %v2480_v25 }
 0xf18   :  { %3687 = shalt.err (!%p3684_p0)
}
 0xf19   :  { %s4444_s4 = sld [smem:[#allocation28_spill]] }
 0xf1f   :  { %s3688_s17 = scalar_lea.hbm %s4444_s4, 256 }
 0xf20   :  { %p3689_p1 = scmp.ne.s32.totalorder %s4444_s4, %s3688_s17  ;;  %p3692_p2 = scmp.lt.u32.totalorder %s3688_s17, %s4444_s4 }
 0xf22   :  { %p3694_p3 = pnand %p3692_p2, %p3689_p1 }
 0xf24   :  { %3697 = shalt.err (!%p3694_p3)
}
 0xf25   :  { %2498 = dma.vmem_to_hbm [thread:$0]  %s2493_s13, 256, %s4444_s4, [#allocation4], %s3719_s11, %s3719_s11, %s3720_s30  }
 0xf26   :  { %3708 = dma.done.wait [#allocation4], 256  }
 0xf27   :  { %3709 = vsyncadd [#allocation4], 4294967040 }
 0xf28   :  { %3710 = dma.done.wait [#allocation19], 256  }
 0xf29   :  { %3711 = vsyncadd [#allocation19], 4294967040 }
 0xf2a   :  { %2517 = vsyncpa [#allocation3], 1 }
 0xf2b   :  { %2518 = vsyncpa [#allocation6], 1 }
 0xf2c   :  { %2519 = vsyncpa [#allocation9], 1 }
 0xf2d   :  { %2520 = vsyncpa [#allocation12], 1 }
 0xf2e   :  { %2521 = vsyncpa [#allocation15], 1 }
 0xf2f   :  { %2522 = vsyncpa [#allocation4], 1 }
 0xf30   :  { %2523 = vsyncpa [#allocation19], 1 }

</bundles_post_ra>
